<compile_context>
chip_gen: v7x
topology: tpu7x:2x2x1
jax: 0.10.0
libtpu: 0.0.40
codegen_flags: <defaults>
</compile_context>

<pallas_src>
import functools
import math

import jax
import jax.numpy as jnp
from jax import lax
from jax.experimental import pallas as pl
from jax.experimental.pallas import tpu as pltpu


def _round_up(x, m):
    return (x + m - 1) // m * m


def _vmem_budget_bytes():
    """~80% of physical VMEM, with a conservative 64 MiB fallback (v7x-safe)."""
    try:
        cap = int(pltpu.get_tpu_info().vmem_capacity_bytes)
        if cap <= 0:
            raise ValueError
    except Exception:
        cap = 64 << 20
    return int(0.8 * cap)


def _default_num_batch_blocks(batch):
    """2 only on 2-TensorCore chips (v7x) with enough rows per block."""
    try:
        kind = jax.devices()[0].device_kind.lower()
    except Exception:
        kind = ""
    if "v7" in kind and batch >= 16:
        return 2
    return 1


def _vmem_estimate(block_t, Bb, E, Hp, md_itemsize):
    x_blk = block_t * Bb * E * 4            # double-buffered input
    out_blk = block_t * Bb * Hp * 4         # double-buffered output
    pi_blk = block_t * Bb * 6 * Hp * 4      # single VMEM scratch
    wi_b = E * 6 * Hp * md_itemsize
    ws_b = Hp * 5 * Hp * md_itemsize
    state = 4 * Bb * Hp * 4
    return 2 * (x_blk + out_blk) + pi_blk + wi_b + ws_b + state + (2 << 20)


def _lstm_kernel(maxlen_ref, x_ref, lens_ref, wi_ref, bias_ref, ws_ref,
                 out_ref, h_ref, c_ref, pi_ref,
                 *, hidden, block_t, matmul_dtype):
    """Grid = (batch_blocks, T // block_t). One call == block_t timesteps."""
    b = pl.program_id(0)
    s = pl.program_id(1)
    H = hidden

    # states=None in the PyTorch forward -> zero initial (h, c) per batch block.
    @pl.when(s == 0)
    def _():
        h_ref[...] = jnp.zeros_like(h_ref)
        c_ref[...] = jnp.zeros_like(c_ref)

    base_t = s * block_t
    max_len = maxlen_ref[b]

    # Fully padded time chunk for this batch block: outputs are zero, state
    # frozen -> skip the matmuls and transcendentals entirely.
    @pl.when(max_len <= base_t)
    def _():
        out_ref[...] = jnp.zeros_like(out_ref)

    @pl.when(max_len > base_t)
    def _():
        # ---- fused input projection for the whole chunk (one MXU matmul) ----
        xb = x_ref[...]                                    # (block_t, Bb, E) f32
        bt, Bb, E = xb.shape
        x2 = xb.reshape(bt * Bb, E).astype(matmul_dtype)
        pi = jnp.dot(x2, wi_ref[...], preferred_element_type=jnp.float32)
        pi_ref[...] = (pi + bias_ref[...]).reshape(bt, Bb, 6 * H)

        lens = lens_ref[...]                               # (Bb, 1) int32
        ws = ws_ref[...]                                   # (H, 5H) md

        # ---- serial recurrence: leading-axis reads/stores, vreg carries ----
        def step(k, carry):
            h, c = carry
            pi_k = pi_ref[k]                               # (Bb, 6H) f32, dense
            ps = jnp.dot(h.astype(matmul_dtype), ws,
                         preferred_element_type=jnp.float32)  # (Bb, 5H)
            fused = pi_k[:, :5 * H] + ps

            input_gate = jax.nn.sigmoid(fused[:, 0 * H:1 * H])
            forget_gate = jax.nn.sigmoid(fused[:, 1 * H:2 * H])
            memory_init = jnp.tanh(fused[:, 2 * H:3 * H])
            output_gate = jax.nn.sigmoid(fused[:, 3 * H:4 * H])
            highway_gate = jax.nn.sigmoid(fused[:, 4 * H:5 * H])

            c_new = input_gate * memory_init + forget_gate * c
            ts = output_gate * jnp.tanh(c_new)
            ts = highway_gate * ts + (1.0 - highway_gate) * pi_k[:, 5 * H:6 * H]

            # PackedSequence semantics: rows past their length freeze state and
            # their output slot stays zero.
            active = lens > (base_t + k)                   # (Bb, 1) bool
            c_out = jnp.where(active, c_new, c)
            h_out = jnp.where(active, ts, h)
            out_ref[k] = jnp.where(active, ts, 0.0).astype(out_ref.dtype)
            return (h_out, c_out)

        h_fin, c_fin = lax.fori_loop(0, block_t, step,
                                     (h_ref[...], c_ref[...]), unroll=True)
        h_ref[...] = h_fin
        c_ref[...] = c_fin


@functools.partial(
    jax.jit,
    static_argnames=("lstm_dim", "block_t", "use_bf16_matmul",
                     "num_batch_blocks", "vmem_limit"))
def _augmented_lstm_impl(x_bte, lengths, wi, bi, ws, bs, *,
                         lstm_dim, block_t, use_bf16_matmul,
                         num_batch_blocks, vmem_limit):
    B, T, E = x_bte.shape
    H = lstm_dim
    md = jnp.bfloat16 if use_bf16_matmul else jnp.float32

    Hp = _round_up(H, 128)                      # lane-align every gate slice
    Bp = _round_up(B, 8 * num_batch_blocks)     # sublane-align each batch block
    Bb = Bp // num_batch_blocks
    Tp = _round_up(T, block_t)

    # --- pad the fused weights so each gate block spans exactly Hp columns ---
    def pad_gate_blocks(w, n_gates):
        w2 = w.reshape(n_gates, H, *w.shape[1:])
        pad = [(0, 0)] * w2.ndim
        pad[1] = (0, Hp - H)
        return jnp.pad(w2, pad).reshape(n_gates * Hp, *w2.shape[2:])

    wi_p = pad_gate_blocks(wi, 6)                                   # (6Hp, E)
    bi_p = pad_gate_blocks(bi, 6)                                   # (6Hp,)
    ws_p = jnp.pad(pad_gate_blocks(ws, 5), ((0, 0), (0, Hp - H)))   # (5Hp, Hp)
    bs_p = pad_gate_blocks(bs, 5)                                   # (5Hp,)

    # State bias folded into the projection bias (added once per chunk, not
    # once per timestep on the serial path).
    bias_fused = jnp.concatenate([bi_p[:5 * Hp] + bs_p, bi_p[5 * Hp:]])
    bias2 = bias_fused.reshape(1, 6 * Hp).astype(jnp.float32)

    wi_t = wi_p.T.astype(md)                    # (E, 6Hp)  resident in VMEM
    ws_t = ws_p.T.astype(md)                    # (Hp, 5Hp) resident in VMEM

    lens_1d = jnp.pad(lengths.astype(jnp.int32), (0, Bp - B))
    lens_2d = lens_1d.reshape(Bp, 1)
    maxlen = lens_1d.reshape(num_batch_blocks, Bb).max(axis=1)      # SMEM prefetch

    # Time-major padded input (cheap E-wide transpose outside the kernel).
    x_tbe = jnp.pad(x_bte, ((0, Bp - B), (0, Tp - T), (0, 0)))
    x_tbe = x_tbe.transpose(1, 0, 2).astype(jnp.float32)            # (Tp, Bp, E)

    n_t = Tp // block_t
    grid = (num_batch_blocks, n_t)

    cost = pl.CostEstimate(
        flops=int(2 * Bp * Tp * E * 6 * Hp          # fused input projection
                  + 2 * Bp * Tp * Hp * 5 * Hp       # state matmuls
                  + 12 * Bp * Tp * Hp),             # gate elementwise
        transcendentals=int(6 * Bp * Tp * Hp),      # 4 sigmoid + 2 tanh / elem
        bytes_accessed=int(4 * Bp * Tp * (E + Hp)
                           + jnp.dtype(md).itemsize * (E * 6 * Hp + Hp * 5 * Hp)
                           + 8 * Bp * Hp + 4 * Bp),
    )

    kernel = functools.partial(_lstm_kernel, hidden=Hp, block_t=block_t,
                               matmul_dtype=md)

    out_p, h_p, c_p = pl.pallas_call(
        kernel,
        out_shape=(
            jax.ShapeDtypeStruct((Tp, Bp, Hp), jnp.float32),   # time-major out
            jax.ShapeDtypeStruct((Bp, Hp), jnp.float32),       # final h
            jax.ShapeDtypeStruct((Bp, Hp), jnp.float32),       # final c
        ),
        grid_spec=pltpu.PrefetchScalarGridSpec(
            num_scalar_prefetch=1,                  # per-batch-block max length
            grid=grid,
            in_specs=[
                # Raw input chunk, time-major (leading axis = timestep).
                pl.BlockSpec((block_t, Bb, E), lambda b, s, ml: (s, b, 0)),
                # Per-row sequence lengths.
                pl.BlockSpec((Bb, 1), lambda b, s, ml: (b, 0)),
                # Wi / fused bias / Ws: whole arrays resident in VMEM.
                pl.BlockSpec(memory_space=pltpu.MemorySpace.VMEM),
                pl.BlockSpec(memory_space=pltpu.MemorySpace.VMEM),
                pl.BlockSpec(memory_space=pltpu.MemorySpace.VMEM),
            ],
            out_specs=[
                # Time-major output slab -> per-step stores hit the leading axis.
                pl.BlockSpec((block_t, Bb, Hp), lambda b, s, ml: (s, b, 0)),
                # Resident carries (constant block index along the time axis).
                pl.BlockSpec((Bb, Hp), lambda b, s, ml: (b, 0)),
                pl.BlockSpec((Bb, Hp), lambda b, s, ml: (b, 0)),
            ],
            scratch_shapes=[
                # In-VMEM projected input for the whole chunk (never hits HBM).
                pltpu.VMEM((block_t, Bb, 6 * Hp), jnp.float32),
            ],
        ),
        compiler_params=pltpu.CompilerParams(
            dimension_semantics=("parallel", "arbitrary"),
            vmem_limit_bytes=int(vmem_limit),
        ),
        cost_estimate=cost,
    )(maxlen, x_tbe, lens_2d, wi_t, bias2, ws_t)

    out = out_p[:T, :B, :H].transpose(1, 0, 2)      # back to (B, T, H)
    h_f = h_p[:B, :H][None]
    c_f = c_p[:B, :H][None]
    return out, (h_f, c_f)


def augmented_lstm_unidirectional(x_bte, lengths, wi, bi, ws, bs, *,
                                  lstm_dim, block_t=16, use_bf16_matmul=True,
                                  num_batch_blocks=None):
    """
    Args:
      x_bte:   (B, T, E) float32 padded input (batch-first).
      lengths: (B,) int32 sequence lengths (PackedSequence convention).
      wi:      (6H, E) input_linearity weight.   bi: (6H,) bias.
      ws:      (5H, H) state_linearity weight.   bs: (5H,) bias.
    Returns:
      outputs (B, T, H) zero-padded past each length, and (h, c) each (1, B, H).
    """
    B, T, E = x_bte.shape
    H = lstm_dim

    if num_batch_blocks is None:
        num_batch_blocks = _default_num_batch_blocks(B)

    Hp = _round_up(H, 128)
    Bp = _round_up(B, 8 * num_batch_blocks)
    Bb = Bp // num_batch_blocks

    # Don't over-pad short sequences; keep chunking cheap.
    block_t = int(max(8, min(block_t, _round_up(T, 8))))

    # Generation-aware VMEM budget with fallback: shrink block_t if needed.
    budget = _vmem_budget_bytes()
    md_item = 2 if use_bf16_matmul else 4
    while block_t > 8 and _vmem_estimate(block_t, Bb, E, Hp, md_item) > budget:
        block_t = max(8, block_t // 2)

    return _augmented_lstm_impl(
        x_bte, lengths, wi, bi, ws, bs,
        lstm_dim=lstm_dim, block_t=block_t, use_bf16_matmul=use_bf16_matmul,
        num_batch_blocks=num_batch_blocks, vmem_limit=budget)


def _reference_forward(x_bte, lengths, wi, bi, ws, bs, H):
    """Pure-JAX reference mirroring the PyTorch module exactly."""
    B, T, E = x_bte.shape
    h = jnp.zeros((B, H), jnp.float32)
    c = jnp.zeros((B, H), jnp.float32)
    outs = jnp.zeros((B, T, H), jnp.float32)
    for t in range(T):
        xt = x_bte[:, t]
        pi = xt @ wi.T + bi
        ps = h @ ws.T + bs
        fused = pi[:, :5 * H] + ps
        i_g = jax.nn.sigmoid(fused[:, 0 * H:1 * H])
        f_g = jax.nn.sigmoid(fused[:, 1 * H:2 * H])
        g = jnp.tanh(fused[:, 2 * H:3 * H])
        o_g = jax.nn.sigmoid(fused[:, 3 * H:4 * H])
        hw = jax.nn.sigmoid(fused[:, 4 * H:5 * H])
        c_new = i_g * g + f_g * c
        o_t = o_g * jnp.tanh(c_new)
        o_t = hw * o_t + (1.0 - hw) * pi[:, 5 * H:6 * H]
        active = (lengths > t)[:, None]
        c = jnp.where(active, c_new, c)
        h = jnp.where(active, o_t, h)
        outs = outs.at[:, t].set(jnp.where(active, o_t, 0.0))
    return outs, (h[None], c[None])


if __name__ == "__main__":
    B, T, E, H = 4, 8, 16, 32

    key = jax.random.PRNGKey(0)
    k_x, k_wi, k_bi, k_ws, k_bs = jax.random.split(key, 5)

    stdv = 1.0 / math.sqrt(H)
    x = jax.random.normal(k_x, (B, T, E), dtype=jnp.float32)
    lengths = jnp.array([8, 7, 5, 3], dtype=jnp.int32)  # sorted descending

    wi = jax.random.uniform(k_wi, (6 * H, E), minval=-stdv, maxval=stdv, dtype=jnp.float32)
    bi = jax.random.uniform(k_bi, (6 * H,), minval=-stdv, maxval=stdv, dtype=jnp.float32)
    ws = jax.random.uniform(k_ws, (5 * H, H), minval=-stdv, maxval=stdv, dtype=jnp.float32)
    bs = jax.random.uniform(k_bs, (5 * H,), minval=-stdv, maxval=stdv, dtype=jnp.float32)

    ref_out, (ref_h, ref_c) = _reference_forward(x, lengths, wi, bi, ws, bs, H)

    # f32 matmuls, batch split into 2 blocks (exercises the parallel batch axis
    # and the all-padding chunk-skip path).
    out, (h_f, c_f) = augmented_lstm_unidirectional(
        x, lengths, wi, bi, ws, bs, lstm_dim=H, block_t=8,
        use_bf16_matmul=False, num_batch_blocks=2)
    out = jax.block_until_ready(out)
    h_f = jax.block_until_ready(h_f)
    c_f = jax.block_until_ready(c_f)
    assert out.shape == (B, T, H) and h_f.shape == (1, B, H) and c_f.shape == (1, B, H)
    assert jnp.allclose(out, ref_out, atol=1e-4, rtol=1e-4)
    assert jnp.allclose(h_f, ref_h, atol=1e-4, rtol=1e-4)
    assert jnp.allclose(c_f, ref_c, atol=1e-4, rtol=1e-4)

    # bf16 matmul inputs (f32 accumulation + f32 gate math): looser tolerance.
    out16, (h16, c16) = augmented_lstm_unidirectional(
        x, lengths, wi, bi, ws, bs, lstm_dim=H,
        use_bf16_matmul=True, num_batch_blocks=1)
    out16 = jax.block_until_ready(out16)
    assert jnp.allclose(out16, ref_out, atol=5e-2, rtol=5e-2)
    assert jnp.allclose(h16, ref_h, atol=5e-2, rtol=5e-2)
    assert jnp.allclose(c16, ref_c, atol=5e-2, rtol=5e-2)

    print("KERNEL_OK")
</pallas_src>

<mosaic_0001>
module attributes {stable_mosaic.version = 11 : i64} {
  func.func @_lstm_kernel(%arg0: i32, %arg1: i32, %arg2: memref<2xi32, #tpu.memory_space<smem>>, %arg3: memref<8x8x16xf32, #tpu.memory_space<vmem>>, %arg4: memref<8x1xi32, #tpu.memory_space<vmem>>, %arg5: memref<16x768xf32, #tpu.memory_space<vmem>>, %arg6: memref<1x768xf32, #tpu.memory_space<vmem>>, %arg7: memref<128x640xf32, #tpu.memory_space<vmem>>, %arg8: memref<8x8x128xf32, #tpu.memory_space<vmem>>, %arg9: memref<8x128xf32, #tpu.memory_space<vmem>>, %arg10: memref<8x128xf32, #tpu.memory_space<vmem>>, %arg11: memref<8x8x768xf32, #tpu.memory_space<vmem>>) attributes {dimension_semantics = [#tpu.dimension_semantics<parallel>, #tpu.dimension_semantics<arbitrary>], iteration_bounds = array<i64: 2, 1>, scalar_prefetch = 1 : i64, scratch_operands = 1 : i64, tpu.core_type = #tpu.core_type<tc>, window_params = [{transform_indices = @transform_0, window_bounds = array<i64: 8, 8, 16>}, {transform_indices = @transform_1, window_bounds = array<i64: 8, 1>}, {pipeline_mode = #tpu.pipeline_mode<synchronous>, transform_indices = @transform_2, window_bounds = array<i64: 16, 768>}, {pipeline_mode = #tpu.pipeline_mode<synchronous>, transform_indices = @transform_3, window_bounds = array<i64: 1, 768>}, {pipeline_mode = #tpu.pipeline_mode<synchronous>, transform_indices = @transform_4, window_bounds = array<i64: 128, 640>}, {transform_indices = @transform_5, window_bounds = array<i64: 8, 8, 128>}, {transform_indices = @transform_6, window_bounds = array<i64: 8, 128>}, {transform_indices = @transform_7, window_bounds = array<i64: 8, 128>}]} {
    %c0_i32 = arith.constant 0 : i32
    %0 = arith.cmpi eq, %arg1, %c0_i32 : i32
    %1 = arith.extui %0 : i1 to i32
    %c0_i32_0 = arith.constant 0 : i32
    %2 = arith.cmpi ne, %1, %c0_i32_0 : i32
    scf.if %2 {
      %cst = arith.constant 0.000000e+00 : f32
      %12 = vector.broadcast %cst : f32 to vector<8x128xf32>
      %c0 = arith.constant 0 : index
      %c0_3 = arith.constant 0 : index
      %13 = vector.load %arg9[%c0, %c0_3] : memref<8x128xf32, #tpu.memory_space<vmem>>, vector<8x128xf32>
      tpu.vector_store %arg9[%c0, %c0_3], %12 {strides = array<i32>} : memref<8x128xf32, #tpu.memory_space<vmem>>, vector<8x128xf32>,
      %cst_4 = arith.constant 0.000000e+00 : f32
      %14 = vector.broadcast %cst_4 : f32 to vector<8x128xf32>
      %c0_5 = arith.constant 0 : index
      %c0_6 = arith.constant 0 : index
      %15 = vector.load %arg10[%c0_5, %c0_6] : memref<8x128xf32, #tpu.memory_space<vmem>>, vector<8x128xf32>
      tpu.vector_store %arg10[%c0_5, %c0_6], %14 {strides = array<i32>} : memref<8x128xf32, #tpu.memory_space<vmem>>, vector<8x128xf32>,
    } else {
    }
    %c8_i32 = arith.constant 8 : i32
    %3 = arith.muli %arg1, %c8_i32 : i32
    %4 = arith.index_cast %arg0 : i32 to index
    %5 = memref.load %arg2[%4] : memref<2xi32, #tpu.memory_space<smem>>
    %6 = arith.cmpi sle, %5, %3 : i32
    %7 = arith.extui %6 : i1 to i32
    %c0_i32_1 = arith.constant 0 : i32
    %8 = arith.cmpi ne, %7, %c0_i32_1 : i32
    scf.if %8 {
      %cst = arith.constant 0.000000e+00 : f32
      %12 = vector.broadcast %cst : f32 to vector<8x8x128xf32>
      %c0 = arith.constant 0 : index
      %c0_3 = arith.constant 0 : index
      %c0_4 = arith.constant 0 : index
      %13 = vector.load %arg8[%c0, %c0_3, %c0_4] : memref<8x8x128xf32, #tpu.memory_space<vmem>>, vector<8x8x128xf32>
      tpu.vector_store %arg8[%c0, %c0_3, %c0_4], %12 {strides = array<i32>} : memref<8x8x128xf32, #tpu.memory_space<vmem>>, vector<8x8x128xf32>,
    } else {
    }
    %9 = arith.cmpi sgt, %5, %3 : i32
    %10 = arith.extui %9 : i1 to i32
    %c0_i32_2 = arith.constant 0 : i32
    %11 = arith.cmpi ne, %10, %c0_i32_2 : i32
    scf.if %11 {
      %c0 = arith.constant 0 : index
      %c0_3 = arith.constant 0 : index
      %c0_4 = arith.constant 0 : index
      %12 = vector.load %arg3[%c0, %c0_3, %c0_4] : memref<8x8x16xf32, #tpu.memory_space<vmem>>, vector<8x8x16xf32>
      %13 = vector.shape_cast %12 : vector<8x8x16xf32> to vector<64x16xf32>
      %c0_5 = arith.constant 0 : index
      %c0_6 = arith.constant 0 : index
      %14 = vector.load %arg5[%c0_5, %c0_6] : memref<16x768xf32, #tpu.memory_space<vmem>>, vector<16x768xf32>
      %cst = arith.constant dense<0.000000e+00> : vector<64x768xf32>
      %15 = tpu.matmul %13, %14, %cst {dimension_numbers = #tpu.dot_dimension_numbers<[1], [0], [0], [1], [0, 0, 1, 1], [], []>} : vector<64x16xf32>, vector<16x768xf32>, vector<64x768xf32> -> vector<64x768xf32>
      %c0_7 = arith.constant 0 : index
      %c0_8 = arith.constant 0 : index
      %16 = vector.load %arg6[%c0_7, %c0_8] : memref<1x768xf32, #tpu.memory_space<vmem>>, vector<1x768xf32>
      %17 = vector.broadcast %16 : vector<1x768xf32> to vector<64x768xf32>
      %18 = arith.addf %15, %17 : vector<64x768xf32>
      %19 = vector.shape_cast %18 : vector<64x768xf32> to vector<8x8x768xf32>
      %c0_9 = arith.constant 0 : index
      %c0_10 = arith.constant 0 : index
      %c0_11 = arith.constant 0 : index
      %20 = vector.load %arg11[%c0_9, %c0_10, %c0_11] : memref<8x8x768xf32, #tpu.memory_space<vmem>>, vector<8x8x768xf32>
      tpu.vector_store %arg11[%c0_9, %c0_10, %c0_11], %19 {strides = array<i32>} : memref<8x8x768xf32, #tpu.memory_space<vmem>>, vector<8x8x768xf32>,
      %c0_12 = arith.constant 0 : index
      %c0_13 = arith.constant 0 : index
      %21 = vector.load %arg4[%c0_12, %c0_13] : memref<8x1xi32, #tpu.memory_space<vmem>>, vector<8x1xi32>
      %c0_14 = arith.constant 0 : index
      %c0_15 = arith.constant 0 : index
      %22 = vector.load %arg7[%c0_14, %c0_15] : memref<128x640xf32, #tpu.memory_space<vmem>>, vector<128x640xf32>
      %c0_16 = arith.constant 0 : index
      %c0_17 = arith.constant 0 : index
      %23 = vector.load %arg9[%c0_16, %c0_17] : memref<8x128xf32, #tpu.memory_space<vmem>>, vector<8x128xf32>
      %c0_18 = arith.constant 0 : index
      %c0_19 = arith.constant 0 : index
      %24 = vector.load %arg10[%c0_18, %c0_19] : memref<8x128xf32, #tpu.memory_space<vmem>>, vector<8x128xf32>
      %c0_i32_20 = arith.constant 0 : i32
      %25 = arith.index_cast %c0_i32_20 : i32 to index
      %c0_21 = arith.constant 0 : index
      %c0_22 = arith.constant 0 : index
      %26 = vector.load %arg11[%25, %c0_21, %c0_22] : memref<8x8x768xf32, #tpu.memory_space<vmem>>, vector<1x8x768xf32>
      %27 = vector.shape_cast %26 : vector<1x8x768xf32> to vector<8x768xf32>
      %cst_23 = arith.constant dense<0.000000e+00> : vector<8x640xf32>
      %28 = tpu.matmul %23, %22, %cst_23 {dimension_numbers = #tpu.dot_dimension_numbers<[1], [0], [0], [1], [0, 0, 1, 1], [], []>} : vector<8x128xf32>, vector<128x640xf32>, vector<8x640xf32> -> vector<8x640xf32>
      %29 = vector.extract_strided_slice %27 {offsets = [0, 0], sizes = [8, 640], strides = [1, 1]} : vector<8x768xf32> to vector<8x640xf32>
      %30 = arith.addf %29, %28 : vector<8x640xf32>
      %31 = vector.extract_strided_slice %30 {offsets = [0, 0], sizes = [8, 128], strides = [1, 1]} : vector<8x640xf32> to vector<8x128xf32>
      %32 = arith.negf %31 : vector<8x128xf32>
      %33 = math.exp %32 : vector<8x128xf32>
      %cst_24 = arith.constant 1.000000e+00 : f32
      %34 = vector.broadcast %cst_24 : f32 to vector<8x128xf32>
      %35 = arith.addf %34, %33 : vector<8x128xf32>
      %36 = arith.divf %34, %35 : vector<8x128xf32>
      %37 = vector.extract_strided_slice %30 {offsets = [0, 128], sizes = [8, 128], strides = [1, 1]} : vector<8x640xf32> to vector<8x128xf32>
      %38 = arith.negf %37 : vector<8x128xf32>
      %39 = math.exp %38 : vector<8x128xf32>
      %cst_25 = arith.constant 1.000000e+00 : f32
      %40 = vector.broadcast %cst_25 : f32 to vector<8x128xf32>
      %41 = arith.addf %40, %39 : vector<8x128xf32>
      %42 = arith.divf %40, %41 : vector<8x128xf32>
      %43 = vector.extract_strided_slice %30 {offsets = [0, 256], sizes = [8, 128], strides = [1, 1]} : vector<8x640xf32> to vector<8x128xf32>
      %44 = math.tanh %43 : vector<8x128xf32>
      %45 = vector.extract_strided_slice %30 {offsets = [0, 384], sizes = [8, 128], strides = [1, 1]} : vector<8x640xf32> to vector<8x128xf32>
      %46 = arith.negf %45 : vector<8x128xf32>
      %47 = math.exp %46 : vector<8x128xf32>
      %cst_26 = arith.constant 1.000000e+00 : f32
      %48 = vector.broadcast %cst_26 : f32 to vector<8x128xf32>
      %49 = arith.addf %48, %47 : vector<8x128xf32>
      %50 = arith.divf %48, %49 : vector<8x128xf32>
      %51 = vector.extract_strided_slice %30 {offsets = [0, 512], sizes = [8, 128], strides = [1, 1]} : vector<8x640xf32> to vector<8x128xf32>
      %52 = arith.negf %51 : vector<8x128xf32>
      %53 = math.exp %52 : vector<8x128xf32>
      %cst_27 = arith.constant 1.000000e+00 : f32
      %54 = vector.broadcast %cst_27 : f32 to vector<8x128xf32>
      %55 = arith.addf %54, %53 : vector<8x128xf32>
      %56 = arith.divf %54, %55 : vector<8x128xf32>
      %57 = arith.mulf %36, %44 : vector<8x128xf32>
      %58 = arith.mulf %42, %24 : vector<8x128xf32>
      %59 = arith.addf %57, %58 : vector<8x128xf32>
      %60 = math.tanh %59 : vector<8x128xf32>
      %61 = arith.mulf %50, %60 : vector<8x128xf32>
      %62 = arith.mulf %56, %61 : vector<8x128xf32>
      %cst_28 = arith.constant 1.000000e+00 : f32
      %63 = vector.broadcast %cst_28 : f32 to vector<8x128xf32>
      %64 = arith.subf %63, %56 : vector<8x128xf32>
      %65 = vector.extract_strided_slice %27 {offsets = [0, 640], sizes = [8, 128], strides = [1, 1]} : vector<8x768xf32> to vector<8x128xf32>
      %66 = arith.mulf %64, %65 : vector<8x128xf32>
      %67 = arith.addf %62, %66 : vector<8x128xf32>
      %68 = arith.addi %3, %c0_i32_20 : i32
      %69 = vector.broadcast %68 : i32 to vector<8x1xi32>
      %70 = arith.cmpi sgt, %21, %69 : vector<8x1xi32>
      %71 = vector.shape_cast %70 : vector<8x1xi1> to vector<8x1xi1>
      %72 = vector.broadcast %71 : vector<8x1xi1> to vector<8x128xi1>
      %73 = arith.select %72, %59, %24 : vector<8x128xi1>, vector<8x128xf32>
      %74 = vector.shape_cast %70 : vector<8x1xi1> to vector<8x1xi1>
      %75 = vector.broadcast %74 : vector<8x1xi1> to vector<8x128xi1>
      %76 = arith.select %75, %67, %23 : vector<8x128xi1>, vector<8x128xf32>
      %cst_29 = arith.constant 0.000000e+00 : f32
      %77 = vector.shape_cast %70 : vector<8x1xi1> to vector<8x1xi1>
      %78 = vector.broadcast %77 : vector<8x1xi1> to vector<8x128xi1>
      %79 = vector.broadcast %cst_29 : f32 to vector<8x128xf32>
      %80 = arith.select %78, %67, %79 : vector<8x128xi1>, vector<8x128xf32>
      %81 = arith.index_cast %c0_i32_20 : i32 to index
      %c0_30 = arith.constant 0 : index
      %c0_31 = arith.constant 0 : index
      %82 = vector.load %arg8[%81, %c0_30, %c0_31] : memref<8x8x128xf32, #tpu.memory_space<vmem>>, vector<1x8x128xf32>
      %83 = vector.shape_cast %82 : vector<1x8x128xf32> to vector<8x128xf32>
      %84 = vector.shape_cast %80 : vector<8x128xf32> to vector<1x8x128xf32>
      tpu.vector_store %arg8[%81, %c0_30, %c0_31], %84 {strides = array<i32>} : memref<8x8x128xf32, #tpu.memory_space<vmem>>, vector<1x8x128xf32>,
      %c1_i32 = arith.constant 1 : i32
      %85 = arith.index_cast %c1_i32 : i32 to index
      %c0_32 = arith.constant 0 : index
      %c0_33 = arith.constant 0 : index
      %86 = vector.load %arg11[%85, %c0_32, %c0_33] : memref<8x8x768xf32, #tpu.memory_space<vmem>>, vector<1x8x768xf32>
      %87 = vector.shape_cast %86 : vector<1x8x768xf32> to vector<8x768xf32>
      %cst_34 = arith.constant dense<0.000000e+00> : vector<8x640xf32>
      %88 = tpu.matmul %76, %22, %cst_34 {dimension_numbers = #tpu.dot_dimension_numbers<[1], [0], [0], [1], [0, 0, 1, 1], [], []>} : vector<8x128xf32>, vector<128x640xf32>, vector<8x640xf32> -> vector<8x640xf32>
      %89 = vector.extract_strided_slice %87 {offsets = [0, 0], sizes = [8, 640], strides = [1, 1]} : vector<8x768xf32> to vector<8x640xf32>
      %90 = arith.addf %89, %88 : vector<8x640xf32>
      %91 = vector.extract_strided_slice %90 {offsets = [0, 0], sizes = [8, 128], strides = [1, 1]} : vector<8x640xf32> to vector<8x128xf32>
      %92 = arith.negf %91 : vector<8x128xf32>
      %93 = math.exp %92 : vector<8x128xf32>
      %cst_35 = arith.constant 1.000000e+00 : f32
      %94 = vector.broadcast %cst_35 : f32 to vector<8x128xf32>
      %95 = arith.addf %94, %93 : vector<8x128xf32>
      %96 = arith.divf %94, %95 : vector<8x128xf32>
      %97 = vector.extract_strided_slice %90 {offsets = [0, 128], sizes = [8, 128], strides = [1, 1]} : vector<8x640xf32> to vector<8x128xf32>
      %98 = arith.negf %97 : vector<8x128xf32>
      %99 = math.exp %98 : vector<8x128xf32>
      %cst_36 = arith.constant 1.000000e+00 : f32
      %100 = vector.broadcast %cst_36 : f32 to vector<8x128xf32>
      %101 = arith.addf %100, %99 : vector<8x128xf32>
      %102 = arith.divf %100, %101 : vector<8x128xf32>
      %103 = vector.extract_strided_slice %90 {offsets = [0, 256], sizes = [8, 128], strides = [1, 1]} : vector<8x640xf32> to vector<8x128xf32>
      %104 = math.tanh %103 : vector<8x128xf32>
      %105 = vector.extract_strided_slice %90 {offsets = [0, 384], sizes = [8, 128], strides = [1, 1]} : vector<8x640xf32> to vector<8x128xf32>
      %106 = arith.negf %105 : vector<8x128xf32>
      %107 = math.exp %106 : vector<8x128xf32>
      %cst_37 = arith.constant 1.000000e+00 : f32
      %108 = vector.broadcast %cst_37 : f32 to vector<8x128xf32>
      %109 = arith.addf %108, %107 : vector<8x128xf32>
      %110 = arith.divf %108, %109 : vector<8x128xf32>
      %111 = vector.extract_strided_slice %90 {offsets = [0, 512], sizes = [8, 128], strides = [1, 1]} : vector<8x640xf32> to vector<8x128xf32>
      %112 = arith.negf %111 : vector<8x128xf32>
      %113 = math.exp %112 : vector<8x128xf32>
      %cst_38 = arith.constant 1.000000e+00 : f32
      %114 = vector.broadcast %cst_38 : f32 to vector<8x128xf32>
      %115 = arith.addf %114, %113 : vector<8x128xf32>
      %116 = arith.divf %114, %115 : vector<8x128xf32>
      %117 = arith.mulf %96, %104 : vector<8x128xf32>
      %118 = arith.mulf %102, %73 : vector<8x128xf32>
      %119 = arith.addf %117, %118 : vector<8x128xf32>
      %120 = math.tanh %119 : vector<8x128xf32>
      %121 = arith.mulf %110, %120 : vector<8x128xf32>
      %122 = arith.mulf %116, %121 : vector<8x128xf32>
      %cst_39 = arith.constant 1.000000e+00 : f32
      %123 = vector.broadcast %cst_39 : f32 to vector<8x128xf32>
      %124 = arith.subf %123, %116 : vector<8x128xf32>
      %125 = vector.extract_strided_slice %87 {offsets = [0, 640], sizes = [8, 128], strides = [1, 1]} : vector<8x768xf32> to vector<8x128xf32>
      %126 = arith.mulf %124, %125 : vector<8x128xf32>
      %127 = arith.addf %122, %126 : vector<8x128xf32>
      %128 = arith.addi %3, %c1_i32 : i32
      %129 = vector.broadcast %128 : i32 to vector<8x1xi32>
      %130 = arith.cmpi sgt, %21, %129 : vector<8x1xi32>
      %131 = vector.shape_cast %130 : vector<8x1xi1> to vector<8x1xi1>
      %132 = vector.broadcast %131 : vector<8x1xi1> to vector<8x128xi1>
      %133 = arith.select %132, %119, %73 : vector<8x128xi1>, vector<8x128xf32>
      %134 = vector.shape_cast %130 : vector<8x1xi1> to vector<8x1xi1>
      %135 = vector.broadcast %134 : vector<8x1xi1> to vector<8x128xi1>
      %136 = arith.select %135, %127, %76 : vector<8x128xi1>, vector<8x128xf32>
      %cst_40 = arith.constant 0.000000e+00 : f32
      %137 = vector.shape_cast %130 : vector<8x1xi1> to vector<8x1xi1>
      %138 = vector.broadcast %137 : vector<8x1xi1> to vector<8x128xi1>
      %139 = vector.broadcast %cst_40 : f32 to vector<8x128xf32>
      %140 = arith.select %138, %127, %139 : vector<8x128xi1>, vector<8x128xf32>
      %141 = arith.index_cast %c1_i32 : i32 to index
      %c0_41 = arith.constant 0 : index
      %c0_42 = arith.constant 0 : index
      %142 = vector.load %arg8[%141, %c0_41, %c0_42] : memref<8x8x128xf32, #tpu.memory_space<vmem>>, vector<1x8x128xf32>
      %143 = vector.shape_cast %142 : vector<1x8x128xf32> to vector<8x128xf32>
      %144 = vector.shape_cast %140 : vector<8x128xf32> to vector<1x8x128xf32>
      tpu.vector_store %arg8[%141, %c0_41, %c0_42], %144 {strides = array<i32>} : memref<8x8x128xf32, #tpu.memory_space<vmem>>, vector<1x8x128xf32>,
      %c2_i32 = arith.constant 2 : i32
      %145 = arith.index_cast %c2_i32 : i32 to index
      %c0_43 = arith.constant 0 : index
      %c0_44 = arith.constant 0 : index
      %146 = vector.load %arg11[%145, %c0_43, %c0_44] : memref<8x8x768xf32, #tpu.memory_space<vmem>>, vector<1x8x768xf32>
      %147 = vector.shape_cast %146 : vector<1x8x768xf32> to vector<8x768xf32>
      %cst_45 = arith.constant dense<0.000000e+00> : vector<8x640xf32>
      %148 = tpu.matmul %136, %22, %cst_45 {dimension_numbers = #tpu.dot_dimension_numbers<[1], [0], [0], [1], [0, 0, 1, 1], [], []>} : vector<8x128xf32>, vector<128x640xf32>, vector<8x640xf32> -> vector<8x640xf32>
      %149 = vector.extract_strided_slice %147 {offsets = [0, 0], sizes = [8, 640], strides = [1, 1]} : vector<8x768xf32> to vector<8x640xf32>
      %150 = arith.addf %149, %148 : vector<8x640xf32>
      %151 = vector.extract_strided_slice %150 {offsets = [0, 0], sizes = [8, 128], strides = [1, 1]} : vector<8x640xf32> to vector<8x128xf32>
      %152 = arith.negf %151 : vector<8x128xf32>
      %153 = math.exp %152 : vector<8x128xf32>
      %cst_46 = arith.constant 1.000000e+00 : f32
      %154 = vector.broadcast %cst_46 : f32 to vector<8x128xf32>
      %155 = arith.addf %154, %153 : vector<8x128xf32>
      %156 = arith.divf %154, %155 : vector<8x128xf32>
      %157 = vector.extract_strided_slice %150 {offsets = [0, 128], sizes = [8, 128], strides = [1, 1]} : vector<8x640xf32> to vector<8x128xf32>
      %158 = arith.negf %157 : vector<8x128xf32>
      %159 = math.exp %158 : vector<8x128xf32>
      %cst_47 = arith.constant 1.000000e+00 : f32
      %160 = vector.broadcast %cst_47 : f32 to vector<8x128xf32>
      %161 = arith.addf %160, %159 : vector<8x128xf32>
      %162 = arith.divf %160, %161 : vector<8x128xf32>
      %163 = vector.extract_strided_slice %150 {offsets = [0, 256], sizes = [8, 128], strides = [1, 1]} : vector<8x640xf32> to vector<8x128xf32>
      %164 = math.tanh %163 : vector<8x128xf32>
      %165 = vector.extract_strided_slice %150 {offsets = [0, 384], sizes = [8, 128], strides = [1, 1]} : vector<8x640xf32> to vector<8x128xf32>
      %166 = arith.negf %165 : vector<8x128xf32>
      %167 = math.exp %166 : vector<8x128xf32>
      %cst_48 = arith.constant 1.000000e+00 : f32
      %168 = vector.broadcast %cst_48 : f32 to vector<8x128xf32>
      %169 = arith.addf %168, %167 : vector<8x128xf32>
      %170 = arith.divf %168, %169 : vector<8x128xf32>
      %171 = vector.extract_strided_slice %150 {offsets = [0, 512], sizes = [8, 128], strides = [1, 1]} : vector<8x640xf32> to vector<8x128xf32>
      %172 = arith.negf %171 : vector<8x128xf32>
      %173 = math.exp %172 : vector<8x128xf32>
      %cst_49 = arith.constant 1.000000e+00 : f32
      %174 = vector.broadcast %cst_49 : f32 to vector<8x128xf32>
      %175 = arith.addf %174, %173 : vector<8x128xf32>
      %176 = arith.divf %174, %175 : vector<8x128xf32>
      %177 = arith.mulf %156, %164 : vector<8x128xf32>
      %178 = arith.mulf %162, %133 : vector<8x128xf32>
      %179 = arith.addf %177, %178 : vector<8x128xf32>
      %180 = math.tanh %179 : vector<8x128xf32>
      %181 = arith.mulf %170, %180 : vector<8x128xf32>
      %182 = arith.mulf %176, %181 : vector<8x128xf32>
      %cst_50 = arith.constant 1.000000e+00 : f32
      %183 = vector.broadcast %cst_50 : f32 to vector<8x128xf32>
      %184 = arith.subf %183, %176 : vector<8x128xf32>
      %185 = vector.extract_strided_slice %147 {offsets = [0, 640], sizes = [8, 128], strides = [1, 1]} : vector<8x768xf32> to vector<8x128xf32>
      %186 = arith.mulf %184, %185 : vector<8x128xf32>
      %187 = arith.addf %182, %186 : vector<8x128xf32>
      %188 = arith.addi %3, %c2_i32 : i32
      %189 = vector.broadcast %188 : i32 to vector<8x1xi32>
      %190 = arith.cmpi sgt, %21, %189 : vector<8x1xi32>
      %191 = vector.shape_cast %190 : vector<8x1xi1> to vector<8x1xi1>
      %192 = vector.broadcast %191 : vector<8x1xi1> to vector<8x128xi1>
      %193 = arith.select %192, %179, %133 : vector<8x128xi1>, vector<8x128xf32>
      %194 = vector.shape_cast %190 : vector<8x1xi1> to vector<8x1xi1>
      %195 = vector.broadcast %194 : vector<8x1xi1> to vector<8x128xi1>
      %196 = arith.select %195, %187, %136 : vector<8x128xi1>, vector<8x128xf32>
      %cst_51 = arith.constant 0.000000e+00 : f32
      %197 = vector.shape_cast %190 : vector<8x1xi1> to vector<8x1xi1>
      %198 = vector.broadcast %197 : vector<8x1xi1> to vector<8x128xi1>
      %199 = vector.broadcast %cst_51 : f32 to vector<8x128xf32>
      %200 = arith.select %198, %187, %199 : vector<8x128xi1>, vector<8x128xf32>
      %201 = arith.index_cast %c2_i32 : i32 to index
      %c0_52 = arith.constant 0 : index
      %c0_53 = arith.constant 0 : index
      %202 = vector.load %arg8[%201, %c0_52, %c0_53] : memref<8x8x128xf32, #tpu.memory_space<vmem>>, vector<1x8x128xf32>
      %203 = vector.shape_cast %202 : vector<1x8x128xf32> to vector<8x128xf32>
      %204 = vector.shape_cast %200 : vector<8x128xf32> to vector<1x8x128xf32>
      tpu.vector_store %arg8[%201, %c0_52, %c0_53], %204 {strides = array<i32>} : memref<8x8x128xf32, #tpu.memory_space<vmem>>, vector<1x8x128xf32>,
      %c3_i32 = arith.constant 3 : i32
      %205 = arith.index_cast %c3_i32 : i32 to index
      %c0_54 = arith.constant 0 : index
      %c0_55 = arith.constant 0 : index
      %206 = vector.load %arg11[%205, %c0_54, %c0_55] : memref<8x8x768xf32, #tpu.memory_space<vmem>>, vector<1x8x768xf32>
      %207 = vector.shape_cast %206 : vector<1x8x768xf32> to vector<8x768xf32>
      %cst_56 = arith.constant dense<0.000000e+00> : vector<8x640xf32>
      %208 = tpu.matmul %196, %22, %cst_56 {dimension_numbers = #tpu.dot_dimension_numbers<[1], [0], [0], [1], [0, 0, 1, 1], [], []>} : vector<8x128xf32>, vector<128x640xf32>, vector<8x640xf32> -> vector<8x640xf32>
      %209 = vector.extract_strided_slice %207 {offsets = [0, 0], sizes = [8, 640], strides = [1, 1]} : vector<8x768xf32> to vector<8x640xf32>
      %210 = arith.addf %209, %208 : vector<8x640xf32>
      %211 = vector.extract_strided_slice %210 {offsets = [0, 0], sizes = [8, 128], strides = [1, 1]} : vector<8x640xf32> to vector<8x128xf32>
      %212 = arith.negf %211 : vector<8x128xf32>
      %213 = math.exp %212 : vector<8x128xf32>
      %cst_57 = arith.constant 1.000000e+00 : f32
      %214 = vector.broadcast %cst_57 : f32 to vector<8x128xf32>
      %215 = arith.addf %214, %213 : vector<8x128xf32>
      %216 = arith.divf %214, %215 : vector<8x128xf32>
      %217 = vector.extract_strided_slice %210 {offsets = [0, 128], sizes = [8, 128], strides = [1, 1]} : vector<8x640xf32> to vector<8x128xf32>
      %218 = arith.negf %217 : vector<8x128xf32>
      %219 = math.exp %218 : vector<8x128xf32>
      %cst_58 = arith.constant 1.000000e+00 : f32
      %220 = vector.broadcast %cst_58 : f32 to vector<8x128xf32>
      %221 = arith.addf %220, %219 : vector<8x128xf32>
      %222 = arith.divf %220, %221 : vector<8x128xf32>
      %223 = vector.extract_strided_slice %210 {offsets = [0, 256], sizes = [8, 128], strides = [1, 1]} : vector<8x640xf32> to vector<8x128xf32>
      %224 = math.tanh %223 : vector<8x128xf32>
      %225 = vector.extract_strided_slice %210 {offsets = [0, 384], sizes = [8, 128], strides = [1, 1]} : vector<8x640xf32> to vector<8x128xf32>
      %226 = arith.negf %225 : vector<8x128xf32>
      %227 = math.exp %226 : vector<8x128xf32>
      %cst_59 = arith.constant 1.000000e+00 : f32
      %228 = vector.broadcast %cst_59 : f32 to vector<8x128xf32>
      %229 = arith.addf %228, %227 : vector<8x128xf32>
      %230 = arith.divf %228, %229 : vector<8x128xf32>
      %231 = vector.extract_strided_slice %210 {offsets = [0, 512], sizes = [8, 128], strides = [1, 1]} : vector<8x640xf32> to vector<8x128xf32>
      %232 = arith.negf %231 : vector<8x128xf32>
      %233 = math.exp %232 : vector<8x128xf32>
      %cst_60 = arith.constant 1.000000e+00 : f32
      %234 = vector.broadcast %cst_60 : f32 to vector<8x128xf32>
      %235 = arith.addf %234, %233 : vector<8x128xf32>
      %236 = arith.divf %234, %235 : vector<8x128xf32>
      %237 = arith.mulf %216, %224 : vector<8x128xf32>
      %238 = arith.mulf %222, %193 : vector<8x128xf32>
      %239 = arith.addf %237, %238 : vector<8x128xf32>
      %240 = math.tanh %239 : vector<8x128xf32>
      %241 = arith.mulf %230, %240 : vector<8x128xf32>
      %242 = arith.mulf %236, %241 : vector<8x128xf32>
      %cst_61 = arith.constant 1.000000e+00 : f32
      %243 = vector.broadcast %cst_61 : f32 to vector<8x128xf32>
      %244 = arith.subf %243, %236 : vector<8x128xf32>
      %245 = vector.extract_strided_slice %207 {offsets = [0, 640], sizes = [8, 128], strides = [1, 1]} : vector<8x768xf32> to vector<8x128xf32>
      %246 = arith.mulf %244, %245 : vector<8x128xf32>
      %247 = arith.addf %242, %246 : vector<8x128xf32>
      %248 = arith.addi %3, %c3_i32 : i32
      %249 = vector.broadcast %248 : i32 to vector<8x1xi32>
      %250 = arith.cmpi sgt, %21, %249 : vector<8x1xi32>
      %251 = vector.shape_cast %250 : vector<8x1xi1> to vector<8x1xi1>
      %252 = vector.broadcast %251 : vector<8x1xi1> to vector<8x128xi1>
      %253 = arith.select %252, %239, %193 : vector<8x128xi1>, vector<8x128xf32>
      %254 = vector.shape_cast %250 : vector<8x1xi1> to vector<8x1xi1>
      %255 = vector.broadcast %254 : vector<8x1xi1> to vector<8x128xi1>
      %256 = arith.select %255, %247, %196 : vector<8x128xi1>, vector<8x128xf32>
      %cst_62 = arith.constant 0.000000e+00 : f32
      %257 = vector.shape_cast %250 : vector<8x1xi1> to vector<8x1xi1>
      %258 = vector.broadcast %257 : vector<8x1xi1> to vector<8x128xi1>
      %259 = vector.broadcast %cst_62 : f32 to vector<8x128xf32>
      %260 = arith.select %258, %247, %259 : vector<8x128xi1>, vector<8x128xf32>
      %261 = arith.index_cast %c3_i32 : i32 to index
      %c0_63 = arith.constant 0 : index
      %c0_64 = arith.constant 0 : index
      %262 = vector.load %arg8[%261, %c0_63, %c0_64] : memref<8x8x128xf32, #tpu.memory_space<vmem>>, vector<1x8x128xf32>
      %263 = vector.shape_cast %262 : vector<1x8x128xf32> to vector<8x128xf32>
      %264 = vector.shape_cast %260 : vector<8x128xf32> to vector<1x8x128xf32>
      tpu.vector_store %arg8[%261, %c0_63, %c0_64], %264 {strides = array<i32>} : memref<8x8x128xf32, #tpu.memory_space<vmem>>, vector<1x8x128xf32>,
      %c4_i32 = arith.constant 4 : i32
      %265 = arith.index_cast %c4_i32 : i32 to index
      %c0_65 = arith.constant 0 : index
      %c0_66 = arith.constant 0 : index
      %266 = vector.load %arg11[%265, %c0_65, %c0_66] : memref<8x8x768xf32, #tpu.memory_space<vmem>>, vector<1x8x768xf32>
      %267 = vector.shape_cast %266 : vector<1x8x768xf32> to vector<8x768xf32>
      %cst_67 = arith.constant dense<0.000000e+00> : vector<8x640xf32>
      %268 = tpu.matmul %256, %22, %cst_67 {dimension_numbers = #tpu.dot_dimension_numbers<[1], [0], [0], [1], [0, 0, 1, 1], [], []>} : vector<8x128xf32>, vector<128x640xf32>, vector<8x640xf32> -> vector<8x640xf32>
      %269 = vector.extract_strided_slice %267 {offsets = [0, 0], sizes = [8, 640], strides = [1, 1]} : vector<8x768xf32> to vector<8x640xf32>
      %270 = arith.addf %269, %268 : vector<8x640xf32>
      %271 = vector.extract_strided_slice %270 {offsets = [0, 0], sizes = [8, 128], strides = [1, 1]} : vector<8x640xf32> to vector<8x128xf32>
      %272 = arith.negf %271 : vector<8x128xf32>
      %273 = math.exp %272 : vector<8x128xf32>
      %cst_68 = arith.constant 1.000000e+00 : f32
      %274 = vector.broadcast %cst_68 : f32 to vector<8x128xf32>
      %275 = arith.addf %274, %273 : vector<8x128xf32>
      %276 = arith.divf %274, %275 : vector<8x128xf32>
      %277 = vector.extract_strided_slice %270 {offsets = [0, 128], sizes = [8, 128], strides = [1, 1]} : vector<8x640xf32> to vector<8x128xf32>
      %278 = arith.negf %277 : vector<8x128xf32>
      %279 = math.exp %278 : vector<8x128xf32>
      %cst_69 = arith.constant 1.000000e+00 : f32
      %280 = vector.broadcast %cst_69 : f32 to vector<8x128xf32>
      %281 = arith.addf %280, %279 : vector<8x128xf32>
      %282 = arith.divf %280, %281 : vector<8x128xf32>
      %283 = vector.extract_strided_slice %270 {offsets = [0, 256], sizes = [8, 128], strides = [1, 1]} : vector<8x640xf32> to vector<8x128xf32>
      %284 = math.tanh %283 : vector<8x128xf32>
      %285 = vector.extract_strided_slice %270 {offsets = [0, 384], sizes = [8, 128], strides = [1, 1]} : vector<8x640xf32> to vector<8x128xf32>
      %286 = arith.negf %285 : vector<8x128xf32>
      %287 = math.exp %286 : vector<8x128xf32>
      %cst_70 = arith.constant 1.000000e+00 : f32
      %288 = vector.broadcast %cst_70 : f32 to vector<8x128xf32>
      %289 = arith.addf %288, %287 : vector<8x128xf32>
      %290 = arith.divf %288, %289 : vector<8x128xf32>
      %291 = vector.extract_strided_slice %270 {offsets = [0, 512], sizes = [8, 128], strides = [1, 1]} : vector<8x640xf32> to vector<8x128xf32>
      %292 = arith.negf %291 : vector<8x128xf32>
      %293 = math.exp %292 : vector<8x128xf32>
      %cst_71 = arith.constant 1.000000e+00 : f32
      %294 = vector.broadcast %cst_71 : f32 to vector<8x128xf32>
      %295 = arith.addf %294, %293 : vector<8x128xf32>
      %296 = arith.divf %294, %295 : vector<8x128xf32>
      %297 = arith.mulf %276, %284 : vector<8x128xf32>
      %298 = arith.mulf %282, %253 : vector<8x128xf32>
      %299 = arith.addf %297, %298 : vector<8x128xf32>
      %300 = math.tanh %299 : vector<8x128xf32>
      %301 = arith.mulf %290, %300 : vector<8x128xf32>
      %302 = arith.mulf %296, %301 : vector<8x128xf32>
      %cst_72 = arith.constant 1.000000e+00 : f32
      %303 = vector.broadcast %cst_72 : f32 to vector<8x128xf32>
      %304 = arith.subf %303, %296 : vector<8x128xf32>
      %305 = vector.extract_strided_slice %267 {offsets = [0, 640], sizes = [8, 128], strides = [1, 1]} : vector<8x768xf32> to vector<8x128xf32>
      %306 = arith.mulf %304, %305 : vector<8x128xf32>
      %307 = arith.addf %302, %306 : vector<8x128xf32>
      %308 = arith.addi %3, %c4_i32 : i32
      %309 = vector.broadcast %308 : i32 to vector<8x1xi32>
      %310 = arith.cmpi sgt, %21, %309 : vector<8x1xi32>
      %311 = vector.shape_cast %310 : vector<8x1xi1> to vector<8x1xi1>
      %312 = vector.broadcast %311 : vector<8x1xi1> to vector<8x128xi1>
      %313 = arith.select %312, %299, %253 : vector<8x128xi1>, vector<8x128xf32>
      %314 = vector.shape_cast %310 : vector<8x1xi1> to vector<8x1xi1>
      %315 = vector.broadcast %314 : vector<8x1xi1> to vector<8x128xi1>
      %316 = arith.select %315, %307, %256 : vector<8x128xi1>, vector<8x128xf32>
      %cst_73 = arith.constant 0.000000e+00 : f32
      %317 = vector.shape_cast %310 : vector<8x1xi1> to vector<8x1xi1>
      %318 = vector.broadcast %317 : vector<8x1xi1> to vector<8x128xi1>
      %319 = vector.broadcast %cst_73 : f32 to vector<8x128xf32>
      %320 = arith.select %318, %307, %319 : vector<8x128xi1>, vector<8x128xf32>
      %321 = arith.index_cast %c4_i32 : i32 to index
      %c0_74 = arith.constant 0 : index
      %c0_75 = arith.constant 0 : index
      %322 = vector.load %arg8[%321, %c0_74, %c0_75] : memref<8x8x128xf32, #tpu.memory_space<vmem>>, vector<1x8x128xf32>
      %323 = vector.shape_cast %322 : vector<1x8x128xf32> to vector<8x128xf32>
      %324 = vector.shape_cast %320 : vector<8x128xf32> to vector<1x8x128xf32>
      tpu.vector_store %arg8[%321, %c0_74, %c0_75], %324 {strides = array<i32>} : memref<8x8x128xf32, #tpu.memory_space<vmem>>, vector<1x8x128xf32>,
      %c5_i32 = arith.constant 5 : i32
      %325 = arith.index_cast %c5_i32 : i32 to index
      %c0_76 = arith.constant 0 : index
      %c0_77 = arith.constant 0 : index
      %326 = vector.load %arg11[%325, %c0_76, %c0_77] : memref<8x8x768xf32, #tpu.memory_space<vmem>>, vector<1x8x768xf32>
      %327 = vector.shape_cast %326 : vector<1x8x768xf32> to vector<8x768xf32>
      %cst_78 = arith.constant dense<0.000000e+00> : vector<8x640xf32>
      %328 = tpu.matmul %316, %22, %cst_78 {dimension_numbers = #tpu.dot_dimension_numbers<[1], [0], [0], [1], [0, 0, 1, 1], [], []>} : vector<8x128xf32>, vector<128x640xf32>, vector<8x640xf32> -> vector<8x640xf32>
      %329 = vector.extract_strided_slice %327 {offsets = [0, 0], sizes = [8, 640], strides = [1, 1]} : vector<8x768xf32> to vector<8x640xf32>
      %330 = arith.addf %329, %328 : vector<8x640xf32>
      %331 = vector.extract_strided_slice %330 {offsets = [0, 0], sizes = [8, 128], strides = [1, 1]} : vector<8x640xf32> to vector<8x128xf32>
      %332 = arith.negf %331 : vector<8x128xf32>
      %333 = math.exp %332 : vector<8x128xf32>
      %cst_79 = arith.constant 1.000000e+00 : f32
      %334 = vector.broadcast %cst_79 : f32 to vector<8x128xf32>
      %335 = arith.addf %334, %333 : vector<8x128xf32>
      %336 = arith.divf %334, %335 : vector<8x128xf32>
      %337 = vector.extract_strided_slice %330 {offsets = [0, 128], sizes = [8, 128], strides = [1, 1]} : vector<8x640xf32> to vector<8x128xf32>
      %338 = arith.negf %337 : vector<8x128xf32>
      %339 = math.exp %338 : vector<8x128xf32>
      %cst_80 = arith.constant 1.000000e+00 : f32
      %340 = vector.broadcast %cst_80 : f32 to vector<8x128xf32>
      %341 = arith.addf %340, %339 : vector<8x128xf32>
      %342 = arith.divf %340, %341 : vector<8x128xf32>
      %343 = vector.extract_strided_slice %330 {offsets = [0, 256], sizes = [8, 128], strides = [1, 1]} : vector<8x640xf32> to vector<8x128xf32>
      %344 = math.tanh %343 : vector<8x128xf32>
      %345 = vector.extract_strided_slice %330 {offsets = [0, 384], sizes = [8, 128], strides = [1, 1]} : vector<8x640xf32> to vector<8x128xf32>
      %346 = arith.negf %345 : vector<8x128xf32>
      %347 = math.exp %346 : vector<8x128xf32>
      %cst_81 = arith.constant 1.000000e+00 : f32
      %348 = vector.broadcast %cst_81 : f32 to vector<8x128xf32>
      %349 = arith.addf %348, %347 : vector<8x128xf32>
      %350 = arith.divf %348, %349 : vector<8x128xf32>
      %351 = vector.extract_strided_slice %330 {offsets = [0, 512], sizes = [8, 128], strides = [1, 1]} : vector<8x640xf32> to vector<8x128xf32>
      %352 = arith.negf %351 : vector<8x128xf32>
      %353 = math.exp %352 : vector<8x128xf32>
      %cst_82 = arith.constant 1.000000e+00 : f32
      %354 = vector.broadcast %cst_82 : f32 to vector<8x128xf32>
      %355 = arith.addf %354, %353 : vector<8x128xf32>
      %356 = arith.divf %354, %355 : vector<8x128xf32>
      %357 = arith.mulf %336, %344 : vector<8x128xf32>
      %358 = arith.mulf %342, %313 : vector<8x128xf32>
      %359 = arith.addf %357, %358 : vector<8x128xf32>
      %360 = math.tanh %359 : vector<8x128xf32>
      %361 = arith.mulf %350, %360 : vector<8x128xf32>
      %362 = arith.mulf %356, %361 : vector<8x128xf32>
      %cst_83 = arith.constant 1.000000e+00 : f32
      %363 = vector.broadcast %cst_83 : f32 to vector<8x128xf32>
      %364 = arith.subf %363, %356 : vector<8x128xf32>
      %365 = vector.extract_strided_slice %327 {offsets = [0, 640], sizes = [8, 128], strides = [1, 1]} : vector<8x768xf32> to vector<8x128xf32>
      %366 = arith.mulf %364, %365 : vector<8x128xf32>
      %367 = arith.addf %362, %366 : vector<8x128xf32>
      %368 = arith.addi %3, %c5_i32 : i32
      %369 = vector.broadcast %368 : i32 to vector<8x1xi32>
      %370 = arith.cmpi sgt, %21, %369 : vector<8x1xi32>
      %371 = vector.shape_cast %370 : vector<8x1xi1> to vector<8x1xi1>
      %372 = vector.broadcast %371 : vector<8x1xi1> to vector<8x128xi1>
      %373 = arith.select %372, %359, %313 : vector<8x128xi1>, vector<8x128xf32>
      %374 = vector.shape_cast %370 : vector<8x1xi1> to vector<8x1xi1>
      %375 = vector.broadcast %374 : vector<8x1xi1> to vector<8x128xi1>
      %376 = arith.select %375, %367, %316 : vector<8x128xi1>, vector<8x128xf32>
      %cst_84 = arith.constant 0.000000e+00 : f32
      %377 = vector.shape_cast %370 : vector<8x1xi1> to vector<8x1xi1>
      %378 = vector.broadcast %377 : vector<8x1xi1> to vector<8x128xi1>
      %379 = vector.broadcast %cst_84 : f32 to vector<8x128xf32>
      %380 = arith.select %378, %367, %379 : vector<8x128xi1>, vector<8x128xf32>
      %381 = arith.index_cast %c5_i32 : i32 to index
      %c0_85 = arith.constant 0 : index
      %c0_86 = arith.constant 0 : index
      %382 = vector.load %arg8[%381, %c0_85, %c0_86] : memref<8x8x128xf32, #tpu.memory_space<vmem>>, vector<1x8x128xf32>
      %383 = vector.shape_cast %382 : vector<1x8x128xf32> to vector<8x128xf32>
      %384 = vector.shape_cast %380 : vector<8x128xf32> to vector<1x8x128xf32>
      tpu.vector_store %arg8[%381, %c0_85, %c0_86], %384 {strides = array<i32>} : memref<8x8x128xf32, #tpu.memory_space<vmem>>, vector<1x8x128xf32>,
      %c6_i32 = arith.constant 6 : i32
      %385 = arith.index_cast %c6_i32 : i32 to index
      %c0_87 = arith.constant 0 : index
      %c0_88 = arith.constant 0 : index
      %386 = vector.load %arg11[%385, %c0_87, %c0_88] : memref<8x8x768xf32, #tpu.memory_space<vmem>>, vector<1x8x768xf32>
      %387 = vector.shape_cast %386 : vector<1x8x768xf32> to vector<8x768xf32>
      %cst_89 = arith.constant dense<0.000000e+00> : vector<8x640xf32>
      %388 = tpu.matmul %376, %22, %cst_89 {dimension_numbers = #tpu.dot_dimension_numbers<[1], [0], [0], [1], [0, 0, 1, 1], [], []>} : vector<8x128xf32>, vector<128x640xf32>, vector<8x640xf32> -> vector<8x640xf32>
      %389 = vector.extract_strided_slice %387 {offsets = [0, 0], sizes = [8, 640], strides = [1, 1]} : vector<8x768xf32> to vector<8x640xf32>
      %390 = arith.addf %389, %388 : vector<8x640xf32>
      %391 = vector.extract_strided_slice %390 {offsets = [0, 0], sizes = [8, 128], strides = [1, 1]} : vector<8x640xf32> to vector<8x128xf32>
      %392 = arith.negf %391 : vector<8x128xf32>
      %393 = math.exp %392 : vector<8x128xf32>
      %cst_90 = arith.constant 1.000000e+00 : f32
      %394 = vector.broadcast %cst_90 : f32 to vector<8x128xf32>
      %395 = arith.addf %394, %393 : vector<8x128xf32>
      %396 = arith.divf %394, %395 : vector<8x128xf32>
      %397 = vector.extract_strided_slice %390 {offsets = [0, 128], sizes = [8, 128], strides = [1, 1]} : vector<8x640xf32> to vector<8x128xf32>
      %398 = arith.negf %397 : vector<8x128xf32>
      %399 = math.exp %398 : vector<8x128xf32>
      %cst_91 = arith.constant 1.000000e+00 : f32
      %400 = vector.broadcast %cst_91 : f32 to vector<8x128xf32>
      %401 = arith.addf %400, %399 : vector<8x128xf32>
      %402 = arith.divf %400, %401 : vector<8x128xf32>
      %403 = vector.extract_strided_slice %390 {offsets = [0, 256], sizes = [8, 128], strides = [1, 1]} : vector<8x640xf32> to vector<8x128xf32>
      %404 = math.tanh %403 : vector<8x128xf32>
      %405 = vector.extract_strided_slice %390 {offsets = [0, 384], sizes = [8, 128], strides = [1, 1]} : vector<8x640xf32> to vector<8x128xf32>
      %406 = arith.negf %405 : vector<8x128xf32>
      %407 = math.exp %406 : vector<8x128xf32>
      %cst_92 = arith.constant 1.000000e+00 : f32
      %408 = vector.broadcast %cst_92 : f32 to vector<8x128xf32>
      %409 = arith.addf %408, %407 : vector<8x128xf32>
      %410 = arith.divf %408, %409 : vector<8x128xf32>
      %411 = vector.extract_strided_slice %390 {offsets = [0, 512], sizes = [8, 128], strides = [1, 1]} : vector<8x640xf32> to vector<8x128xf32>
      %412 = arith.negf %411 : vector<8x128xf32>
      %413 = math.exp %412 : vector<8x128xf32>
      %cst_93 = arith.constant 1.000000e+00 : f32
      %414 = vector.broadcast %cst_93 : f32 to vector<8x128xf32>
      %415 = arith.addf %414, %413 : vector<8x128xf32>
      %416 = arith.divf %414, %415 : vector<8x128xf32>
      %417 = arith.mulf %396, %404 : vector<8x128xf32>
      %418 = arith.mulf %402, %373 : vector<8x128xf32>
      %419 = arith.addf %417, %418 : vector<8x128xf32>
      %420 = math.tanh %419 : vector<8x128xf32>
      %421 = arith.mulf %410, %420 : vector<8x128xf32>
      %422 = arith.mulf %416, %421 : vector<8x128xf32>
      %cst_94 = arith.constant 1.000000e+00 : f32
      %423 = vector.broadcast %cst_94 : f32 to vector<8x128xf32>
      %424 = arith.subf %423, %416 : vector<8x128xf32>
      %425 = vector.extract_strided_slice %387 {offsets = [0, 640], sizes = [8, 128], strides = [1, 1]} : vector<8x768xf32> to vector<8x128xf32>
      %426 = arith.mulf %424, %425 : vector<8x128xf32>
      %427 = arith.addf %422, %426 : vector<8x128xf32>
      %428 = arith.addi %3, %c6_i32 : i32
      %429 = vector.broadcast %428 : i32 to vector<8x1xi32>
      %430 = arith.cmpi sgt, %21, %429 : vector<8x1xi32>
      %431 = vector.shape_cast %430 : vector<8x1xi1> to vector<8x1xi1>
      %432 = vector.broadcast %431 : vector<8x1xi1> to vector<8x128xi1>
      %433 = arith.select %432, %419, %373 : vector<8x128xi1>, vector<8x128xf32>
      %434 = vector.shape_cast %430 : vector<8x1xi1> to vector<8x1xi1>
      %435 = vector.broadcast %434 : vector<8x1xi1> to vector<8x128xi1>
      %436 = arith.select %435, %427, %376 : vector<8x128xi1>, vector<8x128xf32>
      %cst_95 = arith.constant 0.000000e+00 : f32
      %437 = vector.shape_cast %430 : vector<8x1xi1> to vector<8x1xi1>
      %438 = vector.broadcast %437 : vector<8x1xi1> to vector<8x128xi1>
      %439 = vector.broadcast %cst_95 : f32 to vector<8x128xf32>
      %440 = arith.select %438, %427, %439 : vector<8x128xi1>, vector<8x128xf32>
      %441 = arith.index_cast %c6_i32 : i32 to index
      %c0_96 = arith.constant 0 : index
      %c0_97 = arith.constant 0 : index
      %442 = vector.load %arg8[%441, %c0_96, %c0_97] : memref<8x8x128xf32, #tpu.memory_space<vmem>>, vector<1x8x128xf32>
      %443 = vector.shape_cast %442 : vector<1x8x128xf32> to vector<8x128xf32>
      %444 = vector.shape_cast %440 : vector<8x128xf32> to vector<1x8x128xf32>
      tpu.vector_store %arg8[%441, %c0_96, %c0_97], %444 {strides = array<i32>} : memref<8x8x128xf32, #tpu.memory_space<vmem>>, vector<1x8x128xf32>,
      %c7_i32 = arith.constant 7 : i32
      %445 = arith.index_cast %c7_i32 : i32 to index
      %c0_98 = arith.constant 0 : index
      %c0_99 = arith.constant 0 : index
      %446 = vector.load %arg11[%445, %c0_98, %c0_99] : memref<8x8x768xf32, #tpu.memory_space<vmem>>, vector<1x8x768xf32>
      %447 = vector.shape_cast %446 : vector<1x8x768xf32> to vector<8x768xf32>
      %cst_100 = arith.constant dense<0.000000e+00> : vector<8x640xf32>
      %448 = tpu.matmul %436, %22, %cst_100 {dimension_numbers = #tpu.dot_dimension_numbers<[1], [0], [0], [1], [0, 0, 1, 1], [], []>} : vector<8x128xf32>, vector<128x640xf32>, vector<8x640xf32> -> vector<8x640xf32>
      %449 = vector.extract_strided_slice %447 {offsets = [0, 0], sizes = [8, 640], strides = [1, 1]} : vector<8x768xf32> to vector<8x640xf32>
      %450 = arith.addf %449, %448 : vector<8x640xf32>
      %451 = vector.extract_strided_slice %450 {offsets = [0, 0], sizes = [8, 128], strides = [1, 1]} : vector<8x640xf32> to vector<8x128xf32>
      %452 = arith.negf %451 : vector<8x128xf32>
      %453 = math.exp %452 : vector<8x128xf32>
      %cst_101 = arith.constant 1.000000e+00 : f32
      %454 = vector.broadcast %cst_101 : f32 to vector<8x128xf32>
      %455 = arith.addf %454, %453 : vector<8x128xf32>
      %456 = arith.divf %454, %455 : vector<8x128xf32>
      %457 = vector.extract_strided_slice %450 {offsets = [0, 128], sizes = [8, 128], strides = [1, 1]} : vector<8x640xf32> to vector<8x128xf32>
      %458 = arith.negf %457 : vector<8x128xf32>
      %459 = math.exp %458 : vector<8x128xf32>
      %cst_102 = arith.constant 1.000000e+00 : f32
      %460 = vector.broadcast %cst_102 : f32 to vector<8x128xf32>
      %461 = arith.addf %460, %459 : vector<8x128xf32>
      %462 = arith.divf %460, %461 : vector<8x128xf32>
      %463 = vector.extract_strided_slice %450 {offsets = [0, 256], sizes = [8, 128], strides = [1, 1]} : vector<8x640xf32> to vector<8x128xf32>
      %464 = math.tanh %463 : vector<8x128xf32>
      %465 = vector.extract_strided_slice %450 {offsets = [0, 384], sizes = [8, 128], strides = [1, 1]} : vector<8x640xf32> to vector<8x128xf32>
      %466 = arith.negf %465 : vector<8x128xf32>
      %467 = math.exp %466 : vector<8x128xf32>
      %cst_103 = arith.constant 1.000000e+00 : f32
      %468 = vector.broadcast %cst_103 : f32 to vector<8x128xf32>
      %469 = arith.addf %468, %467 : vector<8x128xf32>
      %470 = arith.divf %468, %469 : vector<8x128xf32>
      %471 = vector.extract_strided_slice %450 {offsets = [0, 512], sizes = [8, 128], strides = [1, 1]} : vector<8x640xf32> to vector<8x128xf32>
      %472 = arith.negf %471 : vector<8x128xf32>
      %473 = math.exp %472 : vector<8x128xf32>
      %cst_104 = arith.constant 1.000000e+00 : f32
      %474 = vector.broadcast %cst_104 : f32 to vector<8x128xf32>
      %475 = arith.addf %474, %473 : vector<8x128xf32>
      %476 = arith.divf %474, %475 : vector<8x128xf32>
      %477 = arith.mulf %456, %464 : vector<8x128xf32>
      %478 = arith.mulf %462, %433 : vector<8x128xf32>
      %479 = arith.addf %477, %478 : vector<8x128xf32>
      %480 = math.tanh %479 : vector<8x128xf32>
      %481 = arith.mulf %470, %480 : vector<8x128xf32>
      %482 = arith.mulf %476, %481 : vector<8x128xf32>
      %cst_105 = arith.constant 1.000000e+00 : f32
      %483 = vector.broadcast %cst_105 : f32 to vector<8x128xf32>
      %484 = arith.subf %483, %476 : vector<8x128xf32>
      %485 = vector.extract_strided_slice %447 {offsets = [0, 640], sizes = [8, 128], strides = [1, 1]} : vector<8x768xf32> to vector<8x128xf32>
      %486 = arith.mulf %484, %485 : vector<8x128xf32>
      %487 = arith.addf %482, %486 : vector<8x128xf32>
      %488 = arith.addi %3, %c7_i32 : i32
      %489 = vector.broadcast %488 : i32 to vector<8x1xi32>
      %490 = arith.cmpi sgt, %21, %489 : vector<8x1xi32>
      %491 = vector.shape_cast %490 : vector<8x1xi1> to vector<8x1xi1>
      %492 = vector.broadcast %491 : vector<8x1xi1> to vector<8x128xi1>
      %493 = arith.select %492, %479, %433 : vector<8x128xi1>, vector<8x128xf32>
      %494 = vector.shape_cast %490 : vector<8x1xi1> to vector<8x1xi1>
      %495 = vector.broadcast %494 : vector<8x1xi1> to vector<8x128xi1>
      %496 = arith.select %495, %487, %436 : vector<8x128xi1>, vector<8x128xf32>
      %cst_106 = arith.constant 0.000000e+00 : f32
      %497 = vector.shape_cast %490 : vector<8x1xi1> to vector<8x1xi1>
      %498 = vector.broadcast %497 : vector<8x1xi1> to vector<8x128xi1>
      %499 = vector.broadcast %cst_106 : f32 to vector<8x128xf32>
      %500 = arith.select %498, %487, %499 : vector<8x128xi1>, vector<8x128xf32>
      %501 = arith.index_cast %c7_i32 : i32 to index
      %c0_107 = arith.constant 0 : index
      %c0_108 = arith.constant 0 : index
      %502 = vector.load %arg8[%501, %c0_107, %c0_108] : memref<8x8x128xf32, #tpu.memory_space<vmem>>, vector<1x8x128xf32>
      %503 = vector.shape_cast %502 : vector<1x8x128xf32> to vector<8x128xf32>
      %504 = vector.shape_cast %500 : vector<8x128xf32> to vector<1x8x128xf32>
      tpu.vector_store %arg8[%501, %c0_107, %c0_108], %504 {strides = array<i32>} : memref<8x8x128xf32, #tpu.memory_space<vmem>>, vector<1x8x128xf32>,
      %c8_i32_109 = arith.constant 8 : i32
      %c0_110 = arith.constant 0 : index
      %c0_111 = arith.constant 0 : index
      %505 = vector.load %arg9[%c0_110, %c0_111] : memref<8x128xf32, #tpu.memory_space<vmem>>, vector<8x128xf32>
      tpu.vector_store %arg9[%c0_110, %c0_111], %496 {strides = array<i32>} : memref<8x128xf32, #tpu.memory_space<vmem>>, vector<8x128xf32>,
      %c0_112 = arith.constant 0 : index
      %c0_113 = arith.constant 0 : index
      %506 = vector.load %arg10[%c0_112, %c0_113] : memref<8x128xf32, #tpu.memory_space<vmem>>, vector<8x128xf32>
      tpu.vector_store %arg10[%c0_112, %c0_113], %493 {strides = array<i32>} : memref<8x128xf32, #tpu.memory_space<vmem>>, vector<8x128xf32>,
    } else {
    }
    return
  }
  func.func @transform_0(%arg0: i32, %arg1: i32, %arg2: memref<2xi32, #tpu.memory_space<smem>>) -> (i32, i32, i32) {
    %c0_i32 = arith.constant 0 : i32
    %c0_i32_0 = arith.constant 0 : i32
    return %arg1, %arg0, %c0_i32 : i32, i32, i32
  }
  func.func @transform_1(%arg0: i32, %arg1: i32, %arg2: memref<2xi32, #tpu.memory_space<smem>>) -> (i32, i32) {
    %c0_i32 = arith.constant 0 : i32
    %c0_i32_0 = arith.constant 0 : i32
    return %arg0, %c0_i32 : i32, i32
  }
  func.func @transform_2(%arg0: i32, %arg1: i32, %arg2: memref<2xi32, #tpu.memory_space<smem>>) -> (i32, i32) {
    %c0_i32 = arith.constant 0 : i32
    %c0_i32_0 = arith.constant 0 : i32
    %c0_i32_1 = arith.constant 0 : i32
    return %c0_i32, %c0_i32_0 : i32, i32
  }
  func.func @transform_3(%arg0: i32, %arg1: i32, %arg2: memref<2xi32, #tpu.memory_space<smem>>) -> (i32, i32) {
    %c0_i32 = arith.constant 0 : i32
    %c0_i32_0 = arith.constant 0 : i32
    %c0_i32_1 = arith.constant 0 : i32
    return %c0_i32, %c0_i32_0 : i32, i32
  }
  func.func @transform_4(%arg0: i32, %arg1: i32, %arg2: memref<2xi32, #tpu.memory_space<smem>>) -> (i32, i32) {
    %c0_i32 = arith.constant 0 : i32
    %c0_i32_0 = arith.constant 0 : i32
    %c0_i32_1 = arith.constant 0 : i32
    return %c0_i32, %c0_i32_0 : i32, i32
  }
  func.func @transform_5(%arg0: i32, %arg1: i32, %arg2: memref<2xi32, #tpu.memory_space<smem>>) -> (i32, i32, i32) {
    %c0_i32 = arith.constant 0 : i32
    %c0_i32_0 = arith.constant 0 : i32
    return %arg1, %arg0, %c0_i32 : i32, i32, i32
  }
  func.func @transform_6(%arg0: i32, %arg1: i32, %arg2: memref<2xi32, #tpu.memory_space<smem>>) -> (i32, i32) {
    %c0_i32 = arith.constant 0 : i32
    %c0_i32_0 = arith.constant 0 : i32
    return %arg0, %c0_i32 : i32, i32
  }
  func.func @transform_7(%arg0: i32, %arg1: i32, %arg2: memref<2xi32, #tpu.memory_space<smem>>) -> (i32, i32) {
    %c0_i32 = arith.constant 0 : i32
    %c0_i32_0 = arith.constant 0 : i32
    return %arg0, %c0_i32 : i32, i32
  }
}

</mosaic_0001>

<bundles_post_ra>
// kernel: _augmented_lstm_impl.1
= control target key start
LH: loop header
LB: loop body
LE: loop exit
PB: predicated region body
PF: predicated region fallthrough
CT: control target
= control target key end

     0   :  { %s6201_s0 = inlined_call_operand.vmem [shape: s32[2], index: 0, kind: input, shape index: {}]   ;;  %s6202_s1 = inlined_call_operand.vmem [shape: f32[8,16,16], index: 1, kind: input, shape index: {}]   ;;  %s6203_s2 = inlined_call_operand.vmem [shape: s32[16,1], index: 2, kind: input, shape index: {}]   ;;  %s6204_s3 = inlined_call_operand.vmem [shape: f32[16,768], index: 3, kind: input, shape index: {}]   ;;  %s6205_s4 = inlined_call_operand.vmem [shape: f32[1,768], index: 4, kind: input, shape index: {}]   ;;  %s6206_s5 = inlined_call_operand.vmem [shape: f32[128,640], index: 5, kind: input, shape index: {}]   ;;  %s6207_s6 = inlined_call_operand.vmem [shape: f32[8,16,128], index: 6, kind: output, shape index: {0}]   ;;  %s6208_s7 = inlined_call_operand.vmem [shape: f32[16,128], index: 7, kind: output, shape index: {1}]   ;;  %s6209_s8 = inlined_call_operand.vmem [shape: f32[16,128], index: 8, kind: output, shape index: {2}]  }
   0x1   :  { %s14_s29 = sshll.u32 %s6201_s0, 4  ;;  %s15_s29 = int_to_ptr.vmem [resolvable:$true] %s14_s29 }
   0x2   :  { %s4842_s30 = scalar_lea.vmem %s15_s29, 16  ;;  %p4847_p1 = scmp.lt.s32.totalorder %s15_s29, %s15_s29 }
   0x3   :  { %p4843_p0 = scmp.ne.s32.totalorder %s15_s29, %s4842_s30  ;;  %p4848_p2 = scmp.lt.s32.totalorder %s4842_s30, %s4842_s30 }
   0x5   :  { %p4849_p3 = por %p4848_p2, %p4847_p1 }
   0x7   :  { %p4850_p4 = pnand %p4849_p3, %p4843_p0 }
   0x9   :  { %4853 = shalt.err (!%p4850_p4)  }
   0xa   :  { %s4896_s9 = smov [#allocation4]  }
   0xb   :  { %17 = dma.vmem_to_smem %s15_s29, 16, %s4896_s9, [#allocation3] }
   0xc   :  { %4874 = dma.done.wait [#allocation3], 16 }
   0xd   :  { %4875 = vsyncadd [#allocation3], 4294967280 }
   0xe   :  { %19 = sfence }
   0xf   :  { %s4951_s10 = smov 0   ;;  %s4953_s11 = smov 0  }
  0x10   :  { %s4955_s12 = smov 0   ;;  %s4957_s0 = smov 0  }
  0x11   :  { %s4959_s13 = smov 0  }
  0x12 LB: > { %s37_s14 = sadd.s32 1, %s4890_s0  ;;  %s3354_s15 = sadd.s32 4294967295, %s4894_s13   ;;  %s4894_s13 = sphi %s4959_s13, %s25_s13   ;;  %s4890_s0 = sphi %s4957_s0, %s6283_s0   ;;  %s4886_s12 = sphi %s4955_s12, %s6282_s12   ;;  %s4882_s11 = sphi %s4953_s11, %s6281_s11   ;;  %s4878_s10 = sphi %s4951_s10, %s6280_s10  }
  0x13   : > { %p39_p5 = scmp.ge.s32.totalorder %s37_s14, 2  ;;  %p53_p6 = scmp.ne.s32.totalorder %s4882_s11, %s4878_s10 }
  0x14   : > { %p54_p7 = scmp.eq.s32.totalorder %s4894_s13, 0  ;;  %p174_p9 = scmp.eq.s32.totalorder %s3354_s15, 1 }
  0x15   : > { %s6285_s14 = smov (%p39_p5, %s37_s14), 0  ;;  %s46_s17 = sadd.s32 1, %s4882_s11 }
  0x16   : > { %p55_p8 = por %p54_p7, %p53_p6  ;;  %s42_s16 = ssub.s32 %s4890_s0, %s6285_s14 }
  0x17   : > { %p44_p10 = scmp.eq.s32.totalorder %s42_s16, 0  ;;  %p4986_p11 = por %p174_p9, %p53_p6 }
  0x18   : > { %p3357_p12 = scmp.ge.s32.totalorder %s4894_s13, 2 }
  0x19   : > { %s4991_s19 = scalar_select %p44_p10, %s4882_s11, %s46_s17  }
  0x1a   : > { %257 = sbr.rel (%p3357_p12) target bundleno = 41 (0x29), region = 28 }
  0x21   : > { %260 = sbr.rel (!%p55_p8) target bundleno = 41 (0x29), region = 32  ;;  %s262_s20 = sand.u32 (%p55_p8), 1, %s4882_s11  }
  0x22   : > { %s3359_s21 = sshll.u32 (%p55_p8), %s4890_s0, 3  ;;  %s3358_s22 = sshll.u32 (%p55_p8), %s262_s20, 6 }
  0x23   : > { %s269_s25 = scalar_lea.vmem (%p55_p8), %s6202_s1, %s3359_s21  ;;  %s264_s26 = scalar_lea.vmem (%p55_p8), [#allocation5], %s3358_s22 }
  0x24   : > { %v311_v0 = vld [vmem:[%s269_s25] sm:$0xff] (%p55_p8)  ;;  %v313_v1 = vld [vmem:[%s269_s25 + $0x10] sm:$0xff] (%p55_p8) }
  0x25   : > { %v315_v2 = vld [vmem:[%s269_s25 + $0x20] sm:$0xff] (%p55_p8)  ;;  %312 = vst [vmem:[%s264_s26] sm:$0xff] (%p55_p8), %v311_v0  ;;  %314 = vst [vmem:[%s264_s26 + $0x8] sm:$0xff] (%p55_p8), %v313_v1  ;;  %v317_v3 = vld [vmem:[%s269_s25 + $0x30] sm:$0xff] (%p55_p8) }
  0x26   : > { %316 = vst [vmem:[%s264_s26 + $0x10] sm:$0xff] (%p55_p8), %v315_v2  ;;  %v319_v4 = vld [vmem:[%s269_s25 + $0x40] sm:$0xff] (%p55_p8)  ;;  %v321_v5 = vld [vmem:[%s269_s25 + $0x50] sm:$0xff] (%p55_p8)  ;;  %318 = vst [vmem:[%s264_s26 + $0x18] sm:$0xff] (%p55_p8), %v317_v3 }
  0x27   : > { %320 = vst [vmem:[%s264_s26 + $0x20] sm:$0xff] (%p55_p8), %v319_v4  ;;  %322 = vst [vmem:[%s264_s26 + $0x28] sm:$0xff] (%p55_p8), %v321_v5  ;;  %v323_v6 = vld [vmem:[%s269_s25 + $0x60] sm:$0xff] (%p55_p8)  ;;  %v325_v7 = vld [vmem:[%s269_s25 + $0x70] sm:$0xff] (%p55_p8) }
  0x28   : > { %324 = vst [vmem:[%s264_s26 + $0x30] sm:$0xff] %v323_v6  ;;  %326 = vst [vmem:[%s264_s26 + $0x38] sm:$0xff] %v325_v7 }
  0x29 PF: > { %p3360_p13 = scmp.ge.s32.totalorder %s4894_s13, 1  ;;  %p338_p0 = scmp.lt.s32.totalorder %s4894_s13, 3 }
  0x2b   : > { %p339_p1 = pnand %p3360_p13, %p338_p0 }
  0x2c   : > { %s345_s27 = sand.u32 (!%p339_p1), 1, %s4878_s10   ;;  %p388_p2 = scmp.lt.s32.totalorder (!%p339_p1), %s4886_s12, 1  ;;  %v4897_v8 = vmov (!%p339_p1), 0.0  }
  0x2d   : > { %342 = sbr.rel (%p339_p1) target bundleno = 2368 (0x940), region = 74  ;;  %s3361_s28 = sshll.u32 (!%p339_p1), %s345_s27, 6 }
  0x2e   : > { %s408_s29 = sld [smem:[#allocation4 + %s4886_s12]] (!%p339_p1)  ;;  %s5025_s25 = scalar_lea.vmem (!%p339_p1), [#allocation5], %s3361_s28 }
  0x2f   : > { %s5027_s26 = scalar_lea.vmem (!%p339_p1), [#allocation6], %s3361_s28 }
  0x34   : > { %s389_s30 = scalar_select %p388_p2, %s4886_s12, 1 }
  0x35   : > { %p3366_p3 = scmp.gt.s32.totalorder %s408_s29, 0 }
  0x36   : > { %s5005_s9 = sshll.u32 %s389_s30, 3  ;;  %v4898_v9 = vmov (!%p3366_p3), 0.0  }
  0x37   : > { %s391_s17 = scalar_lea.vmem %s6203_s2, %s5005_s9  ;;  %s5015_s22 = scalar_lea.vmem %s6208_s7, %s5005_s9  ;;  %413 = vst [vmem:[%s5027_s26] sm:$0xff] (!%p3366_p3), %v4898_v9  ;;  %414 = vst [vmem:[%s5027_s26 + $0x8] sm:$0xff] (!%p3366_p3), %v4898_v9 }
  0x38   : > { %405 = vst [vmem:[%s5015_s22] sm:$0xff] %v4897_v8  ;;  %s5022_s24 = scalar_lea.vmem %s6209_s8, %s5005_s9  ;;  %412 = sbr.rel (%p3366_p3) target bundleno = 63 (0x3f), region = 86  ;;  %415 = vst [vmem:[%s5027_s26 + $0x10] sm:$0xff] (!%p3366_p3), %v4898_v9 }
  0x39   : > { %406 = vst [vmem:[%s5022_s24] sm:$0xff] %v4897_v8  ;;  %416 = vst [vmem:[%s5027_s26 + $0x18] sm:$0xff] (!%p3366_p3), %v4898_v9 }
  0x3a   : > { %417 = vst [vmem:[%s5027_s26 + $0x20] sm:$0xff] (!%p3366_p3), %v4898_v9  ;;  %418 = vst [vmem:[%s5027_s26 + $0x28] sm:$0xff] (!%p3366_p3), %v4898_v9 }
  0x3b   : > { %419 = vst [vmem:[%s5027_s26 + $0x30] sm:$0xff] (!%p3366_p3), %v4898_v9  ;;  %420 = vst [vmem:[%s5027_s26 + $0x38] sm:$0xff] (!%p3366_p3), %v4898_v9 }
  0x3f PF: > { %p3367_p4 = scmp.le.s32.totalorder %s408_s29, 0 }
  0x41   : > { %424 = sbr.rel (%p3367_p4) target bundleno = 2360 (0x938), region = 90 }
  0x48   : > { %v434_v10 = vld [vmem:[%s6204_s3 + $0x8] sm:$0xff]  ;;  %v440_v11 = vld [vmem:[%s6204_s3 + $0x38] sm:$0xff]  ;;  %v433_v12 = vld [vmem:[%s6204_s3] sm:$0xff]  ;;  %v6214_v15 = vmov 0.0   ;;  %v6210_v20 = vmov 0   ;;  %vm477_vm0 = vcmask 130048  }
  0x49   : > { %v3851_v13 = vpack.c.bf16 %v440_v11, %v434_v10  ;;  %v439_v14 = vld [vmem:[%s6204_s3 + $0x30] sm:$0xff]  ;;  %566 = vmatprep.mubr.f32.mxu0 %v6214_v15  ;;  %590 = vmatprep.mubr.f32.mxu1 %v6214_v15  ;;  %v436_v17 = vld [vmem:[%s6204_s3 + $0x18] sm:$0xff]  ;;  %v442_v18 = vld [vmem:[%s6204_s3 + $0x48] sm:$0xff]  ;;  %vm4902_vm3 = vmmov 0  }
  0x4a   : > { %v3853_v16 = vpack.c.bf16 %v439_v14, %v433_v12  ;;  %v435_v19 = vld [vmem:[%s6204_s3 + $0x10] sm:$0xff]  ;;  %4680 = vset.pattern.permute.xlu0 %v6210_v20  ;;  %4681 = vset.pattern.permute.xlu1 %v6210_v20  ;;  %v3855_v21 = vpack.c.bf16 %v442_v18, %v436_v17  ;;  %v441_v22 = vld [vmem:[%s6204_s3 + $0x40] sm:$0xff]  ;;  %v438_v26 = vld [vmem:[%s6204_s3 + $0x28] sm:$0xff] }
  0x4b   : > { %3852 = vmatprep.subr.bf16.mxu0 %v3851_v13  ;;  %4567 = vmatprep.subr.bf16.mxu1 %v3851_v13  ;;  %v425_v23 = vld [vmem:[%s5025_s25] sm:$0xff]  ;;  %v3857_v25 = vpack.c.bf16 %v441_v22, %v435_v19  ;;  %v444_v27 = vld [vmem:[%s6204_s3 + $0x58] sm:$0xff]  ;;  %v443_v30 = vld [vmem:[%s6204_s3 + $0x50] sm:$0xff] }
  0x4c   : > { %3854 = vmatpush1.bf16.msra.mxu0 %v3853_v16  ;;  %4568 = vmatpush1.bf16.msra.mxu1 %v3853_v16  ;;  %v5067_v24 = vld [vmem:[%s5025_s25 + $0x20] sm:$0xff]  ;;  %v3859_v28 = vpack.c.bf16 %v444_v27, %v438_v26  ;;  %v893_v31 = vld [vmem:[%s6206_s5 + $0x18] sm:$0xff]  ;;  %v891_v34 = vld [vmem:[%s6206_s5 + $0x8] sm:$0xff] }
  0x4d   : > { %3856 = vmatprep.subr.bf16.mxu1 %v3855_v21  ;;  %v437_v29 = vld [vmem:[%s6204_s3 + $0x20] sm:$0xff]  ;;  %v896_v35 = vld [vmem:[%s6206_s5 + $0x30] sm:$0xff]  ;;  %v5098_v36 = vld [vmem:[%s5025_s25 + $0x8] sm:$0xff] }
  0x4e   : > { %v3861_v32 = vpack.c.bf16 %v443_v30, %v437_v29  ;;  %v898_v33 = vld [vmem:[%s6206_s5 + $0x40] sm:$0xff]  ;;  %v5101_v37 = vld [vmem:[%s5025_s25 + $0x28] sm:$0xff]  ;;  %3860 = vmatprep.subr.bf16.mxu0 %v3859_v28  ;;  %v5106_v39 = vpack.c.bf16 %v896_v35, %v891_v34  ;;  %v5116_v40 = vld [vmem:[%s5025_s25 + $0x10] sm:$0xff] }
  0x4f   : > { %3368 = vmatmul.mubr.msk.f32.vlgmr.msra.gmra.mrb[0].mxu0 %vm477_vm0, %v425_v23  ;;  %3372 = vmatmul.mubr.msk.f32.vlgmr.msra.gmra.mrb[0].mxu1 %vm477_vm0, %v5067_v24  ;;  %v5103_v38 = vpack.c.bf16 %v898_v33, %v893_v31  ;;  %v5119_v41 = vld [vmem:[%s5025_s25 + $0x30] sm:$0xff]  ;;  %v5129_v42 = vld [vmem:[%s5025_s25 + $0x18] sm:$0xff]  ;;  %v890_v46 = vld [vmem:[%s6206_s5] sm:$0xff] }
  0x50   : > { %3858 = vmatpush1.bf16.msra.mxu1 %v3857_v25  ;;  %572 = vmatprep.mubr.f32.mxu0 %v6214_v15  ;;  %v5132_v43 = vld [vmem:[%s5025_s25 + $0x38] sm:$0xff]  ;;  %v892_v44 = vld [vmem:[%s6206_s5 + $0x10] sm:$0xff]  ;;  %v895_v47 = vld [vmem:[%s6206_s5 + $0x28] sm:$0xff] }
  0x51   : > { %6225 = vst [vmem:[#allocation8_spill] sm:$0xff] %v5103_v38  ;;  %596 = vmatprep.mubr.f32.mxu1 %v6214_v15  ;;  %3862 = vmatpush1.bf16.msra.mxu0 %v3861_v32  ;;  %v897_v45 = vld [vmem:[%s6206_s5 + $0x38] sm:$0xff]  ;;  %v903_v48 = vld [vmem:[%s6206_s5 + $0x68] sm:$0xff]  ;;  %v908_v49 = vld [vmem:[%s6206_s5 + $0x90] sm:$0xff]  ;;  %v5166_v53 = vpack.c.bf16 %v895_v47, %v890_v46 }
  0x52   : > { %3896 = vmatprep.subr.bf16.mxu1 %v5103_v38  ;;  %3864 = vmatprep.subr.bf16.mxu0 %v5106_v39  ;;  %v901_v50 = vld [vmem:[%s6206_s5 + $0x58] sm:$0xff]  ;;  %v906_v51 = vld [vmem:[%s6206_s5 + $0x80] sm:$0xff]  ;;  %v5164_v52 = vpack.c.bf16 %v897_v45, %v892_v44  ;;  %v907_v55 = vld [vmem:[%s6206_s5 + $0x88] sm:$0xff]  ;;  %v5180_v58 = vpack.c.bf16 %v908_v49, %v903_v48 }
  0x53   : > { %3369 = vmatmul.mubr.msk.f32.gmra.mrb[2].mxu0 %vm477_vm0, %v5098_v36  ;;  %3373 = vmatmul.mubr.msk.f32.gmra.mrb[2].mxu1 %vm477_vm0, %v5101_v37  ;;  %v902_v54 = vld [vmem:[%s6206_s5 + $0x60] sm:$0xff]  ;;  %v900_v56 = vld [vmem:[%s6206_s5 + $0x50] sm:$0xff]  ;;  %v905_v57 = vld [vmem:[%s6206_s5 + $0x78] sm:$0xff]  ;;  %v5182_v59 = vpack.c.bf16 %v906_v51, %v901_v50 }
  0x54   : > { %578 = vmatprep.mubr.f32.mxu0 %v6214_v15  ;;  %602 = vmatprep.mubr.f32.mxu1 %v6214_v15  ;;  %v913_v60 = vld [vmem:[%s6206_s5 + $0xb8] sm:$0xff]  ;;  %v918_v61 = vld [vmem:[%s6206_s5 + $0xe0] sm:$0xff]  ;;  %v911_v62 = vld [vmem:[%s6206_s5 + $0xa8] sm:$0xff]  ;;  %v5200_v0 = vpack.c.bf16 %v907_v55, %v902_v54  ;;  %v5202_v1 = vpack.c.bf16 %v905_v57, %v900_v56 }
  0x55   : > { %v916_v63 = vld [vmem:[%s6206_s5 + $0xd0] sm:$0xff]  ;;  %v917_v3 = vld [vmem:[%s6206_s5 + $0xd8] sm:$0xff]  ;;  %v910_v4 = vld [vmem:[%s6206_s5 + $0xa0] sm:$0xff]  ;;  %v5220_v6 = vpack.c.bf16 %v918_v61, %v913_v60 }
  0x56   : > { %v912_v2 = vld [vmem:[%s6206_s5 + $0xb0] sm:$0xff]  ;;  %v915_v5 = vld [vmem:[%s6206_s5 + $0xc8] sm:$0xff]  ;;  %v5222_v7 = vpack.c.bf16 %v916_v63, %v911_v62  ;;  %v921_v10 = vld [vmem:[%s6206_s5 + $0xf8] sm:$0xff] }
  0x57   : > { %3370 = vmatmul.mubr.msk.f32.gmra.mrb[4].mxu0 %vm477_vm0, %v5116_v40  ;;  %3374 = vmatmul.mubr.msk.f32.gmra.mrb[4].mxu1 %vm477_vm0, %v5119_v41  ;;  %v923_v8 = vld [vmem:[%s6206_s5 + $0x108] sm:$0xff]  ;;  %v928_v9 = vld [vmem:[%s6206_s5 + $0x130] sm:$0xff]  ;;  %v926_v11 = vld [vmem:[%s6206_s5 + $0x120] sm:$0xff]  ;;  %v5242_v12 = vpack.c.bf16 %v917_v3, %v912_v2  ;;  %v5244_v13 = vpack.c.bf16 %v915_v5, %v910_v4 }
  0x58   : > { %584 = vmatprep.mubr.f32.mxu0 %v6214_v15  ;;  %608 = vmatprep.mubr.f32.mxu1 %v6214_v15  ;;  %v922_v14 = vld [vmem:[%s6206_s5 + $0x100] sm:$0xff]  ;;  %v927_v16 = vld [vmem:[%s6206_s5 + $0x128] sm:$0xff]  ;;  %v920_v17 = vld [vmem:[%s6206_s5 + $0xf0] sm:$0xff]  ;;  %v5262_v19 = vpack.c.bf16 %v928_v9, %v923_v8  ;;  %v5264_v21 = vpack.c.bf16 %v926_v11, %v921_v10 }
  0x59   : > { %v925_v18 = vld [vmem:[%s6206_s5 + $0x118] sm:$0xff]  ;;  %v931_v25 = vld [vmem:[%s6206_s5 + $0x148] sm:$0xff]  ;;  %v936_v26 = vld [vmem:[%s6206_s5 + $0x170] sm:$0xff]  ;;  %v5284_v27 = vpack.c.bf16 %v927_v16, %v922_v14 }
  0x5a   : > { %v933_v22 = vld [vmem:[%s6206_s5 + $0x158] sm:$0xff]  ;;  %v5286_v28 = vpack.c.bf16 %v925_v18, %v920_v17  ;;  %v932_v29 = vld [vmem:[%s6206_s5 + $0x150] sm:$0xff]  ;;  %v930_v31 = vld [vmem:[%s6206_s5 + $0x140] sm:$0xff]  ;;  %v5306_v34 = vpack.c.bf16 %v936_v26, %v931_v25 }
  0x5b   : > { %3371 = vmatmul.mubr.msk.f32.gmra.mrb[6].mxu0 %vm477_vm0, %v5129_v42  ;;  %3375 = vmatmul.mubr.msk.f32.gmra.mrb[6].mxu1 %vm477_vm0, %v5132_v43  ;;  %v937_v30 = vld [vmem:[%s6206_s5 + $0x178] sm:$0xff]  ;;  %v935_v32 = vld [vmem:[%s6206_s5 + $0x168] sm:$0xff]  ;;  %v946_v44 = vld [vmem:[%s6206_s5 + $0x1c0] sm:$0xff] }
  0x5c   : > { %679 = vmatprep.mubr.f32.mxu1 %v6214_v15  ;;  %792 = vmatprep.mubr.f32.mxu0 %v6214_v15  ;;  %v943_v35 = vld [vmem:[%s6206_s5 + $0x1a8] sm:$0xff]  ;;  %v5326_v45 = vpack.c.bf16 %v937_v30, %v932_v29  ;;  %v5328_v46 = vpack.c.bf16 %v935_v32, %v930_v31  ;;  %v940_v48 = vld [vmem:[%s6206_s5 + $0x190] sm:$0xff]  ;;  %v945_v49 = vld [vmem:[%s6206_s5 + $0x1b8] sm:$0xff] }
  0x5d   : > { %v947_v47 = vld [vmem:[%s6206_s5 + $0x1c8] sm:$0xff]  ;;  %v953_v54 = vld [vmem:[%s6206_s5 + $0x1f8] sm:$0xff]  ;;  %v958_v55 = vld [vmem:[%s6206_s5 + $0x220] sm:$0xff]  ;;  %v5370_v61 = vpack.c.bf16 %v945_v49, %v940_v48 }
  0x5e   : > { %v951_v56 = vld [vmem:[%s6206_s5 + $0x1e8] sm:$0xff]  ;;  %v956_v57 = vld [vmem:[%s6206_s5 + $0x210] sm:$0xff]  ;;  %v957_v62 = vld [vmem:[%s6206_s5 + $0x218] sm:$0xff]  ;;  %v5388_v3 = vpack.c.bf16 %v958_v55, %v953_v54 }
  0x5f   : > { %3376 = vmatmul.mubr.msk.f32.vlgmr.msra.gmra.mrb[8].mxu1 %vm477_vm0, %v425_v23  ;;  %3384 = vmatmul.mubr.msk.f32.vlgmr.msra.gmra.mrb[8].mxu0 %vm477_vm0, %v425_v23  ;;  %v938_v23 = vld [vmem:[%s6206_s5 + $0x180] sm:$0xff]  ;;  %v955_v2 = vld [vmem:[%s6206_s5 + $0x208] sm:$0xff]  ;;  %v5390_v4 = vpack.c.bf16 %v956_v57, %v951_v56  ;;  %v968_v8 = vld [vmem:[%s6206_s5 + $0x270] sm:$0xff] }
  0x60   : > { %3898 = vmatpush1.bf16.msra.mxu1 %v5164_v52  ;;  %3866 = vmatpush1.bf16.msra.mxu0 %v5166_v53  ;;  %v5304_v33 = vpack.c.bf16 %v938_v23, %v933_v22  ;;  %v950_v63 = vld [vmem:[%s6206_s5 + $0x1e0] sm:$0xff]  ;;  %v963_v5 = vld [vmem:[%s6206_s5 + $0x248] sm:$0xff]  ;;  %v961_v9 = vld [vmem:[%s6206_s5 + $0x238] sm:$0xff] }
  0x61   : > { %685 = vmatprep.mubr.f32.mxu1 %v6214_v15  ;;  %798 = vmatprep.mubr.f32.mxu0 %v6214_v15  ;;  %v966_v10 = vld [vmem:[%s6206_s5 + $0x260] sm:$0xff]  ;;  %v5412_v14 = vpack.c.bf16 %v955_v2, %v950_v63  ;;  %v967_v16 = vld [vmem:[%s6206_s5 + $0x268] sm:$0xff]  ;;  %v960_v17 = vld [vmem:[%s6206_s5 + $0x230] sm:$0xff]  ;;  %v5437_v23 = vpack.c.bf16 %v968_v8, %v963_v5 }
  0x62   : > { %3900 = vmatprep.subr.bf16.mxu1 %v5180_v58  ;;  %3868 = vmatprep.subr.bf16.mxu0 %v5182_v59  ;;  %v965_v18 = vld [vmem:[%s6206_s5 + $0x258] sm:$0xff]  ;;  %v5433_v22 = vld [vmem:[%s391_s17] sm:$0xff]  ;;  %v5439_v25 = vpack.c.bf16 %v966_v10, %v961_v9  ;;  %v919_v48 = vld [vmem:[%s6206_s5 + $0xe8] sm:$0xff] }
  0x63   : > { %3377 = vmatmul.mubr.msk.f32.gmra.mrb[10].mxu1 %vm477_vm0, %v5098_v36  ;;  %3385 = vmatmul.mubr.msk.f32.gmra.mrb[10].mxu0 %vm477_vm0, %v5098_v36  ;;  %v948_v36 = vld [vmem:[%s6206_s5 + $0x1d0] sm:$0xff]  ;;  %6226 = vst [vmem:[#allocation9_spill] sm:$0xff] %v5433_v22  ;;  %v5449_v29 = vpack.c.bf16 %v965_v18, %v960_v17  ;;  %vm1230_vm1 = vcmp.gt.s32.totalorder %v5433_v22, 0  ;;  %v894_v30 = vld [vmem:[%s6206_s5 + $0x20] sm:$0xff]  ;;  %vm1500_vm2 = vcmp.gt.s32.totalorder %v5433_v22, 1  ;;  %vm2313_vm4 = vcmp.gt.s32.totalorder %v5433_v22, 4 }
  0x64   : > { %3902 = vmatpush1.bf16.msra.mxu1 %v5200_v0  ;;  %3870 = vmatpush1.bf16.msra.mxu0 %v5202_v1  ;;  %v5346_v50 = vpack.c.bf16 %v948_v36, %v943_v35  ;;  %v1231_v31 = vsel %vm1230_vm1, 1, %v6210_v20  ;;  %v5470_v32 = vld [vmem:[%s5015_s22] sm:$0xff]  ;;  %v909_v36 = vld [vmem:[%s6206_s5 + $0x98] sm:$0xff]  ;;  %v2314_v49 = vsel %vm2313_vm4, 1, %v6210_v20  ;;  %vm2855_vm5 = vcmp.gt.s32.totalorder %v5433_v22, 6  ;;  %v924_v55 = vld [vmem:[%s6206_s5 + $0x110] sm:$0xff] }
  0x65   : > { %691 = vmatprep.mubr.f32.mxu1 %v6214_v15  ;;  %804 = vmatprep.mubr.f32.mxu0 %v6214_v15  ;;  %v929_v56 = vld [vmem:[%s6206_s5 + $0x138] sm:$0xff]  ;;  %v2856_v57 = vsel %vm2855_vm5, 1, %v6210_v20  ;;  %v939_v63 = vld [vmem:[%s6206_s5 + $0x188] sm:$0xff]  ;;  %v944_v5 = vld [vmem:[%s6206_s5 + $0x1b0] sm:$0xff] }
  0x66   : > { %3904 = vmatprep.subr.bf16.mxu1 %v5220_v6  ;;  %3872 = vmatprep.subr.bf16.mxu0 %v5222_v7  ;;  %v949_v8 = vld [vmem:[%s6206_s5 + $0x1d8] sm:$0xff]  ;;  %v954_v10 = vld [vmem:[%s6206_s5 + $0x200] sm:$0xff]  ;;  %v964_v17 = vld [vmem:[%s6206_s5 + $0x250] sm:$0xff] }
  0x67   : > { %3378 = vmatmul.mubr.msk.f32.gmra.mrb[12].mxu1 %vm477_vm0, %v5116_v40  ;;  %3386 = vmatmul.mubr.msk.f32.gmra.mrb[12].mxu0 %vm477_vm0, %v5116_v40  ;;  %v941_v40 = vld [vmem:[%s6206_s5 + $0x198] sm:$0xff]  ;;  %v5544_v9 = vpack.c.bf16 %v949_v8, %v944_v5  ;;  %v445_v8 = vld [vmem:[%s6205_s4] sm:$0x3f] }
  0x68   : > { %3906 = vmatpush1.bf16.msra.mxu1 %v5242_v12  ;;  %3874 = vmatpush1.bf16.msra.mxu0 %v5244_v13  ;;  %v5348_v51 = vpack.c.bf16 %v946_v44, %v941_v40  ;;  %v6212_v40 = vmov 0.0|0.0   ;;  %v1501_v44 = vsel %vm1500_vm2, 1, %v6210_v20  ;;  %v969_v18 = vld [vmem:[%s6206_s5 + $0x278] sm:$0xff] }
  0x69   : > { %697 = vmatprep.mubr.f32.mxu1 %v6214_v15  ;;  %810 = vmatprep.mubr.f32.mxu0 %v6214_v15 }
  0x6a   : > { %3908 = vmatprep.subr.bf16.mxu1 %v5262_v19  ;;  %3876 = vmatprep.subr.bf16.mxu0 %v5264_v21 }
  0x6b   : > { %3379 = vmatmul.mubr.msk.f32.gmra.mrb[14].mxu1 %vm477_vm0, %v5129_v42  ;;  %3387 = vmatmul.mubr.msk.f32.gmra.mrb[14].mxu0 %vm477_vm0, %v5129_v42  ;;  %v942_v42 = vld [vmem:[%s6206_s5 + $0x1a0] sm:$0xff] }
  0x6c   : > { %3910 = vmatpush1.bf16.msra.mxu1 %v5284_v27  ;;  %3878 = vmatpush1.bf16.msra.mxu0 %v5286_v28  ;;  %v5368_v60 = vpack.c.bf16 %v947_v47, %v942_v42  ;;  %v914_v47 = vld [vmem:[%s6206_s5 + $0xc0] sm:$0xff] }
  0x6d   : > { %703 = vmatprep.mubr.f32.mxu1 %v6214_v15  ;;  %816 = vmatprep.mubr.f32.mxu0 %v6214_v15  ;;  %v5506_v54 = vpack.c.bf16 %v919_v48, %v914_v47  ;;  %v447_v47 = vlaneseq }
  0x6e   : > { %3912 = vmatprep.subr.bf16.mxu1 %v5304_v33  ;;  %3880 = vmatprep.subr.bf16.mxu0 %v5306_v34 }
  0x6f   : > { %3380 = vmatmul.mubr.msk.f32.gmra.mrb[16].mxu1 %vm477_vm0, %v5067_v24  ;;  %3388 = vmatmul.mubr.msk.f32.gmra.mrb[16].mxu0 %vm477_vm0, %v5067_v24  ;;  %v952_v24 = vld [vmem:[%s6206_s5 + $0x1f0] sm:$0xff] }
  0x70   : > { %3914 = vmatpush1.bf16.msra.mxu1 %v5326_v45  ;;  %3882 = vmatpush1.bf16.msra.mxu0 %v5328_v46  ;;  %v5410_v11 = vpack.c.bf16 %v957_v62, %v952_v24  ;;  %v5520_v24 = vpack.c.bf16 %v929_v56, %v924_v55  ;;  %v934_v62 = vld [vmem:[%s6206_s5 + $0x160] sm:$0xff]  ;;  %v448_v55 = vshrl.u32 %v447_v47, 7 }
  0x71   : > { %709 = vmatprep.mubr.f32.mxu1 %v6214_v15  ;;  %822 = vmatprep.mubr.f32.mxu0 %v6214_v15  ;;  %v5532_v2 = vpack.c.bf16 %v939_v63, %v934_v62 }
  0x72   : > { %3916 = vmatprep.subr.bf16.mxu1 %v5346_v50  ;;  %3884 = vmatprep.subr.bf16.mxu0 %v5348_v51  ;;  %v469_v63 = vsub.s32 5, %v448_v55 }
  0x73   : > { %3381 = vmatmul.mubr.msk.f32.gmra.mrb[18].mxu1 %vm477_vm0, %v5101_v37  ;;  %3389 = vmatmul.mubr.msk.f32.gmra.mrb[18].mxu0 %vm477_vm0, %v5101_v37  ;;  %v962_v37 = vld [vmem:[%s6206_s5 + $0x240] sm:$0xff] }
  0x74   : > { %3918 = vmatpush1.bf16.msra.mxu1 %v5368_v60  ;;  %3886 = vmatpush1.bf16.msra.mxu0 %v5370_v61  ;;  %v5447_v26 = vpack.c.bf16 %v967_v16, %v962_v37  ;;  %v959_v37 = vld [vmem:[%s6206_s5 + $0x228] sm:$0xff] }
  0x75   : > { %715 = vmatprep.mubr.f32.mxu1 %v6214_v15  ;;  %828 = vmatprep.mubr.f32.mxu0 %v6214_v15  ;;  %v5556_v16 = vpack.c.bf16 %v959_v37, %v954_v10  ;;  %v5620_v37 = vrot.slane %v445_v8, %v469_v63 }
  0x76   : > { %3920 = vmatprep.subr.bf16.mxu1 %v5388_v3  ;;  %3888 = vmatprep.subr.bf16.mxu0 %v5390_v4 }
  0x77   : > { %3382 = vmatmul.mubr.msk.f32.gmra.mrb[20].mxu1 %vm477_vm0, %v5119_v41  ;;  %3390 = vmatmul.mubr.msk.f32.gmra.mrb[20].mxu0 %vm477_vm0, %v5119_v41  ;;  %v899_v41 = vld [vmem:[%s6206_s5 + $0x48] sm:$0xff] }
  0x78   : > { %3922 = vmatpush1.bf16.msra.mxu1 %v5410_v11  ;;  %3890 = vmatpush1.bf16.msra.mxu0 %v5412_v14  ;;  %v5472_v35 = vpack.c.bf16 %v899_v41, %v894_v30  ;;  %v5568_v30 = vpack.c.bf16 %v969_v18, %v964_v17 }
  0x79   : > { %721 = vmatprep.mubr.f32.mxu1 %v6214_v15  ;;  %834 = vmatprep.mubr.f32.mxu0 %v6214_v15 }
  0x7a   : > { %3924 = vmatprep.subr.bf16.mxu1 %v5437_v23  ;;  %3892 = vmatprep.subr.bf16.mxu0 %v5439_v25 }
  0x7b   : > { %3383 = vmatmul.mubr.msk.f32.gmra.mrb[22].mxu1 %vm477_vm0, %v5132_v43  ;;  %3391 = vmatmul.mubr.msk.f32.gmra.mrb[22].mxu0 %vm477_vm0, %v5132_v43  ;;  %v904_v43 = vld [vmem:[%s6206_s5 + $0x70] sm:$0xff] }
  0x7c   : > { %3926 = vmatpush1.bf16.msra.mxu1 %v5447_v26  ;;  %3894 = vmatpush1.bf16.msra.mxu0 %v5449_v29  ;;  %v5488_v42 = vpack.c.bf16 %v909_v36, %v904_v43 }
  0x7d   : > { %1042 = vmatprep.mubr.f32.mxu0 %v6214_v15  ;;  %1113 = vmatprep.mubr.f32.mxu1 %v6214_v15 }
  0x7e   : > { %3927 = vmatprep.subr.bf16.mxu1 %v6212_v40  ;;  %1233 = vperm.xlu0 %4680, %v1231_v31  }
  0x7f   : > { %1043 = vmatmul.mubr.f32.vlgmr.msra.gmra.mrb[0].mxu0 %v5470_v32  ;;  %1114 = vmatmul.mubr.f32.vlgmr.msra.gmra.mrb[8].mxu1 %v5470_v32 }
  0x80   : > { %3929 = vmatpush3.bf16.msra.mxu1 %v5472_v35  ;;  %3603 = vmatprep.mubr.msk.f32.mxu1 %vm4902_vm3, %v6214_v15 }
  0x81   : > { %3930 = vmatprep.subr.bf16.mxu1 %v6212_v40  ;;  %3952 = vmatprep.subr.bf16.mxu0 %v5106_v39 }
  0x82   : > { %1503 = vperm.xlu0 %4680, %v1501_v44   ;;  %3954 = vmatpush1.bf16.msra.mxu0 %v5166_v53 }
  0x83   : > { %3956 = vmatprep.subr.bf16.mxu0 %v5182_v59  ;;  %1311 = vmatprep.mubr.f32.mxu0 %v6214_v15 }
  0x84   : > { %3932 = vmatpush3.bf16.msra.mxu1 %v5488_v42 }
  0x85   : > { %3933 = vmatprep.subr.bf16.mxu1 %v6212_v40 }
  0x86   : > { %2316 = vperm.xlu0 %4680, %v2314_v49   ;;  %3958 = vmatpush1.bf16.msra.mxu0 %v5202_v1 }
  0x87   : > { %3960 = vmatprep.subr.bf16.mxu0 %v5222_v7 }
  0x88   : > { %3935 = vmatpush3.bf16.msra.mxu1 %v5506_v54 }
  0x89   : > { %3936 = vmatprep.subr.bf16.mxu1 %v6212_v40 }
  0x8a   : > { %2858 = vperm.xlu0 %4680, %v2856_v57   ;;  %3962 = vmatpush1.bf16.msra.mxu0 %v5244_v13  ;;  %v465_v57 = vsub.s32 4, %v448_v55 }
  0x8b   : > { %3964 = vmatprep.subr.bf16.mxu0 %v5264_v21 }
  0x8c   : > { %3938 = vmatpush3.bf16.msra.mxu1 %v5520_v24  ;;  %v5618_v10 = vrot.slane %v445_v8, %v465_v57 }
  0x8d   : > { %3939 = vmatprep.subr.bf16.mxu1 %v6212_v40 }
  0x8e   : > { %3966 = vmatpush1.bf16.msra.mxu0 %v5286_v28 }
  0x8f   : > { %3968 = vmatprep.subr.bf16.mxu0 %v5306_v34 }
  0x90   : > { %3941 = vmatpush3.bf16.msra.mxu1 %v5532_v2 }
  0x91   : > { %3942 = vmatprep.subr.bf16.mxu1 %v6212_v40 }
  0x92   : > { %3970 = vmatpush1.bf16.msra.mxu0 %v5328_v46 }
  0x93   : > { %3972 = vmatprep.subr.bf16.mxu0 %v5348_v51 }
  0x94   : > { %3944 = vmatpush3.bf16.msra.mxu1 %v5544_v9 }
  0x95   : > { %3945 = vmatprep.subr.bf16.mxu1 %v6212_v40 }
  0x96   : > { %3974 = vmatpush1.bf16.msra.mxu0 %v5370_v61 }
  0x97   : > { %3976 = vmatprep.subr.bf16.mxu0 %v5390_v4 }
  0x98   : > { %3947 = vmatpush3.bf16.msra.mxu1 %v5556_v16 }
  0x99   : > { %3948 = vmatprep.subr.bf16.mxu1 %v6212_v40 }
  0x9a   : > { %3978 = vmatpush1.bf16.msra.mxu0 %v5412_v14 }
  0x9b   : > { %3980 = vmatprep.subr.bf16.mxu0 %v5439_v25 }
  0x9c   : > { %3950 = vmatpush3.bf16.msra.mxu1 %v5568_v30 }
  0x9d   : > { %3984 = vmatprep.subr.bf16.mxu1 %v5103_v38 }
  0x9e   : > { %3982 = vmatpush1.bf16.msra.mxu0 %v5449_v29 }
  0x9f   : > { %3604 = vmatmul.mubr.f32.vlgmr.msra.gmra.mrb[24].mxu1 %v5470_v32  ;;  %4015 = vmatprep.subr.bf16.mxu0 %v6212_v40 }
  0xa0   : > { %3986 = vmatpush1.bf16.msra.mxu1 %v5164_v52  ;;  %1382 = vmatprep.mubr.f32.mxu1 %v6214_v15 }
  0xa1   : > { %3988 = vmatprep.subr.bf16.mxu1 %v5180_v58 }
  0xa4   : > { %3990 = vmatpush1.bf16.msra.mxu1 %v5200_v0 }
  0xa5   : > { %3992 = vmatprep.subr.bf16.mxu1 %v5220_v6 }
  0xa8   : > { %3994 = vmatpush1.bf16.msra.mxu1 %v5242_v12 }
  0xa9   : > { %3996 = vmatprep.subr.bf16.mxu1 %v5262_v19 }
  0xac   : > { %3998 = vmatpush1.bf16.msra.mxu1 %v5284_v27 }
  0xad   : > { %4000 = vmatprep.subr.bf16.mxu1 %v5304_v33 }
  0xb0   : > { %4002 = vmatpush1.bf16.msra.mxu1 %v5326_v45 }
  0xb1   : > { %4004 = vmatprep.subr.bf16.mxu1 %v5346_v50 }
  0xb4   : > { %4006 = vmatpush1.bf16.msra.mxu1 %v5368_v60 }
  0xb5   : > { %4008 = vmatprep.subr.bf16.mxu1 %v5388_v3 }
  0xb8   : > { %4010 = vmatpush1.bf16.msra.mxu1 %v5410_v11 }
  0xb9   : > { %4012 = vmatprep.subr.bf16.mxu1 %v5437_v23 }
  0xbc   : > { %4014 = vmatpush1.bf16.msra.mxu1 %v5447_v26 }
  0xbd   : > { %4072 = vmatprep.subr.bf16.mxu1 %v5103_v38 }
 0x122   : > { %v5595_v41 = vpop.f32.mrb[0].mxu1 }
 0x123   : > { %6227 = vst [vmem:[#allocation10_spill] sm:$0xff] %v5595_v41  ;;  %v5597_v31 = vpop.f32.mrb[1].mxu1 }
 0x124   : > { %6228 = vst [vmem:[#allocation11_spill] sm:$0xff] %v5597_v31 }
 0x126   : > { %v5599_v43 = vpop.f32.mrb[2].mxu1 }
 0x127   : > { %6229 = vst [vmem:[#allocation12_spill] sm:$0xff] %v5599_v43  ;;  %v5601_v36 = vpop.f32.mrb[3].mxu1 }
 0x128   : > { %6230 = vst [vmem:[#allocation13_spill] sm:$0xff] %v5601_v36 }
 0x12a   : > { %v5603_v44 = vpop.f32.mrb[4].mxu1 }
 0x12b   : > { %6231 = vst [vmem:[#allocation14_spill] sm:$0xff] %v5603_v44  ;;  %v5605_v48 = vpop.f32.mrb[5].mxu1 }
 0x12c   : > { %6232 = vst [vmem:[#allocation15_spill] sm:$0xff] %v5605_v48 }
 0x12e   : > { %v5607_v49 = vpop.f32.mrb[6].mxu1 }
 0x12f   : > { %6233 = vst [vmem:[#allocation16_spill] sm:$0xff] %v5607_v49  ;;  %v5609_v56 = vpop.f32.mrb[7].mxu1 }
 0x130   : > { %6234 = vst [vmem:[#allocation17_spill] sm:$0xff] %v5609_v56 }
 0x132   : > { %v5611_v62 = vpop.f32.mrb[8].mxu0 }
 0x133   : > { %v5613_v5 = vpop.f32.mrb[9].mxu0 }
 0x136   : > { %v800_v17 = vpop.f32.mrb[10].mxu0 }
 0x137   : > { %v5623_v18 = vadd.f32 %v800_v17, %v5618_v10  ;;  %v802_v47 = vpop.f32.mrb[11].mxu0 }
 0x138   : > { %v5626_v20 = vadd.f32 %v802_v47, %v5620_v37 }
 0x139   : > { %6235 = vst [vmem:[#allocation18_spill] sm:$0xff] %v5623_v18 }
 0x13a   : > { %6236 = vst [vmem:[#allocation19_spill] sm:$0xff] %v5626_v20  ;;  %v806_v40 = vpop.f32.mrb[12].mxu0 }
 0x13b   : > { %v5629_v15 = vadd.f32 %v806_v40, %v5618_v10  ;;  %v808_v56 = vpop.f32.mrb[13].mxu0 }
 0x13c   : > { %v5632_v49 = vadd.f32 %v808_v56, %v5620_v37 }
 0x13d   : > { %6237 = vst [vmem:[#allocation20_spill] sm:$0xff] %v5629_v15 }
 0x13e   : > { %6238 = vst [vmem:[#allocation21_spill] sm:$0xff] %v5632_v49  ;;  %v812_v57 = vpop.f32.mrb[14].mxu0  ;;  %v461_v49 = vsub.s32 3, %v448_v55 }
 0x13f   : > { %v5635_v63 = vadd.f32 %v812_v57, %v5618_v10  ;;  %v814_v48 = vpop.f32.mrb[15].mxu0 }
 0x140   : > { %v5638_v17 = vadd.f32 %v814_v48, %v5620_v37 }
 0x141   : > { %6239 = vst [vmem:[#allocation22_spill] sm:$0xff] %v5635_v63  ;;  %v453_v63 = vsub.s32 1, %v448_v55 }
 0x142   : > { %6240 = vst [vmem:[#allocation23_spill] sm:$0xff] %v5638_v17  ;;  %v818_v44 = vpop.f32.mrb[16].mxu0 }
 0x143   : > { %v5641_v47 = vadd.f32 %v818_v44, %v5618_v10  ;;  %v820_v36 = vpop.f32.mrb[17].mxu0 }
 0x144   : > { %v5644_v40 = vadd.f32 %v820_v36, %v5620_v37 }
 0x145   : > { %6241 = vst [vmem:[#allocation24_spill] sm:$0xff] %v5641_v47  ;;  %v449_v47 = vsub.s32 0, %v448_v55 }
 0x146   : > { %6242 = vst [vmem:[#allocation25_spill] sm:$0xff] %v5644_v40  ;;  %v824_v43 = vpop.f32.mrb[18].mxu0 }
 0x147   : > { %v5647_v56 = vadd.f32 %v824_v43, %v5618_v10  ;;  %v826_v31 = vpop.f32.mrb[19].mxu0 }
 0x148   : > { %v5650_v57 = vadd.f32 %v826_v31, %v5620_v37  ;;  %v5664_v31 = vrot.slane %v445_v8, %v449_v47 }
 0x149   : > { %6243 = vst [vmem:[#allocation26_spill] sm:$0xff] %v5647_v56 }
 0x14a   : > { %6244 = vst [vmem:[#allocation27_spill] sm:$0xff] %v5650_v57  ;;  %v830_v41 = vpop.f32.mrb[20].mxu0  ;;  %6249 = vst [vmem:[#allocation32_spill] sm:$0xff] %v5664_v31  ;;  %v5666_v57 = vrot.slane %v445_v8, %v453_v63 }
 0x14b   : > { %v5653_v48 = vadd.f32 %v830_v41, %v5618_v10  ;;  %v832_v17 = vpop.f32.mrb[21].mxu0 }
 0x14c   : > { %v5656_v44 = vadd.f32 %v832_v17, %v5620_v37 }
 0x14d   : > { %6245 = vst [vmem:[#allocation28_spill] sm:$0xff] %v5653_v48 }
 0x14e   : > { %6246 = vst [vmem:[#allocation29_spill] sm:$0xff] %v5656_v44  ;;  %v836_v36 = vpop.f32.mrb[22].mxu0 }
 0x14f   : > { %v5659_v40 = vadd.f32 %v836_v36, %v5618_v10  ;;  %v838_v43 = vpop.f32.mrb[23].mxu0 }
 0x150   : > { %v5662_v56 = vadd.f32 %v838_v43, %v5620_v37  ;;  %v457_v43 = vsub.s32 2, %v448_v55 }
 0x151   : > { %6247 = vst [vmem:[#allocation30_spill] sm:$0xff] %v5659_v40  ;;  %v5670_v40 = vrot.slane %v445_v8, %v461_v49  ;;  %v971_v49 = vld [vmem:[%s5022_s24] sm:$0xff] }
 0x152   : > { %6248 = vst [vmem:[#allocation31_spill] sm:$0xff] %v5662_v56  ;;  %v1044_v41 = vpop.f32.mrb[0].mxu0  ;;  %v1115_v48 = vpop.f32.mrb[8].mxu1  ;;  %v5673_v47 = vrot.slane %v445_v8, %v457_v43 }
 0x153   : > { %v4569_v17 = vadd.f32 %v1044_v41, %v5664_v31  ;;  %v1046_v44 = vpop.f32.mrb[1].mxu0  ;;  %v1117_v15 = vpop.f32.mrb[9].mxu1 }
 0x154   : > { %v4570_v38 = vadd.f32 %v1046_v44, %v5666_v57  ;;  %v4594_v63 = vadd.f32 %v1117_v15, %v5670_v40  ;;  %v4593_v18 = vadd.f32 %v1115_v48, %v5673_v47  ;;  %v795_v48 = vadd.f32 %v5611_v62, %v5618_v10 }
 0x155   : > { %v3392_v20 = vmul.f32 -1.442695, %v4569_v17  ;;  %v1234_v17 = vpop.permute.xlu0 %1233  ;;  %v797_v10 = vadd.f32 %v5613_v5, %v5620_v37  ;;  %v6251_v5 = vmov 0.0|0.0   ;;  %v6253_v37 = vmov 0  }
 0x156   : > { %v3393_v36 = vmul.f32 -1.442695, %v4570_v38  ;;  %v3394_v56 = vmul.f32 -1.442695, %v4594_v63  ;;  %vm1235_vm6 = vcmp.eq.s32.totalorder %v1234_v17, 1 }
 0x157   : > { %4682 = vpow2.f32 %v3392_v20 }
 0x158   : > { %4684 = vpow2.f32 %v3393_v36 }
 0x159   : > { %4686 = vpow2.f32 %v3394_v56 }
 0x15a   : > { %4688 = vtanh.f32 %v4593_v18 }
 0x161   : > { %v4683_v41 = vpop.eup %4682 }
 0x162   : > { %v4685_v31 = vpop.eup %4684  ;;  %v1198_v22 = vadd.f32 1.0, %v4683_v41 }
 0x163   : > { %v1204_v44 = vadd.f32 1.0, %v4685_v31  ;;  %v4687_v38 = vpop.eup %4686 }
 0x164   : > { %4690 = vrcp.f32 %v1198_v22  ;;  %v4689_v20 = vpop.eup %4688  ;;  %v1211_v15 = vadd.f32 1.0, %v4687_v38 }
 0x165   : > { %4692 = vrcp.f32 %v1204_v44 }
 0x166   : > { %4694 = vrcp.f32 %v1211_v15 }
 0x16e   : > { %v4691_v55 = vpop.eup %4690 }
 0x16f   : > { %v4693_v36 = vpop.eup %4692  ;;  %v1220_v8 = vmul.f32 %v4691_v55, %v4689_v20 }
 0x170   : > { %v1221_v43 = vmul.f32 %v4693_v36, %v971_v49  ;;  %v4695_v44 = vpop.eup %4694 }
 0x172   : > { %v1186_v63 = vpop.f32.mrb[24].mxu1  ;;  %v1222_v41 = vadd.f32 %v1221_v43, %v1220_v8 }
 0x173   : > { %v1194_v18 = vadd.f32 %v1186_v63, %v795_v48  ;;  %v3605_v56 = vpop.f32.mrb[25].mxu1 }
 0x174   : > { %4696 = vtanh.f32 %v1222_v41  ;;  %v5680_v22 = vsel %vm1235_vm6, %v1222_v41, %v971_v49  ;;  %v6250_v41 = vmov 0.0  }
 0x175   : > { %v3395_v31 = vmul.f32 -1.442695, %v1194_v18 }
 0x177   : > { %4698 = vpow2.f32 %v3395_v31 }
 0x17e   : > { %v4697_v38 = vpop.eup %4696 }
 0x17f   : > { %v1224_v20 = vmul.f32 %v4697_v38, %v4695_v44 }
 0x181   : > { %v4699_v55 = vpop.eup %4698 }
 0x182   : > { %v1217_v36 = vadd.f32 1.0, %v4699_v55 }
 0x184   : > { %4700 = vrcp.f32 %v1217_v36 }
 0x18e   : > { %v4701_v62 = vpop.eup %4700 }
 0x18f   : > { %v1225_v15 = vmul.f32 %v4701_v62, %v1224_v20  ;;  %v1226_v8 = vsub.f32 1.0, %v4701_v62  ;;  %v6254_v20 = vld [vmem:[#allocation32_spill] sm:$0xff] }
 0x191   : > { %v1227_v43 = vmul.f32 %v1226_v8, %v797_v10 }
 0x193   : > { %v1228_v48 = vadd.f32 %v1227_v43, %v1225_v15 }
 0x195   : > { %v5686_v49 = vsel %vm1235_vm6, %v1228_v48, %v5470_v32  ;;  %v1238_v63 = vsel %vm1235_vm6, %v1228_v48, 0.0  ;;  %v6252_v32 = vld [vmem:[#allocation9_spill] sm:$0xff] }
 0x196   : > { %1239 = vst [vmem:[%s5027_s26] sm:$0xff] %v1238_v63  ;;  %1312 = vmatmul.mubr.f32.vlgmr.msra.gmra.mrb[2].mxu0 %v5686_v49  ;;  %1383 = vmatmul.mubr.f32.vlgmr.msra.gmra.mrb[10].mxu1 %v5686_v49  ;;  %vm1771_vm7 = vcmp.gt.s32.totalorder %v6252_v32, 2  ;;  %vm2042_vm8 = vcmp.gt.s32.totalorder %v6252_v32, 3  ;;  %vm2584_vm9 = vcmp.gt.s32.totalorder %v6252_v32, 5  ;;  %vm3126_vm10 = vcmp.gt.s32.totalorder %v6252_v32, 7 }
 0x197   : > { %4017 = vmatpush3.bf16.msra.mxu0 %v5472_v35  ;;  %3638 = vmatprep.mubr.msk.f32.mxu0 %vm4902_vm3, %v6250_v41  ;;  %v1772_v17 = vsel %vm1771_vm7, 1, %v6253_v37  ;;  %v2043_v18 = vsel %vm2042_vm8, 1, %v6253_v37  ;;  %v2585_v56 = vsel %vm2584_vm9, 1, %v6253_v37  ;;  %v3127_v31 = vsel %vm3126_vm10, 1, %v6253_v37 }
 0x198   : > { %4018 = vmatprep.subr.bf16.mxu0 %v6251_v5  ;;  %4074 = vmatpush1.bf16.msra.mxu1 %v5164_v52 }
 0x199   : > { %4076 = vmatprep.subr.bf16.mxu1 %v5180_v58  ;;  %1653 = vmatprep.mubr.f32.mxu1 %v6250_v41 }
 0x19a   : > { %1774 = vperm.xlu1 %4681, %v1772_v17  }
 0x19b   : > { %4020 = vmatpush3.bf16.msra.mxu0 %v5488_v42 }
 0x19c   : > { %4021 = vmatprep.subr.bf16.mxu0 %v6251_v5  ;;  %4078 = vmatpush1.bf16.msra.mxu1 %v5200_v0 }
 0x19d   : > { %4080 = vmatprep.subr.bf16.mxu1 %v5220_v6 }
 0x19e   : > { %2045 = vperm.xlu1 %4681, %v2043_v18  }
 0x19f   : > { %4023 = vmatpush3.bf16.msra.mxu0 %v5506_v54 }
 0x1a0   : > { %4024 = vmatprep.subr.bf16.mxu0 %v6251_v5  ;;  %4082 = vmatpush1.bf16.msra.mxu1 %v5242_v12 }
 0x1a1   : > { %4084 = vmatprep.subr.bf16.mxu1 %v5262_v19 }
 0x1a2   : > { %2587 = vperm.xlu1 %4681, %v2585_v56  }
 0x1a3   : > { %4026 = vmatpush3.bf16.msra.mxu0 %v5520_v24 }
 0x1a4   : > { %4027 = vmatprep.subr.bf16.mxu0 %v6251_v5  ;;  %4086 = vmatpush1.bf16.msra.mxu1 %v5284_v27 }
 0x1a5   : > { %4088 = vmatprep.subr.bf16.mxu1 %v5304_v33 }
 0x1a6   : > { %3129 = vperm.xlu1 %4681, %v3127_v31  }
 0x1a7   : > { %4029 = vmatpush3.bf16.msra.mxu0 %v5532_v2 }
 0x1a8   : > { %4030 = vmatprep.subr.bf16.mxu0 %v6251_v5  ;;  %4090 = vmatpush1.bf16.msra.mxu1 %v5326_v45 }
 0x1a9   : > { %4092 = vmatprep.subr.bf16.mxu1 %v5346_v50 }
 0x1ab   : > { %4032 = vmatpush3.bf16.msra.mxu0 %v5544_v9 }
 0x1ac   : > { %4033 = vmatprep.subr.bf16.mxu0 %v6251_v5  ;;  %4094 = vmatpush1.bf16.msra.mxu1 %v5368_v60 }
 0x1ad   : > { %4096 = vmatprep.subr.bf16.mxu1 %v5388_v3 }
 0x1af   : > { %4035 = vmatpush3.bf16.msra.mxu0 %v5556_v16 }
 0x1b0   : > { %4036 = vmatprep.subr.bf16.mxu0 %v6251_v5  ;;  %4098 = vmatpush1.bf16.msra.mxu1 %v5410_v11 }
 0x1b1   : > { %4100 = vmatprep.subr.bf16.mxu1 %v5437_v23 }
 0x1b3   : > { %4038 = vmatpush3.bf16.msra.mxu0 %v5568_v30 }
 0x1b4   : > { %4040 = vmatprep.subr.bf16.mxu0 %v5106_v39  ;;  %4102 = vmatpush1.bf16.msra.mxu1 %v5447_v26 }
 0x1b5   : > { %4103 = vmatprep.subr.bf16.mxu1 %v6251_v5 }
 0x1b6   : > { %3639 = vmatmul.mubr.f32.vlgmr.msra.gmra.mrb[24].mxu0 %v5686_v49 }
 0x1b7   : > { %4042 = vmatpush1.bf16.msra.mxu0 %v5166_v53  ;;  %1582 = vmatprep.mubr.f32.mxu0 %v6250_v41 }
 0x1b8   : > { %4044 = vmatprep.subr.bf16.mxu0 %v5182_v59 }
 0x1bb   : > { %4046 = vmatpush1.bf16.msra.mxu0 %v5202_v1 }
 0x1bc   : > { %4048 = vmatprep.subr.bf16.mxu0 %v5222_v7 }
 0x1bf   : > { %4050 = vmatpush1.bf16.msra.mxu0 %v5244_v13 }
 0x1c0   : > { %4052 = vmatprep.subr.bf16.mxu0 %v5264_v21 }
 0x1c3   : > { %4054 = vmatpush1.bf16.msra.mxu0 %v5286_v28 }
 0x1c4   : > { %4056 = vmatprep.subr.bf16.mxu0 %v5306_v34 }
 0x1c7   : > { %4058 = vmatpush1.bf16.msra.mxu0 %v5328_v46 }
 0x1c8   : > { %4060 = vmatprep.subr.bf16.mxu0 %v5348_v51 }
 0x1cb   : > { %4062 = vmatpush1.bf16.msra.mxu0 %v5370_v61 }
 0x1cc   : > { %4064 = vmatprep.subr.bf16.mxu0 %v5390_v4 }
 0x1cf   : > { %4066 = vmatpush1.bf16.msra.mxu0 %v5412_v14 }
 0x1d0   : > { %4068 = vmatprep.subr.bf16.mxu0 %v5439_v25 }
 0x1d3   : > { %4070 = vmatpush1.bf16.msra.mxu0 %v5449_v29 }
 0x1d4   : > { %4128 = vmatprep.subr.bf16.mxu0 %v5106_v39 }
 0x269   : > { %v1313_v44 = vpop.f32.mrb[2].mxu0  ;;  %v1384_v38 = vpop.f32.mrb[10].mxu1 }
 0x26a   : > { %v4571_v55 = vadd.f32 %v1313_v44, %v6254_v20  ;;  %v1315_v36 = vpop.f32.mrb[3].mxu0  ;;  %v1386_v62 = vpop.f32.mrb[11].mxu1  ;;  %v4595_v63 = vadd.f32 %v1384_v38, %v5673_v47  ;;  %v6255_v38 = vld [vmem:[#allocation18_spill] sm:$0xff] }
 0x26b   : > { %v4572_v10 = vadd.f32 %v1315_v36, %v5666_v57  ;;  %v4596_v43 = vadd.f32 %v1386_v62, %v5670_v40  ;;  %v1504_v62 = vpop.permute.xlu0 %1503 }
 0x26c   : > { %v3396_v15 = vmul.f32 -1.442695, %v4571_v55  ;;  %vm1505_vm11 = vcmp.eq.s32.totalorder %v1504_v62, 1 }
 0x26d   : > { %v3397_v8 = vmul.f32 -1.442695, %v4572_v10  ;;  %v3398_v48 = vmul.f32 -1.442695, %v4596_v43 }
 0x26e   : > { %4702 = vpow2.f32 %v3396_v15 }
 0x26f   : > { %4704 = vpow2.f32 %v3397_v8 }
 0x270   : > { %4706 = vpow2.f32 %v3398_v48 }
 0x271   : > { %4708 = vtanh.f32 %v4595_v63 }
 0x278   : > { %v4703_v32 = vpop.eup %4702 }
 0x279   : > { %v4705_v37 = vpop.eup %4704  ;;  %v1467_v17 = vadd.f32 1.0, %v4703_v32 }
 0x27a   : > { %v1473_v18 = vadd.f32 1.0, %v4705_v37  ;;  %v4707_v56 = vpop.eup %4706 }
 0x27b   : > { %4710 = vrcp.f32 %v1467_v17  ;;  %v4709_v31 = vpop.eup %4708  ;;  %v1480_v10 = vadd.f32 1.0, %v4707_v56 }
 0x27c   : > { %4712 = vrcp.f32 %v1473_v18 }
 0x27d   : > { %4714 = vrcp.f32 %v1480_v10 }
 0x285   : > { %v4711_v44 = vpop.eup %4710 }
 0x286   : > { %v4713_v55 = vpop.eup %4712  ;;  %v1489_v36 = vmul.f32 %v4711_v44, %v4709_v31 }
 0x287   : > { %v1490_v15 = vmul.f32 %v4713_v55, %v5680_v22  ;;  %v4715_v17 = vpop.eup %4714 }
 0x289   : > { %v1491_v8 = vadd.f32 %v1490_v15, %v1489_v36  ;;  %v1455_v43 = vpop.f32.mrb[24].mxu0  ;;  %v6256_v15 = vld [vmem:[#allocation19_spill] sm:$0xff] }
 0x28a   : > { %v1463_v32 = vadd.f32 %v1455_v43, %v6255_v38  ;;  %v3640_v48 = vpop.f32.mrb[25].mxu0 }
 0x28b   : > { %4716 = vtanh.f32 %v1491_v8  ;;  %v5761_v63 = vsel %vm1505_vm11, %v1491_v8, %v5680_v22 }
 0x28c   : > { %v3399_v37 = vmul.f32 -1.442695, %v1463_v32 }
 0x28e   : > { %4718 = vpow2.f32 %v3399_v37 }
 0x295   : > { %v4717_v18 = vpop.eup %4716 }
 0x296   : > { %v1493_v56 = vmul.f32 %v4717_v18, %v4715_v17 }
 0x298   : > { %v4719_v31 = vpop.eup %4718 }
 0x299   : > { %v1486_v44 = vadd.f32 1.0, %v4719_v31 }
 0x29b   : > { %4720 = vrcp.f32 %v1486_v44 }
 0x2a5   : > { %v4721_v55 = vpop.eup %4720 }
 0x2a6   : > { %v1494_v36 = vmul.f32 %v4721_v55, %v1493_v56  ;;  %v1495_v10 = vsub.f32 1.0, %v4721_v55 }
 0x2a8   : > { %v1496_v43 = vmul.f32 %v1495_v10, %v6256_v15 }
 0x2aa   : > { %v1497_v38 = vadd.f32 %v1496_v43, %v1494_v36 }
 0x2ac   : > { %v5766_v48 = vsel %vm1505_vm11, %v1497_v38, %v5686_v49  ;;  %v1508_v22 = vsel %vm1505_vm11, %v1497_v38, 0.0  ;;  %v6257_v49 = vld [vmem:[#allocation8_spill] sm:$0xff] }
 0x2ad   : > { %3400 = vst [vmem:[%s5027_s26 + $0x8] sm:$0xff] %v1508_v22  ;;  %1583 = vmatmul.mubr.f32.vlgmr.msra.gmra.mrb[4].mxu0 %v5766_v48  ;;  %1654 = vmatmul.mubr.f32.vlgmr.msra.gmra.mrb[12].mxu1 %v5766_v48 }
 0x2ae   : > { %4105 = vmatpush3.bf16.msra.mxu1 %v5472_v35  ;;  %3673 = vmatprep.mubr.msk.f32.mxu1 %vm4902_vm3, %v6250_v41 }
 0x2af   : > { %4106 = vmatprep.subr.bf16.mxu1 %v6251_v5  ;;  %4130 = vmatpush1.bf16.msra.mxu0 %v5166_v53 }
 0x2b0   : > { %4132 = vmatprep.subr.bf16.mxu0 %v5182_v59  ;;  %1853 = vmatprep.mubr.f32.mxu0 %v6250_v41 }
 0x2b2   : > { %4108 = vmatpush3.bf16.msra.mxu1 %v5488_v42 }
 0x2b3   : > { %4109 = vmatprep.subr.bf16.mxu1 %v6251_v5  ;;  %4134 = vmatpush1.bf16.msra.mxu0 %v5202_v1 }
 0x2b4   : > { %4136 = vmatprep.subr.bf16.mxu0 %v5222_v7 }
 0x2b6   : > { %4111 = vmatpush3.bf16.msra.mxu1 %v5506_v54 }
 0x2b7   : > { %4112 = vmatprep.subr.bf16.mxu1 %v6251_v5  ;;  %4138 = vmatpush1.bf16.msra.mxu0 %v5244_v13 }
 0x2b8   : > { %4140 = vmatprep.subr.bf16.mxu0 %v5264_v21 }
 0x2ba   : > { %4114 = vmatpush3.bf16.msra.mxu1 %v5520_v24 }
 0x2bb   : > { %4115 = vmatprep.subr.bf16.mxu1 %v6251_v5  ;;  %4142 = vmatpush1.bf16.msra.mxu0 %v5286_v28 }
 0x2bc   : > { %4144 = vmatprep.subr.bf16.mxu0 %v5306_v34 }
 0x2be   : > { %4117 = vmatpush3.bf16.msra.mxu1 %v5532_v2 }
 0x2bf   : > { %4118 = vmatprep.subr.bf16.mxu1 %v6251_v5  ;;  %4146 = vmatpush1.bf16.msra.mxu0 %v5328_v46 }
 0x2c0   : > { %4148 = vmatprep.subr.bf16.mxu0 %v5348_v51 }
 0x2c2   : > { %4120 = vmatpush3.bf16.msra.mxu1 %v5544_v9 }
 0x2c3   : > { %4121 = vmatprep.subr.bf16.mxu1 %v6251_v5  ;;  %4150 = vmatpush1.bf16.msra.mxu0 %v5370_v61 }
 0x2c4   : > { %4152 = vmatprep.subr.bf16.mxu0 %v5390_v4 }
 0x2c6   : > { %4123 = vmatpush3.bf16.msra.mxu1 %v5556_v16 }
 0x2c7   : > { %4124 = vmatprep.subr.bf16.mxu1 %v6251_v5  ;;  %4154 = vmatpush1.bf16.msra.mxu0 %v5412_v14 }
 0x2c8   : > { %4156 = vmatprep.subr.bf16.mxu0 %v5439_v25 }
 0x2ca   : > { %4126 = vmatpush3.bf16.msra.mxu1 %v5568_v30 }
 0x2cb   : > { %4160 = vmatprep.subr.bf16.mxu1 %v6257_v49  ;;  %4158 = vmatpush1.bf16.msra.mxu0 %v5449_v29 }
 0x2cc   : > { %4191 = vmatprep.subr.bf16.mxu0 %v6251_v5 }
 0x2cd   : > { %3674 = vmatmul.mubr.f32.vlgmr.msra.gmra.mrb[26].mxu1 %v5766_v48 }
 0x2ce   : > { %4162 = vmatpush1.bf16.msra.mxu1 %v5164_v52  ;;  %1924 = vmatprep.mubr.f32.mxu1 %v6250_v41 }
 0x2cf   : > { %4164 = vmatprep.subr.bf16.mxu1 %v5180_v58 }
 0x2d2   : > { %4166 = vmatpush1.bf16.msra.mxu1 %v5200_v0 }
 0x2d3   : > { %4168 = vmatprep.subr.bf16.mxu1 %v5220_v6 }
 0x2d6   : > { %4170 = vmatpush1.bf16.msra.mxu1 %v5242_v12 }
 0x2d7   : > { %4172 = vmatprep.subr.bf16.mxu1 %v5262_v19 }
 0x2da   : > { %4174 = vmatpush1.bf16.msra.mxu1 %v5284_v27 }
 0x2db   : > { %4176 = vmatprep.subr.bf16.mxu1 %v5304_v33 }
 0x2de   : > { %4178 = vmatpush1.bf16.msra.mxu1 %v5326_v45 }
 0x2df   : > { %4180 = vmatprep.subr.bf16.mxu1 %v5346_v50 }
 0x2e2   : > { %4182 = vmatpush1.bf16.msra.mxu1 %v5368_v60 }
 0x2e3   : > { %4184 = vmatprep.subr.bf16.mxu1 %v5388_v3 }
 0x2e6   : > { %4186 = vmatpush1.bf16.msra.mxu1 %v5410_v11 }
 0x2e7   : > { %4188 = vmatprep.subr.bf16.mxu1 %v5437_v23 }
 0x2ea   : > { %4190 = vmatpush1.bf16.msra.mxu1 %v5447_v26 }
 0x2eb   : > { %4248 = vmatprep.subr.bf16.mxu1 %v6257_v49  ;;  %v6258_v49 = vld [vmem:[#allocation20_spill] sm:$0xff] }
 0x380   : > { %v1584_v62 = vpop.f32.mrb[4].mxu0  ;;  %v1655_v8 = vpop.f32.mrb[12].mxu1 }
 0x381   : > { %v4573_v32 = vadd.f32 %v1584_v62, %v6254_v20  ;;  %v1586_v37 = vpop.f32.mrb[5].mxu0  ;;  %v1657_v17 = vpop.f32.mrb[13].mxu1  ;;  %v4597_v36 = vadd.f32 %v1655_v8, %v5673_v47 }
 0x382   : > { %v4574_v18 = vadd.f32 %v1586_v37, %v5666_v57  ;;  %v4598_v44 = vadd.f32 %v1657_v17, %v5670_v40 }
 0x383   : > { %v3401_v56 = vmul.f32 -1.442695, %v4573_v32  ;;  %v1775_v32 = vpop.permute.xlu1 %1774 }
 0x384   : > { %v3402_v31 = vmul.f32 -1.442695, %v4574_v18  ;;  %v3403_v55 = vmul.f32 -1.442695, %v4598_v44  ;;  %vm1776_vm12 = vcmp.eq.s32.totalorder %v1775_v32, 1 }
 0x385   : > { %4722 = vpow2.f32 %v3401_v56 }
 0x386   : > { %4724 = vpow2.f32 %v3402_v31 }
 0x387   : > { %4726 = vpow2.f32 %v3403_v55 }
 0x388   : > { %4728 = vtanh.f32 %v4597_v36 }
 0x38f   : > { %v4723_v10 = vpop.eup %4722 }
 0x390   : > { %v4725_v15 = vpop.eup %4724  ;;  %v1738_v43 = vadd.f32 1.0, %v4723_v10 }
 0x391   : > { %v1744_v38 = vadd.f32 1.0, %v4725_v15  ;;  %v4727_v22 = vpop.eup %4726 }
 0x392   : > { %4730 = vrcp.f32 %v1738_v43  ;;  %v4729_v62 = vpop.eup %4728  ;;  %v1751_v56 = vadd.f32 1.0, %v4727_v22 }
 0x393   : > { %4732 = vrcp.f32 %v1744_v38 }
 0x394   : > { %4734 = vrcp.f32 %v1751_v56 }
 0x39c   : > { %v4731_v37 = vpop.eup %4730 }
 0x39d   : > { %v4733_v18 = vpop.eup %4732  ;;  %v1760_v31 = vmul.f32 %v4731_v37, %v4729_v62 }
 0x39e   : > { %v1761_v17 = vmul.f32 %v4733_v18, %v5761_v63  ;;  %v4735_v43 = vpop.eup %4734 }
 0x3a0   : > { %v1726_v44 = vpop.f32.mrb[26].mxu1  ;;  %v1762_v8 = vadd.f32 %v1761_v17, %v1760_v31  ;;  %v6259_v17 = vld [vmem:[#allocation21_spill] sm:$0xff] }
 0x3a1   : > { %v1734_v10 = vadd.f32 %v1726_v44, %v6258_v49  ;;  %v3675_v55 = vpop.f32.mrb[27].mxu1 }
 0x3a2   : > { %4736 = vtanh.f32 %v1762_v8  ;;  %v5833_v36 = vsel %vm1776_vm12, %v1762_v8, %v5761_v63 }
 0x3a3   : > { %v3404_v15 = vmul.f32 -1.442695, %v1734_v10 }
 0x3a5   : > { %4738 = vpow2.f32 %v3404_v15 }
 0x3ac   : > { %v4737_v38 = vpop.eup %4736 }
 0x3ad   : > { %v1764_v22 = vmul.f32 %v4737_v38, %v4735_v43 }
 0x3af   : > { %v4739_v62 = vpop.eup %4738 }
 0x3b0   : > { %v1757_v37 = vadd.f32 1.0, %v4739_v62 }
 0x3b2   : > { %4740 = vrcp.f32 %v1757_v37 }
 0x3bc   : > { %v4741_v18 = vpop.eup %4740 }
 0x3bd   : > { %v1765_v31 = vmul.f32 %v4741_v18, %v1764_v22  ;;  %v1766_v56 = vsub.f32 1.0, %v4741_v18 }
 0x3bf   : > { %v1767_v49 = vmul.f32 %v1766_v56, %v6259_v17 }
 0x3c1   : > { %v1768_v44 = vadd.f32 %v1767_v49, %v1765_v31 }
 0x3c3   : > { %v5838_v55 = vsel %vm1776_vm12, %v1768_v44, %v5766_v48  ;;  %v1779_v63 = vsel %vm1776_vm12, %v1768_v44, 0.0 }
 0x3c4   : > { %3405 = vst [vmem:[%s5027_s26 + $0x10] sm:$0xff] %v1779_v63  ;;  %1854 = vmatmul.mubr.f32.vlgmr.msra.gmra.mrb[6].mxu0 %v5838_v55  ;;  %1925 = vmatmul.mubr.f32.vlgmr.msra.gmra.mrb[14].mxu1 %v5838_v55 }
 0x3c5   : > { %4193 = vmatpush3.bf16.msra.mxu0 %v5472_v35  ;;  %3708 = vmatprep.mubr.msk.f32.mxu0 %vm4902_vm3, %v6250_v41 }
 0x3c6   : > { %4194 = vmatprep.subr.bf16.mxu0 %v6251_v5  ;;  %4250 = vmatpush1.bf16.msra.mxu1 %v5164_v52 }
 0x3c7   : > { %4252 = vmatprep.subr.bf16.mxu1 %v5180_v58  ;;  %2195 = vmatprep.mubr.f32.mxu1 %v6250_v41 }
 0x3c9   : > { %4196 = vmatpush3.bf16.msra.mxu0 %v5488_v42 }
 0x3ca   : > { %4197 = vmatprep.subr.bf16.mxu0 %v6251_v5  ;;  %4254 = vmatpush1.bf16.msra.mxu1 %v5200_v0 }
 0x3cb   : > { %4256 = vmatprep.subr.bf16.mxu1 %v5220_v6 }
 0x3cd   : > { %4199 = vmatpush3.bf16.msra.mxu0 %v5506_v54 }
 0x3ce   : > { %4200 = vmatprep.subr.bf16.mxu0 %v6251_v5  ;;  %4258 = vmatpush1.bf16.msra.mxu1 %v5242_v12 }
 0x3cf   : > { %4260 = vmatprep.subr.bf16.mxu1 %v5262_v19 }
 0x3d1   : > { %4202 = vmatpush3.bf16.msra.mxu0 %v5520_v24 }
 0x3d2   : > { %4203 = vmatprep.subr.bf16.mxu0 %v6251_v5  ;;  %4262 = vmatpush1.bf16.msra.mxu1 %v5284_v27 }
 0x3d3   : > { %4264 = vmatprep.subr.bf16.mxu1 %v5304_v33 }
 0x3d5   : > { %4205 = vmatpush3.bf16.msra.mxu0 %v5532_v2 }
 0x3d6   : > { %4206 = vmatprep.subr.bf16.mxu0 %v6251_v5  ;;  %4266 = vmatpush1.bf16.msra.mxu1 %v5326_v45 }
 0x3d7   : > { %4268 = vmatprep.subr.bf16.mxu1 %v5346_v50 }
 0x3d9   : > { %4208 = vmatpush3.bf16.msra.mxu0 %v5544_v9 }
 0x3da   : > { %4209 = vmatprep.subr.bf16.mxu0 %v6251_v5  ;;  %4270 = vmatpush1.bf16.msra.mxu1 %v5368_v60 }
 0x3db   : > { %4272 = vmatprep.subr.bf16.mxu1 %v5388_v3 }
 0x3dd   : > { %4211 = vmatpush3.bf16.msra.mxu0 %v5556_v16 }
 0x3de   : > { %4212 = vmatprep.subr.bf16.mxu0 %v6251_v5  ;;  %4274 = vmatpush1.bf16.msra.mxu1 %v5410_v11 }
 0x3df   : > { %4276 = vmatprep.subr.bf16.mxu1 %v5437_v23 }
 0x3e1   : > { %4214 = vmatpush3.bf16.msra.mxu0 %v5568_v30 }
 0x3e2   : > { %4216 = vmatprep.subr.bf16.mxu0 %v5106_v39  ;;  %4278 = vmatpush1.bf16.msra.mxu1 %v5447_v26 }
 0x3e3   : > { %4279 = vmatprep.subr.bf16.mxu1 %v6251_v5 }
 0x3e4   : > { %3709 = vmatmul.mubr.f32.vlgmr.msra.gmra.mrb[26].mxu0 %v5838_v55 }
 0x3e5   : > { %4218 = vmatpush1.bf16.msra.mxu0 %v5166_v53  ;;  %2124 = vmatprep.mubr.f32.mxu0 %v6250_v41 }
 0x3e6   : > { %4220 = vmatprep.subr.bf16.mxu0 %v5182_v59 }
 0x3e9   : > { %4222 = vmatpush1.bf16.msra.mxu0 %v5202_v1 }
 0x3ea   : > { %4224 = vmatprep.subr.bf16.mxu0 %v5222_v7 }
 0x3ed   : > { %4226 = vmatpush1.bf16.msra.mxu0 %v5244_v13 }
 0x3ee   : > { %4228 = vmatprep.subr.bf16.mxu0 %v5264_v21 }
 0x3f1   : > { %4230 = vmatpush1.bf16.msra.mxu0 %v5286_v28 }
 0x3f2   : > { %4232 = vmatprep.subr.bf16.mxu0 %v5306_v34 }
 0x3f5   : > { %4234 = vmatpush1.bf16.msra.mxu0 %v5328_v46 }
 0x3f6   : > { %4236 = vmatprep.subr.bf16.mxu0 %v5348_v51 }
 0x3f9   : > { %4238 = vmatpush1.bf16.msra.mxu0 %v5370_v61 }
 0x3fa   : > { %4240 = vmatprep.subr.bf16.mxu0 %v5390_v4 }
 0x3fd   : > { %4242 = vmatpush1.bf16.msra.mxu0 %v5412_v14 }
 0x3fe   : > { %4244 = vmatprep.subr.bf16.mxu0 %v5439_v25 }
 0x401   : > { %4246 = vmatpush1.bf16.msra.mxu0 %v5449_v29 }
 0x402   : > { %4304 = vmatprep.subr.bf16.mxu0 %v5106_v39 }
 0x497   : > { %v1855_v48 = vpop.f32.mrb[6].mxu0  ;;  %v1926_v32 = vpop.f32.mrb[14].mxu1 }
 0x498   : > { %v4575_v8 = vadd.f32 %v1855_v48, %v6254_v20  ;;  %v1857_v10 = vpop.f32.mrb[7].mxu0  ;;  %v1928_v15 = vpop.f32.mrb[15].mxu1  ;;  %v4599_v18 = vadd.f32 %v1926_v32, %v5673_v47  ;;  %v6260_v32 = vld [vmem:[#allocation22_spill] sm:$0xff] }
 0x499   : > { %v4576_v43 = vadd.f32 %v1857_v10, %v5666_v57  ;;  %v4600_v62 = vadd.f32 %v1928_v15, %v5670_v40  ;;  %v2046_v15 = vpop.permute.xlu1 %2045 }
 0x49a   : > { %v3406_v38 = vmul.f32 -1.442695, %v4575_v8  ;;  %vm2047_vm13 = vcmp.eq.s32.totalorder %v2046_v15, 1  ;;  %v6263_v15 = vld [vmem:[#allocation10_spill] sm:$0xff] }
 0x49b   : > { %v3407_v22 = vmul.f32 -1.442695, %v4576_v43  ;;  %v3408_v37 = vmul.f32 -1.442695, %v4600_v62 }
 0x49c   : > { %4742 = vpow2.f32 %v3406_v38 }
 0x49d   : > { %4744 = vpow2.f32 %v3407_v22 }
 0x49e   : > { %4746 = vpow2.f32 %v3408_v37 }
 0x49f   : > { %4748 = vtanh.f32 %v4599_v18 }
 0x4a6   : > { %v4743_v31 = vpop.eup %4742 }
 0x4a7   : > { %v4745_v56 = vpop.eup %4744  ;;  %v2009_v17 = vadd.f32 1.0, %v4743_v31 }
 0x4a8   : > { %v2015_v49 = vadd.f32 1.0, %v4745_v56  ;;  %v4747_v44 = vpop.eup %4746 }
 0x4a9   : > { %4750 = vrcp.f32 %v2009_v17  ;;  %v4749_v63 = vpop.eup %4748  ;;  %v2022_v43 = vadd.f32 1.0, %v4747_v44 }
 0x4aa   : > { %4752 = vrcp.f32 %v2015_v49 }
 0x4ab   : > { %4754 = vrcp.f32 %v2022_v43 }
 0x4b3   : > { %v4751_v48 = vpop.eup %4750 }
 0x4b4   : > { %v4753_v8 = vpop.eup %4752  ;;  %v2031_v10 = vmul.f32 %v4751_v48, %v4749_v63 }
 0x4b5   : > { %v2032_v38 = vmul.f32 %v4753_v8, %v5833_v36  ;;  %v4755_v17 = vpop.eup %4754 }
 0x4b7   : > { %v2033_v22 = vadd.f32 %v2032_v38, %v2031_v10  ;;  %v1997_v62 = vpop.f32.mrb[26].mxu0  ;;  %v6261_v38 = vld [vmem:[#allocation23_spill] sm:$0xff] }
 0x4b8   : > { %v2005_v31 = vadd.f32 %v1997_v62, %v6260_v32  ;;  %v3710_v37 = vpop.f32.mrb[27].mxu0 }
 0x4b9   : > { %4756 = vtanh.f32 %v2033_v22  ;;  %v5905_v18 = vsel %vm2047_vm13, %v2033_v22, %v5833_v36  ;;  %v593_v22 = vadd.f32 %v6263_v15, %v6254_v20 }
 0x4ba   : > { %v3409_v56 = vmul.f32 -1.442695, %v2005_v31  ;;  %v6264_v31 = vld [vmem:[#allocation11_spill] sm:$0xff] }
 0x4bc   : > { %4758 = vpow2.f32 %v3409_v56  ;;  %v595_v56 = vadd.f32 %v6264_v31, %v5666_v57 }
 0x4c3   : > { %v4757_v49 = vpop.eup %4756 }
 0x4c4   : > { %v2035_v44 = vmul.f32 %v4757_v49, %v4755_v17 }
 0x4c6   : > { %v4759_v63 = vpop.eup %4758 }
 0x4c7   : > { %v2028_v48 = vadd.f32 1.0, %v4759_v63 }
 0x4c9   : > { %4760 = vrcp.f32 %v2028_v48 }
 0x4d3   : > { %v4761_v8 = vpop.eup %4760 }
 0x4d4   : > { %v2036_v10 = vmul.f32 %v4761_v8, %v2035_v44  ;;  %v2037_v43 = vsub.f32 1.0, %v4761_v8 }
 0x4d6   : > { %v2038_v62 = vmul.f32 %v2037_v43, %v6261_v38 }
 0x4d8   : > { %v2039_v32 = vadd.f32 %v2038_v62, %v2036_v10 }
 0x4da   : > { %v5910_v37 = vsel %vm2047_vm13, %v2039_v32, %v5838_v55  ;;  %v2050_v36 = vsel %vm2047_vm13, %v2039_v32, 0.0  ;;  %v6262_v55 = vld [vmem:[#allocation8_spill] sm:$0xff] }
 0x4db   : > { %3410 = vst [vmem:[%s5027_s26 + $0x18] sm:$0xff] %v2050_v36  ;;  %2125 = vmatmul.mubr.f32.vlgmr.msra.gmra.mrb[28].mxu0 %v5910_v37  ;;  %2196 = vmatmul.mubr.f32.vlgmr.msra.gmra.mrb[16].mxu1 %v5910_v37 }
 0x4dc   : > { %4281 = vmatpush3.bf16.msra.mxu1 %v5472_v35  ;;  %3743 = vmatprep.mubr.msk.f32.mxu1 %vm4902_vm3, %v6250_v41 }
 0x4dd   : > { %4282 = vmatprep.subr.bf16.mxu1 %v6251_v5  ;;  %4306 = vmatpush1.bf16.msra.mxu0 %v5166_v53 }
 0x4de   : > { %4308 = vmatprep.subr.bf16.mxu0 %v5182_v59  ;;  %2395 = vmatprep.mubr.f32.mxu0 %v6250_v41 }
 0x4e0   : > { %4284 = vmatpush3.bf16.msra.mxu1 %v5488_v42 }
 0x4e1   : > { %4285 = vmatprep.subr.bf16.mxu1 %v6251_v5  ;;  %4310 = vmatpush1.bf16.msra.mxu0 %v5202_v1 }
 0x4e2   : > { %4312 = vmatprep.subr.bf16.mxu0 %v5222_v7 }
 0x4e4   : > { %4287 = vmatpush3.bf16.msra.mxu1 %v5506_v54 }
 0x4e5   : > { %4288 = vmatprep.subr.bf16.mxu1 %v6251_v5  ;;  %4314 = vmatpush1.bf16.msra.mxu0 %v5244_v13 }
 0x4e6   : > { %4316 = vmatprep.subr.bf16.mxu0 %v5264_v21 }
 0x4e8   : > { %4290 = vmatpush3.bf16.msra.mxu1 %v5520_v24 }
 0x4e9   : > { %4291 = vmatprep.subr.bf16.mxu1 %v6251_v5  ;;  %4318 = vmatpush1.bf16.msra.mxu0 %v5286_v28 }
 0x4ea   : > { %4320 = vmatprep.subr.bf16.mxu0 %v5306_v34 }
 0x4ec   : > { %4293 = vmatpush3.bf16.msra.mxu1 %v5532_v2 }
 0x4ed   : > { %4294 = vmatprep.subr.bf16.mxu1 %v6251_v5  ;;  %4322 = vmatpush1.bf16.msra.mxu0 %v5328_v46 }
 0x4ee   : > { %4324 = vmatprep.subr.bf16.mxu0 %v5348_v51 }
 0x4f0   : > { %4296 = vmatpush3.bf16.msra.mxu1 %v5544_v9 }
 0x4f1   : > { %4297 = vmatprep.subr.bf16.mxu1 %v6251_v5  ;;  %4326 = vmatpush1.bf16.msra.mxu0 %v5370_v61 }
 0x4f2   : > { %4328 = vmatprep.subr.bf16.mxu0 %v5390_v4 }
 0x4f4   : > { %4299 = vmatpush3.bf16.msra.mxu1 %v5556_v16 }
 0x4f5   : > { %4300 = vmatprep.subr.bf16.mxu1 %v6251_v5  ;;  %4330 = vmatpush1.bf16.msra.mxu0 %v5412_v14 }
 0x4f6   : > { %4332 = vmatprep.subr.bf16.mxu0 %v5439_v25 }
 0x4f8   : > { %4302 = vmatpush3.bf16.msra.mxu1 %v5568_v30 }
 0x4f9   : > { %4336 = vmatprep.subr.bf16.mxu1 %v6262_v55  ;;  %4334 = vmatpush1.bf16.msra.mxu0 %v5449_v29 }
 0x4fa   : > { %4367 = vmatprep.subr.bf16.mxu0 %v6251_v5 }
 0x4fb   : > { %3744 = vmatmul.mubr.f32.vlgmr.msra.gmra.mrb[28].mxu1 %v5910_v37 }
 0x4fc   : > { %4338 = vmatpush1.bf16.msra.mxu1 %v5164_v52  ;;  %2466 = vmatprep.mubr.f32.mxu1 %v6250_v41 }
 0x4fd   : > { %4340 = vmatprep.subr.bf16.mxu1 %v5180_v58 }
 0x500   : > { %4342 = vmatpush1.bf16.msra.mxu1 %v5200_v0 }
 0x501   : > { %4344 = vmatprep.subr.bf16.mxu1 %v5220_v6 }
 0x504   : > { %4346 = vmatpush1.bf16.msra.mxu1 %v5242_v12 }
 0x505   : > { %4348 = vmatprep.subr.bf16.mxu1 %v5262_v19 }
 0x508   : > { %4350 = vmatpush1.bf16.msra.mxu1 %v5284_v27 }
 0x509   : > { %4352 = vmatprep.subr.bf16.mxu1 %v5304_v33 }
 0x50c   : > { %4354 = vmatpush1.bf16.msra.mxu1 %v5326_v45 }
 0x50d   : > { %4356 = vmatprep.subr.bf16.mxu1 %v5346_v50 }
 0x510   : > { %4358 = vmatpush1.bf16.msra.mxu1 %v5368_v60 }
 0x511   : > { %4360 = vmatprep.subr.bf16.mxu1 %v5388_v3 }
 0x514   : > { %4362 = vmatpush1.bf16.msra.mxu1 %v5410_v11 }
 0x515   : > { %4364 = vmatprep.subr.bf16.mxu1 %v5437_v23 }
 0x518   : > { %4366 = vmatpush1.bf16.msra.mxu1 %v5447_v26 }
 0x519   : > { %4424 = vmatprep.subr.bf16.mxu1 %v6262_v55 }
 0x5ae   : > { %v2126_v17 = vpop.f32.mrb[28].mxu0  ;;  %v2197_v49 = vpop.f32.mrb[16].mxu1 }
 0x5af   : > { %v2272_v44 = vadd.f32 %v2126_v17, %v593_v22  ;;  %v2128_v63 = vpop.f32.mrb[29].mxu0  ;;  %v2199_v48 = vpop.f32.mrb[17].mxu1  ;;  %v4601_v32 = vadd.f32 %v2197_v49, %v5673_v47  ;;  %v6265_v49 = vld [vmem:[#allocation24_spill] sm:$0xff] }
 0x5b0   : > { %v2273_v8 = vadd.f32 %v2128_v63, %v595_v56  ;;  %v4602_v38 = vadd.f32 %v2199_v48, %v5670_v40  ;;  %v2317_v48 = vpop.permute.xlu0 %2316 }
 0x5b1   : > { %v3411_v10 = vmul.f32 -1.442695, %v2272_v44  ;;  %vm2318_vm14 = vcmp.eq.s32.totalorder %v2317_v48, 1 }
 0x5b2   : > { %v3412_v43 = vmul.f32 -1.442695, %v2273_v8  ;;  %v3413_v62 = vmul.f32 -1.442695, %v4602_v38 }
 0x5b3   : > { %4762 = vpow2.f32 %v3411_v10 }
 0x5b4   : > { %4764 = vpow2.f32 %v3412_v43 }
 0x5b5   : > { %4766 = vpow2.f32 %v3413_v62 }
 0x5b6   : > { %4768 = vtanh.f32 %v4601_v32 }
 0x5bd   : > { %v4763_v36 = vpop.eup %4762 }
 0x5be   : > { %v4765_v15 = vpop.eup %4764  ;;  %v2280_v55 = vadd.f32 1.0, %v4763_v36 }
 0x5bf   : > { %v2286_v31 = vadd.f32 1.0, %v4765_v15  ;;  %v4767_v22 = vpop.eup %4766 }
 0x5c0   : > { %4770 = vrcp.f32 %v2280_v55  ;;  %v4769_v17 = vpop.eup %4768  ;;  %v2293_v8 = vadd.f32 1.0, %v4767_v22 }
 0x5c1   : > { %4772 = vrcp.f32 %v2286_v31 }
 0x5c2   : > { %4774 = vrcp.f32 %v2293_v8 }
 0x5ca   : > { %v4771_v56 = vpop.eup %4770 }
 0x5cb   : > { %v4773_v44 = vpop.eup %4772  ;;  %v2302_v63 = vmul.f32 %v4771_v56, %v4769_v17 }
 0x5cc   : > { %v2303_v10 = vmul.f32 %v4773_v44, %v5905_v18  ;;  %v4775_v15 = vpop.eup %4774 }
 0x5ce   : > { %v2304_v43 = vadd.f32 %v2303_v10, %v2302_v63  ;;  %v2268_v38 = vpop.f32.mrb[28].mxu1  ;;  %v6266_v10 = vld [vmem:[#allocation25_spill] sm:$0xff] }
 0x5cf   : > { %v2276_v36 = vadd.f32 %v2268_v38, %v6265_v49  ;;  %v3745_v62 = vpop.f32.mrb[29].mxu1 }
 0x5d0   : > { %4776 = vtanh.f32 %v2304_v43  ;;  %v5979_v55 = vsel %vm2318_vm14, %v2304_v43, %v5905_v18  ;;  %v6268_v43 = vld [vmem:[#allocation13_spill] sm:$0xff] }
 0x5d1   : > { %v3414_v32 = vmul.f32 -1.442695, %v2276_v36  ;;  %v601_v36 = vadd.f32 %v6268_v43, %v5666_v57 }
 0x5d3   : > { %4778 = vpow2.f32 %v3414_v32 }
 0x5da   : > { %v4777_v31 = vpop.eup %4776 }
 0x5db   : > { %v2306_v22 = vmul.f32 %v4777_v31, %v4775_v15 }
 0x5dd   : > { %v4779_v17 = vpop.eup %4778 }
 0x5de   : > { %v2299_v56 = vadd.f32 1.0, %v4779_v17 }
 0x5e0   : > { %4780 = vrcp.f32 %v2299_v56 }
 0x5ea   : > { %v4781_v44 = vpop.eup %4780 }
 0x5eb   : > { %v2307_v63 = vmul.f32 %v4781_v44, %v2306_v22  ;;  %v2308_v8 = vsub.f32 1.0, %v4781_v44 }
 0x5ed   : > { %v2309_v38 = vmul.f32 %v2308_v8, %v6266_v10 }
 0x5ef   : > { %v2310_v49 = vadd.f32 %v2309_v38, %v2307_v63 }
 0x5f1   : > { %v5984_v62 = vsel %vm2318_vm14, %v2310_v49, %v5910_v37  ;;  %v2321_v18 = vsel %vm2318_vm14, %v2310_v49, 0.0  ;;  %v6267_v37 = vld [vmem:[#allocation12_spill] sm:$0xff] }
 0x5f2   : > { %3415 = vst [vmem:[%s5027_s26 + $0x20] sm:$0xff] %v2321_v18  ;;  %2396 = vmatmul.mubr.f32.vlgmr.msra.gmra.mrb[30].mxu0 %v5984_v62  ;;  %2467 = vmatmul.mubr.f32.vlgmr.msra.gmra.mrb[18].mxu1 %v5984_v62  ;;  %v599_v48 = vadd.f32 %v6267_v37, %v6254_v20 }
 0x5f3   : > { %4369 = vmatpush3.bf16.msra.mxu0 %v5472_v35  ;;  %3778 = vmatprep.mubr.msk.f32.mxu0 %vm4902_vm3, %v6250_v41 }
 0x5f4   : > { %4370 = vmatprep.subr.bf16.mxu0 %v6251_v5  ;;  %4426 = vmatpush1.bf16.msra.mxu1 %v5164_v52 }
 0x5f5   : > { %4428 = vmatprep.subr.bf16.mxu1 %v5180_v58  ;;  %2737 = vmatprep.mubr.f32.mxu1 %v6250_v41 }
 0x5f7   : > { %4372 = vmatpush3.bf16.msra.mxu0 %v5488_v42 }
 0x5f8   : > { %4373 = vmatprep.subr.bf16.mxu0 %v6251_v5  ;;  %4430 = vmatpush1.bf16.msra.mxu1 %v5200_v0 }
 0x5f9   : > { %4432 = vmatprep.subr.bf16.mxu1 %v5220_v6 }
 0x5fb   : > { %4375 = vmatpush3.bf16.msra.mxu0 %v5506_v54 }
 0x5fc   : > { %4376 = vmatprep.subr.bf16.mxu0 %v6251_v5  ;;  %4434 = vmatpush1.bf16.msra.mxu1 %v5242_v12 }
 0x5fd   : > { %4436 = vmatprep.subr.bf16.mxu1 %v5262_v19 }
 0x5ff   : > { %4378 = vmatpush3.bf16.msra.mxu0 %v5520_v24 }
 0x600   : > { %4379 = vmatprep.subr.bf16.mxu0 %v6251_v5  ;;  %4438 = vmatpush1.bf16.msra.mxu1 %v5284_v27 }
 0x601   : > { %4440 = vmatprep.subr.bf16.mxu1 %v5304_v33 }
 0x603   : > { %4381 = vmatpush3.bf16.msra.mxu0 %v5532_v2 }
 0x604   : > { %4382 = vmatprep.subr.bf16.mxu0 %v6251_v5  ;;  %4442 = vmatpush1.bf16.msra.mxu1 %v5326_v45 }
 0x605   : > { %4444 = vmatprep.subr.bf16.mxu1 %v5346_v50 }
 0x607   : > { %4384 = vmatpush3.bf16.msra.mxu0 %v5544_v9 }
 0x608   : > { %4385 = vmatprep.subr.bf16.mxu0 %v6251_v5  ;;  %4446 = vmatpush1.bf16.msra.mxu1 %v5368_v60 }
 0x609   : > { %4448 = vmatprep.subr.bf16.mxu1 %v5388_v3 }
 0x60b   : > { %4387 = vmatpush3.bf16.msra.mxu0 %v5556_v16 }
 0x60c   : > { %4388 = vmatprep.subr.bf16.mxu0 %v6251_v5  ;;  %4450 = vmatpush1.bf16.msra.mxu1 %v5410_v11 }
 0x60d   : > { %4452 = vmatprep.subr.bf16.mxu1 %v5437_v23 }
 0x60f   : > { %4390 = vmatpush3.bf16.msra.mxu0 %v5568_v30 }
 0x610   : > { %4392 = vmatprep.subr.bf16.mxu0 %v5106_v39  ;;  %4454 = vmatpush1.bf16.msra.mxu1 %v5447_v26 }
 0x611   : > { %4455 = vmatprep.subr.bf16.mxu1 %v6251_v5 }
 0x612   : > { %3779 = vmatmul.mubr.f32.vlgmr.msra.gmra.mrb[32].mxu0 %v5984_v62 }
 0x613   : > { %4394 = vmatpush1.bf16.msra.mxu0 %v5166_v53  ;;  %2666 = vmatprep.mubr.f32.mxu0 %v6250_v41 }
 0x614   : > { %4396 = vmatprep.subr.bf16.mxu0 %v5182_v59 }
 0x617   : > { %4398 = vmatpush1.bf16.msra.mxu0 %v5202_v1 }
 0x618   : > { %4400 = vmatprep.subr.bf16.mxu0 %v5222_v7 }
 0x61b   : > { %4402 = vmatpush1.bf16.msra.mxu0 %v5244_v13 }
 0x61c   : > { %4404 = vmatprep.subr.bf16.mxu0 %v5264_v21 }
 0x61f   : > { %4406 = vmatpush1.bf16.msra.mxu0 %v5286_v28 }
 0x620   : > { %4408 = vmatprep.subr.bf16.mxu0 %v5306_v34 }
 0x623   : > { %4410 = vmatpush1.bf16.msra.mxu0 %v5328_v46 }
 0x624   : > { %4412 = vmatprep.subr.bf16.mxu0 %v5348_v51 }
 0x627   : > { %4414 = vmatpush1.bf16.msra.mxu0 %v5370_v61 }
 0x628   : > { %4416 = vmatprep.subr.bf16.mxu0 %v5390_v4 }
 0x62b   : > { %4418 = vmatpush1.bf16.msra.mxu0 %v5412_v14 }
 0x62c   : > { %4420 = vmatprep.subr.bf16.mxu0 %v5439_v25 }
 0x62f   : > { %4422 = vmatpush1.bf16.msra.mxu0 %v5449_v29 }
 0x630   : > { %4480 = vmatprep.subr.bf16.mxu0 %v5106_v39 }
 0x6c5   : > { %v2397_v32 = vpop.f32.mrb[30].mxu0  ;;  %v2468_v15 = vpop.f32.mrb[18].mxu1 }
 0x6c6   : > { %v2543_v31 = vadd.f32 %v2397_v32, %v599_v48  ;;  %v2399_v22 = vpop.f32.mrb[31].mxu0  ;;  %v2470_v17 = vpop.f32.mrb[19].mxu1  ;;  %v4603_v39 = vadd.f32 %v2468_v15, %v5673_v47  ;;  %v6269_v15 = vld [vmem:[#allocation26_spill] sm:$0xff] }
 0x6c7   : > { %v2544_v56 = vadd.f32 %v2399_v22, %v601_v36  ;;  %v4604_v8 = vadd.f32 %v2470_v17, %v5670_v40  ;;  %v2588_v17 = vpop.permute.xlu1 %2587 }
 0x6c8   : > { %v3416_v44 = vmul.f32 -1.442695, %v2543_v31  ;;  %vm2589_vm15 = vcmp.eq.s32.totalorder %v2588_v17, 1 }
 0x6c9   : > { %v3417_v63 = vmul.f32 -1.442695, %v2544_v56  ;;  %v3418_v10 = vmul.f32 -1.442695, %v4604_v8 }
 0x6ca   : > { %4782 = vpow2.f32 %v3416_v44 }
 0x6cb   : > { %4784 = vpow2.f32 %v3417_v63 }
 0x6cc   : > { %4786 = vpow2.f32 %v3418_v10 }
 0x6cd   : > { %4788 = vtanh.f32 %v4603_v39 }
 0x6d4   : > { %v4783_v38 = vpop.eup %4782 }
 0x6d5   : > { %v4785_v49 = vpop.eup %4784  ;;  %v2551_v18 = vadd.f32 1.0, %v4783_v38 }
 0x6d6   : > { %v2557_v37 = vadd.f32 1.0, %v4785_v49  ;;  %v4787_v48 = vpop.eup %4786 }
 0x6d7   : > { %4790 = vrcp.f32 %v2551_v18  ;;  %v4789_v43 = vpop.eup %4788  ;;  %v2564_v22 = vadd.f32 1.0, %v4787_v48 }
 0x6d8   : > { %4792 = vrcp.f32 %v2557_v37 }
 0x6d9   : > { %4794 = vrcp.f32 %v2564_v22  ;;  %v6270_v22 = vld [vmem:[#allocation27_spill] sm:$0xff] }
 0x6e1   : > { %v4791_v36 = vpop.eup %4790 }
 0x6e2   : > { %v4793_v32 = vpop.eup %4792  ;;  %v2573_v31 = vmul.f32 %v4791_v36, %v4789_v43 }
 0x6e3   : > { %v2574_v56 = vmul.f32 %v4793_v32, %v5979_v55  ;;  %v4795_v49 = vpop.eup %4794 }
 0x6e5   : > { %v2575_v44 = vadd.f32 %v2574_v56, %v2573_v31  ;;  %v2539_v63 = vpop.f32.mrb[32].mxu0 }
 0x6e6   : > { %v2547_v8 = vadd.f32 %v2539_v63, %v6269_v15  ;;  %v3780_v10 = vpop.f32.mrb[33].mxu0 }
 0x6e7   : > { %4796 = vtanh.f32 %v2575_v44  ;;  %v6053_v39 = vsel %vm2589_vm15, %v2575_v44, %v5979_v55 }
 0x6e8   : > { %v3419_v38 = vmul.f32 -1.442695, %v2547_v8 }
 0x6ea   : > { %4798 = vpow2.f32 %v3419_v38 }
 0x6f1   : > { %v4797_v18 = vpop.eup %4796 }
 0x6f2   : > { %v2577_v37 = vmul.f32 %v4797_v18, %v4795_v49 }
 0x6f4   : > { %v4799_v48 = vpop.eup %4798 }
 0x6f5   : > { %v2570_v43 = vadd.f32 1.0, %v4799_v48 }
 0x6f7   : > { %4800 = vrcp.f32 %v2570_v43 }
 0x701   : > { %v4801_v36 = vpop.eup %4800 }
 0x702   : > { %v2578_v32 = vmul.f32 %v4801_v36, %v2577_v37  ;;  %v2579_v31 = vsub.f32 1.0, %v4801_v36 }
 0x704   : > { %v2580_v56 = vmul.f32 %v2579_v31, %v6270_v22  ;;  %v6275_v31 = vld [vmem:[#allocation29_spill] sm:$0xff] }
 0x706   : > { %v2581_v63 = vadd.f32 %v2580_v56, %v2578_v32 }
 0x708   : > { %v6058_v15 = vsel %vm2589_vm15, %v2581_v63, %v5984_v62  ;;  %v2592_v55 = vsel %vm2589_vm15, %v2581_v63, 0.0  ;;  %v6274_v62 = vld [vmem:[#allocation28_spill] sm:$0xff] }
 0x709   : > { %3420 = vst [vmem:[%s5027_s26 + $0x28] sm:$0xff] %v2592_v55  ;;  %2667 = vmatmul.mubr.f32.vlgmr.msra.gmra.mrb[34].mxu0 %v6058_v15  ;;  %2738 = vmatmul.mubr.f32.vlgmr.msra.gmra.mrb[20].mxu1 %v6058_v15 }
 0x70a   : > { %4457 = vmatpush3.bf16.msra.mxu1 %v5472_v35  ;;  %3813 = vmatprep.mubr.msk.f32.mxu1 %vm4902_vm3, %v6250_v41 }
 0x70b   : > { %4458 = vmatprep.subr.bf16.mxu1 %v6251_v5  ;;  %4482 = vmatpush1.bf16.msra.mxu0 %v5166_v53  ;;  %v6271_v53 = vld [vmem:[#allocation8_spill] sm:$0xff] }
 0x70c   : > { %4484 = vmatprep.subr.bf16.mxu0 %v5182_v59  ;;  %2937 = vmatprep.mubr.f32.mxu0 %v6250_v41  ;;  %v6273_v59 = vld [vmem:[#allocation15_spill] sm:$0xff] }
 0x70e   : > { %4460 = vmatpush3.bf16.msra.mxu1 %v5488_v42 }
 0x70f   : > { %4461 = vmatprep.subr.bf16.mxu1 %v6251_v5  ;;  %4486 = vmatpush1.bf16.msra.mxu0 %v5202_v1 }
 0x710   : > { %4488 = vmatprep.subr.bf16.mxu0 %v5222_v7 }
 0x712   : > { %4463 = vmatpush3.bf16.msra.mxu1 %v5506_v54 }
 0x713   : > { %4464 = vmatprep.subr.bf16.mxu1 %v6251_v5  ;;  %4490 = vmatpush1.bf16.msra.mxu0 %v5244_v13 }
 0x714   : > { %4492 = vmatprep.subr.bf16.mxu0 %v5264_v21 }
 0x716   : > { %4466 = vmatpush3.bf16.msra.mxu1 %v5520_v24 }
 0x717   : > { %4467 = vmatprep.subr.bf16.mxu1 %v6251_v5  ;;  %4494 = vmatpush1.bf16.msra.mxu0 %v5286_v28 }
 0x718   : > { %4496 = vmatprep.subr.bf16.mxu0 %v5306_v34 }
 0x71a   : > { %4469 = vmatpush3.bf16.msra.mxu1 %v5532_v2 }
 0x71b   : > { %4470 = vmatprep.subr.bf16.mxu1 %v6251_v5  ;;  %4498 = vmatpush1.bf16.msra.mxu0 %v5328_v46 }
 0x71c   : > { %4500 = vmatprep.subr.bf16.mxu0 %v5348_v51 }
 0x71e   : > { %4472 = vmatpush3.bf16.msra.mxu1 %v5544_v9 }
 0x71f   : > { %4473 = vmatprep.subr.bf16.mxu1 %v6251_v5  ;;  %4502 = vmatpush1.bf16.msra.mxu0 %v5370_v61 }
 0x720   : > { %4504 = vmatprep.subr.bf16.mxu0 %v5390_v4 }
 0x722   : > { %4475 = vmatpush3.bf16.msra.mxu1 %v5556_v16 }
 0x723   : > { %4476 = vmatprep.subr.bf16.mxu1 %v6251_v5  ;;  %4506 = vmatpush1.bf16.msra.mxu0 %v5412_v14 }
 0x724   : > { %4508 = vmatprep.subr.bf16.mxu0 %v5439_v25 }
 0x726   : > { %4478 = vmatpush3.bf16.msra.mxu1 %v5568_v30 }
 0x727   : > { %4512 = vmatprep.subr.bf16.mxu1 %v6271_v53  ;;  %4510 = vmatpush1.bf16.msra.mxu0 %v5449_v29 }
 0x728   : > { %4543 = vmatprep.subr.bf16.mxu0 %v6251_v5 }
 0x729   : > { %3814 = vmatmul.mubr.f32.vlgmr.msra.gmra.mrb[30].mxu1 %v6058_v15 }
 0x72a   : > { %4514 = vmatpush1.bf16.msra.mxu1 %v5164_v52  ;;  %3008 = vmatprep.mubr.f32.mxu1 %v6250_v41  ;;  %v6272_v52 = vld [vmem:[#allocation14_spill] sm:$0xff] }
 0x72b   : > { %4516 = vmatprep.subr.bf16.mxu1 %v5180_v58  ;;  %v605_v58 = vadd.f32 %v6272_v52, %v6254_v20 }
 0x72e   : > { %4518 = vmatpush1.bf16.msra.mxu1 %v5200_v0  ;;  %v607_v0 = vadd.f32 %v6273_v59, %v5666_v57 }
 0x72f   : > { %4520 = vmatprep.subr.bf16.mxu1 %v5220_v6 }
 0x732   : > { %4522 = vmatpush1.bf16.msra.mxu1 %v5242_v12 }
 0x733   : > { %4524 = vmatprep.subr.bf16.mxu1 %v5262_v19 }
 0x736   : > { %4526 = vmatpush1.bf16.msra.mxu1 %v5284_v27 }
 0x737   : > { %4528 = vmatprep.subr.bf16.mxu1 %v5304_v33 }
 0x73a   : > { %4530 = vmatpush1.bf16.msra.mxu1 %v5326_v45 }
 0x73b   : > { %4532 = vmatprep.subr.bf16.mxu1 %v5346_v50 }
 0x73e   : > { %4534 = vmatpush1.bf16.msra.mxu1 %v5368_v60 }
 0x73f   : > { %4536 = vmatprep.subr.bf16.mxu1 %v5388_v3 }
 0x742   : > { %4538 = vmatpush1.bf16.msra.mxu1 %v5410_v11 }
 0x743   : > { %4540 = vmatprep.subr.bf16.mxu1 %v5437_v23  ;;  %v2859_v23 = vpop.permute.xlu0 %2858 }
 0x744   : > { %vm2860_vm0 = vcmp.eq.s32.totalorder %v2859_v23, 1  ;;  %v6279_v23 = vld [vmem:[#allocation31_spill] sm:$0xff] }
 0x746   : > { %4542 = vmatpush1.bf16.msra.mxu1 %v5447_v26 }
 0x7dc   : > { %v2668_v1 = vpop.f32.mrb[34].mxu0  ;;  %v2739_v6 = vpop.f32.mrb[20].mxu1 }
 0x7dd   : > { %v2814_v7 = vadd.f32 %v2668_v1, %v605_v58  ;;  %v2670_v12 = vpop.f32.mrb[35].mxu0  ;;  %v2741_v13 = vpop.f32.mrb[21].mxu1  ;;  %v4605_v34 = vadd.f32 %v2739_v6, %v5673_v47 }
 0x7de   : > { %v2815_v19 = vadd.f32 %v2670_v12, %v607_v0  ;;  %v4606_v28 = vadd.f32 %v2741_v13, %v5670_v40 }
 0x7df   : > { %v3421_v21 = vmul.f32 -1.442695, %v2814_v7 }
 0x7e0   : > { %v3422_v27 = vmul.f32 -1.442695, %v2815_v19  ;;  %v3423_v33 = vmul.f32 -1.442695, %v4606_v28  ;;  %v6278_v28 = vld [vmem:[#allocation30_spill] sm:$0xff] }
 0x7e1   : > { %4802 = vpow2.f32 %v3421_v21  ;;  %v3130_v21 = vpop.permute.xlu1 %3129 }
 0x7e2   : > { %4804 = vpow2.f32 %v3422_v27  ;;  %vm3131_vm1 = vcmp.eq.s32.totalorder %v3130_v21, 1 }
 0x7e3   : > { %4806 = vpow2.f32 %v3423_v33 }
 0x7e4   : > { %4808 = vtanh.f32 %v4605_v34 }
 0x7eb   : > { %v4803_v45 = vpop.eup %4802 }
 0x7ec   : > { %v4805_v46 = vpop.eup %4804  ;;  %v2822_v50 = vadd.f32 1.0, %v4803_v45 }
 0x7ed   : > { %v2828_v51 = vadd.f32 1.0, %v4805_v46  ;;  %v4807_v60 = vpop.eup %4806 }
 0x7ee   : > { %4810 = vrcp.f32 %v2822_v50  ;;  %v4809_v61 = vpop.eup %4808  ;;  %v2835_v14 = vadd.f32 1.0, %v4807_v60 }
 0x7ef   : > { %4812 = vrcp.f32 %v2828_v51 }
 0x7f0   : > { %4814 = vrcp.f32 %v2835_v14 }
 0x7f8   : > { %v4811_v3 = vpop.eup %4810 }
 0x7f9   : > { %v4813_v4 = vpop.eup %4812  ;;  %v2844_v11 = vmul.f32 %v4811_v3, %v4809_v61 }
 0x7fa   : > { %v2845_v25 = vmul.f32 %v4813_v4, %v6053_v39  ;;  %v4815_v38 = vpop.eup %4814 }
 0x7fc   : > { %v2846_v26 = vadd.f32 %v2845_v25, %v2844_v11  ;;  %v2810_v29 = vpop.f32.mrb[30].mxu1 }
 0x7fd   : > { %v2818_v17 = vadd.f32 %v2810_v29, %v6274_v62  ;;  %v3815_v44 = vpop.f32.mrb[31].mxu1 }
 0x7fe   : > { %4816 = vtanh.f32 %v2846_v26  ;;  %v6126_v8 = vsel %vm2860_vm0, %v2846_v26, %v6053_v39 }
 0x7ff   : > { %v3424_v10 = vmul.f32 -1.442695, %v2818_v17 }
 0x801   : > { %4818 = vpow2.f32 %v3424_v10 }
 0x808   : > { %v4817_v49 = vpop.eup %4816 }
 0x809   : > { %v2848_v18 = vmul.f32 %v4817_v49, %v4815_v38 }
 0x80b   : > { %v4819_v37 = vpop.eup %4818 }
 0x80c   : > { %v2841_v48 = vadd.f32 1.0, %v4819_v37 }
 0x80e   : > { %4820 = vrcp.f32 %v2841_v48 }
 0x818   : > { %v4821_v43 = vpop.eup %4820 }
 0x819   : > { %v2849_v36 = vmul.f32 %v4821_v43, %v2848_v18  ;;  %v2850_v32 = vsub.f32 1.0, %v4821_v43 }
 0x81b   : > { %v2851_v22 = vmul.f32 %v2850_v32, %v6275_v31 }
 0x81d   : > { %v2852_v56 = vadd.f32 %v2851_v22, %v2849_v36 }
 0x81f   : > { %v6131_v63 = vsel %vm2860_vm0, %v2852_v56, %v6058_v15  ;;  %v2863_v39 = vsel %vm2860_vm0, %v2852_v56, 0.0 }
 0x820   : > { %3425 = vst [vmem:[%s5027_s26 + $0x30] sm:$0xff] %v2863_v39  ;;  %2938 = vmatmul.mubr.f32.vlgmr.msra.gmra.mrb[36].mxu0 %v6131_v63  ;;  %3009 = vmatmul.mubr.f32.vlgmr.msra.gmra.mrb[22].mxu1 %v6131_v63 }
 0x821   : > { %4545 = vmatpush3.bf16.msra.mxu0 %v5472_v35  ;;  %3848 = vmatprep.mubr.msk.f32.mxu0 %vm4902_vm3, %v6250_v41  ;;  %v6276_v35 = vld [vmem:[#allocation16_spill] sm:$0xff] }
 0x822   : > { %4546 = vmatprep.subr.bf16.mxu0 %v6251_v5 }
 0x825   : > { %4548 = vmatpush3.bf16.msra.mxu0 %v5488_v42  ;;  %v611_v42 = vadd.f32 %v6276_v35, %v6254_v20 }
 0x826   : > { %4549 = vmatprep.subr.bf16.mxu0 %v6251_v5 }
 0x829   : > { %4551 = vmatpush3.bf16.msra.mxu0 %v5506_v54  ;;  %v6277_v54 = vld [vmem:[#allocation17_spill] sm:$0xff] }
 0x82a   : > { %4552 = vmatprep.subr.bf16.mxu0 %v6251_v5 }
 0x82d   : > { %4554 = vmatpush3.bf16.msra.mxu0 %v5520_v24  ;;  %v613_v24 = vadd.f32 %v6277_v54, %v5666_v57 }
 0x82e   : > { %4555 = vmatprep.subr.bf16.mxu0 %v6251_v5 }
 0x831   : > { %4557 = vmatpush3.bf16.msra.mxu0 %v5532_v2 }
 0x832   : > { %4558 = vmatprep.subr.bf16.mxu0 %v6251_v5 }
 0x835   : > { %4560 = vmatpush3.bf16.msra.mxu0 %v5544_v9 }
 0x836   : > { %4561 = vmatprep.subr.bf16.mxu0 %v6251_v5 }
 0x839   : > { %4563 = vmatpush3.bf16.msra.mxu0 %v5556_v16 }
 0x83a   : > { %4564 = vmatprep.subr.bf16.mxu0 %v6251_v5 }
 0x83d   : > { %4566 = vmatpush3.bf16.msra.mxu0 %v5568_v30 }
 0x840   : > { %3849 = vmatmul.mubr.f32.vlgmr.msra.gmra.mrb[38].mxu0 %v6131_v63 }
 0x8f3   : > { %v2939_v2 = vpop.f32.mrb[36].mxu0  ;;  %v3010_v41 = vpop.f32.mrb[22].mxu1 }
 0x8f4   : > { %v3085_v15 = vadd.f32 %v2939_v2, %v611_v42  ;;  %v2941_v9 = vpop.f32.mrb[37].mxu0  ;;  %v3012_v55 = vpop.f32.mrb[23].mxu1  ;;  %v4607_v58 = vadd.f32 %v3010_v41, %v5673_v47 }
 0x8f5   : > { %v3086_v53 = vadd.f32 %v2941_v9, %v613_v24  ;;  %v4608_v30 = vadd.f32 %v3012_v55, %v5670_v40 }
 0x8f6   : > { %v3426_v52 = vmul.f32 -1.442695, %v3085_v15 }
 0x8f7   : > { %v3427_v16 = vmul.f32 -1.442695, %v3086_v53  ;;  %v3428_v5 = vmul.f32 -1.442695, %v4608_v30 }
 0x8f8   : > { %4822 = vpow2.f32 %v3426_v52 }
 0x8f9   : > { %4824 = vpow2.f32 %v3427_v16 }
 0x8fa   : > { %4826 = vpow2.f32 %v3428_v5 }
 0x8fb   : > { %4828 = vtanh.f32 %v4607_v58 }
 0x902   : > { %v4823_v59 = vpop.eup %4822 }
 0x903   : > { %v4825_v20 = vpop.eup %4824  ;;  %v3093_v0 = vadd.f32 1.0, %v4823_v59 }
 0x904   : > { %v3099_v57 = vadd.f32 1.0, %v4825_v20  ;;  %v4827_v1 = vpop.eup %4826 }
 0x905   : > { %4830 = vrcp.f32 %v3093_v0  ;;  %v4829_v6 = vpop.eup %4828  ;;  %v3106_v19 = vadd.f32 1.0, %v4827_v1 }
 0x906   : > { %4832 = vrcp.f32 %v3099_v57 }
 0x907   : > { %4834 = vrcp.f32 %v3106_v19 }
 0x90f   : > { %v4831_v7 = vpop.eup %4830 }
 0x910   : > { %v4833_v12 = vpop.eup %4832  ;;  %v3115_v13 = vmul.f32 %v4831_v7, %v4829_v6 }
 0x911   : > { %v3116_v40 = vmul.f32 %v4833_v12, %v6126_v8  ;;  %v4835_v50 = vpop.eup %4834 }
 0x913   : > { %v3117_v27 = vadd.f32 %v3116_v40, %v3115_v13  ;;  %v3081_v47 = vpop.f32.mrb[38].mxu0 }
 0x914   : > { %v3089_v33 = vadd.f32 %v3081_v47, %v6278_v28  ;;  %v3850_v34 = vpop.f32.mrb[39].mxu0 }
 0x915   : > { %4836 = vtanh.f32 %v3117_v27  ;;  %v3132_v45 = vsel %vm3131_vm1, %v3117_v27, %v6126_v8 }
 0x916   : > { %3138 = vst [vmem:[%s5022_s24] sm:$0xff] %v3132_v45  ;;  %v3429_v46 = vmul.f32 -1.442695, %v3089_v33 }
 0x918   : > { %4838 = vpow2.f32 %v3429_v46 }
 0x91f   : > { %v4837_v51 = vpop.eup %4836 }
 0x920   : > { %v3119_v60 = vmul.f32 %v4837_v51, %v4835_v50 }
 0x922   : > { %v4839_v61 = vpop.eup %4838 }
 0x923   : > { %v3112_v3 = vadd.f32 1.0, %v4839_v61 }
 0x925   : > { %4840 = vrcp.f32 %v3112_v3 }
 0x92f   : > { %v4841_v4 = vpop.eup %4840 }
 0x930   : > { %v3120_v11 = vmul.f32 %v4841_v4, %v3119_v60  ;;  %v3121_v14 = vsub.f32 1.0, %v4841_v4 }
 0x932   : > { %v3122_v25 = vmul.f32 %v3121_v14, %v6279_v23 }
 0x934   : > { %v3123_v26 = vadd.f32 %v3122_v25, %v3120_v11 }
 0x936   : > { %v3133_v29 = vsel %vm3131_vm1, %v3123_v26, %v6131_v63  ;;  %v3134_v62 = vsel %vm3131_vm1, %v3123_v26, 0.0 }
 0x937   : > { %3430 = vst [vmem:[%s5027_s26 + $0x38] sm:$0xff] %v3134_v62  ;;  %3137 = vst [vmem:[%s5015_s22] sm:$0xff] %v3133_v29 }
 0x938 PF: > { %3153 = sbr.rel (!%p4986_p11) target bundleno = 2368 (0x940), region = 94  ;;  %s3432_s24 = sshll.u32 (%p4986_p11), %s4886_s12, 3  ;;  %v3200_v17 = vld [vmem:[%s5027_s26] sm:$0xff] (%p4986_p11)  ;;  %v3202_v44 = vld [vmem:[%s5027_s26 + $0x8] sm:$0xff] (%p4986_p11)  ;;  %v3204_v8 = vld [vmem:[%s5027_s26 + $0x10] sm:$0xff] (%p4986_p11) }
 0x939   : > { %s3158_s22 = scalar_lea.vmem (%p4986_p11), %s6207_s6, %s3432_s24  ;;  %v3206_v10 = vld [vmem:[%s5027_s26 + $0x18] sm:$0xff] (%p4986_p11)  ;;  %v3208_v38 = vld [vmem:[%s5027_s26 + $0x20] sm:$0xff] (%p4986_p11)  ;;  %v3210_v49 = vld [vmem:[%s5027_s26 + $0x28] sm:$0xff] (%p4986_p11) }
 0x93a   : > { %3201 = vst [vmem:[%s3158_s22] sm:$0xff] (%p4986_p11), %v3200_v17  ;;  %3203 = vst [vmem:[%s3158_s22 + $0x10] sm:$0xff] (%p4986_p11), %v3202_v44  ;;  %v3212_v18 = vld [vmem:[%s5027_s26 + $0x30] sm:$0xff] (%p4986_p11) }
 0x93b   : > { %3205 = vst [vmem:[%s3158_s22 + $0x20] sm:$0xff] (%p4986_p11), %v3204_v8  ;;  %3207 = vst [vmem:[%s3158_s22 + $0x30] sm:$0xff] (%p4986_p11), %v3206_v10 }
 0x93c   : > { %3209 = vst [vmem:[%s3158_s22 + $0x40] sm:$0xff] (%p4986_p11), %v3208_v38  ;;  %3211 = vst [vmem:[%s3158_s22 + $0x50] sm:$0xff] (%p4986_p11), %v3210_v49 }
 0x93d   : > { %3213 = vst [vmem:[%s3158_s22 + $0x60] sm:$0xff] (%p4986_p11), %v3212_v18 }
 0x93e   : > { %v3214_v37 = vld [vmem:[%s5027_s26 + $0x38] sm:$0xff] (%p4986_p11) }
 0x93f   : > { %3215 = vst [vmem:[%s3158_s22 + $0x70] sm:$0xff] %v3214_v37 }
 0x940 PF: > { %s25_s13 = sadd.s32 1, %s4894_s13   ;;  %s6280_s10 = smov %s4882_s11 }
 0x941   : > { %p22_p5 = scmp.ge.s32.totalorder %s25_s13, 4   ;;  %s6281_s11 = smov %s4991_s19 }
 0x942   : > { %s6282_s12 = smov %s4890_s0  ;;  %s6283_s0 = smov %s6285_s14 }
 0x943   :  { %24 = sbr.rel (!%p22_p5) target bundleno = 18 (0x12), region = 204 }

</bundles_post_ra>
